<compile_context>
chip_gen: v7x
topology: tpu7x:2x2x1
jax: 0.10.0
libtpu: 0.0.40
codegen_flags: <defaults>
</compile_context>

<pallas_src>
import functools

import jax
import jax.numpy as jnp
import numpy as np
from jax.experimental import pallas as pl
from jax.experimental.pallas import tpu as pltpu


# ----------------------------------------------------------------------------
# Pass 1: convolutions
# ----------------------------------------------------------------------------
def _sab_conv_kernel(H, W, C16, C8, BASE,
                     xy_ref, wcat_ref, bcat_ref, wx_ref, bx_ref,
                     wc_ref, bc_ref,
                     front_ref, outc_ref, pad_ref):
    HW = H * W
    xy = xy_ref[0]                                          # (HW, Cin+Cp)

    # conv1_1(x) and conv1_2(y) fused into one block-diagonal 1x1 matmul:
    # cat = [x0 | y0]  (== torch.cat((conv1_1(x), conv1_2(y)), 1))
    cat = (jnp.dot(xy, wcat_ref[...], preferred_element_type=jnp.float32)
           + bcat_ref[...])                                 # (HW, C8)

    # conv1x1_1(x0) -> sigmoid (weight is zero on the y0 lanes).
    z = (jnp.dot(cat, wx_ref[...], preferred_element_type=jnp.float32)
         + bx_ref[...])                                     # (HW, 1)
    x1 = 1.0 / (1.0 + jnp.exp(-z))

    # 3x3 conv, padding=1, as 9 shifted matmuls on a zero-padded flat copy.
    # Only the halo strips are zeroed (the body is fully overwritten), and
    # this is done every grid step so it stays correct under "parallel"
    # megacore sharding (each core has its own scratch).
    pad_ref[0:BASE, :] = jnp.zeros((BASE, C8), jnp.float32)
    pad_ref[BASE + HW:BASE + HW + BASE, :] = jnp.zeros((BASE, C8), jnp.float32)
    pad_ref[BASE:BASE + HW, :] = cat

    col = jax.lax.broadcasted_iota(jnp.int32, (HW, 1), 0) % W
    mask_l = col >= 1            # tap kx = -1 stays inside the row
    mask_r = col < (W - 1)       # tap kx = +1 stays inside the row

    acc = jnp.zeros((HW, C16), jnp.float32)
    for ky in (-1, 0, 1):
        if abs(ky) >= H:         # dead tap: shift lands entirely in zero pad
            continue
        for kx in (-1, 0, 1):
            if abs(kx) >= W:     # dead tap: whole tap masked out
                continue
            off = BASE + ky * W + kx
            shifted = pad_ref[off:off + HW, :]              # (HW, C8)
            if kx == -1:
                shifted = jnp.where(mask_l, shifted, 0.0)
            elif kx == 1:
                shifted = jnp.where(mask_r, shifted, 0.0)
            k = (ky + 1) * 3 + (kx + 1)
            acc = acc + jnp.dot(shifted, wc_ref[k],
                                preferred_element_type=jnp.float32)
    out_c = acc + bc_ref[...]                               # (HW, C16)

    front_ref[0] = out_c * x1                               # front_ = out_c * sigmoid
    outc_ref[0] = out_c


# ----------------------------------------------------------------------------
# Pass 2: normalize / residual adds / relu (elementwise)
# ----------------------------------------------------------------------------
def _sab_tail_kernel(front_ref, outc_ref, h_ref, mm_ref,
                     norm_ref, later_ref, relu_ref):
    mm = mm_ref[...]             # (1, 2) = [global_min, 1/(global_max-global_min)]
    mn = mm[:, 0:1]
    inv = mm[:, 1:2]

    front_ = front_ref[0]
    out_c = outc_ref[0]
    front = (front_ - mn) * inv          # (out - out.min()) / (out.max() - out.min())
    later = front + h_ref[0]             # out1 = out + h   (diff == 0 path)
    norm_ref[0] = front
    later_ref[0] = later
    relu_ref[0] = jnp.maximum(later + out_c, 0.0)   # relu(out1 + out_c)


# ----------------------------------------------------------------------------
# Wrapper
# ----------------------------------------------------------------------------
def sab_forward(x, y, h, params):
    N, Cin, H, W = x.shape
    Cp = y.shape[1]
    C8, C16 = params["wc"].shape[1], params["wc"].shape[2]

    # TODO(synk): only the equal-spatial-size path of the module is implemented
    # (no bilinear resize of y, no F.pad of out/out_c against h).
    assert y.shape[2:] == (H, W)
    assert h.shape == (N, C16, H, W)

    HW = H * W
    BASE = ((W + 1 + 7) // 8) * 8        # sublane-aligned halo size >= W + 1

    def to_flat(t):                      # NCHW -> (N, HW, C) float32
        return (jnp.transpose(t, (0, 2, 3, 1))
                .reshape(N, HW, t.shape[1]).astype(jnp.float32))

    xy_f = jnp.concatenate([to_flat(x), to_flat(y)], axis=-1)   # (N, HW, Cin+Cp)
    h_f = to_flat(h)

    def full(shape):
        return pl.BlockSpec(shape, lambda n, _s=shape: (0,) * len(_s))

    conv_kernel = functools.partial(_sab_conv_kernel, H, W, C16, C8, BASE)

    front_f, outc_f = pl.pallas_call(
        conv_kernel,
        out_shape=(jax.ShapeDtypeStruct((N, HW, C16), jnp.float32),
                   jax.ShapeDtypeStruct((N, HW, C16), jnp.float32)),
        grid_spec=pltpu.PrefetchScalarGridSpec(
            num_scalar_prefetch=0,
            grid=(N,),
            in_specs=[
                pl.BlockSpec((1, HW, Cin + Cp), lambda n: (n, 0, 0)),
                full(params["wcat"].shape), full(params["bcat"].shape),
                full(params["wx"].shape), full(params["bx"].shape),
                full(params["wc"].shape), full(params["bc"].shape),
            ],
            out_specs=[pl.BlockSpec((1, HW, C16), lambda n: (n, 0, 0)),
                       pl.BlockSpec((1, HW, C16), lambda n: (n, 0, 0))],
            scratch_shapes=[pltpu.VMEM((HW + 2 * BASE, C8), jnp.float32)],
        ),
        compiler_params=pltpu.CompilerParams(
            dimension_semantics=("parallel",)),
    )(xy_f, params["wcat"], params["bcat"], params["wx"], params["bx"],
      params["wc"], params["bc"])

    # torch .min()/.max() with no dim: global over the whole batch tensor,
    # so this reduction has to sit between the two pallas calls.
    mn = jnp.min(front_f)
    mx = jnp.max(front_f)
    mm = jnp.stack([mn, 1.0 / (mx - mn)]).reshape(1, 2).astype(jnp.float32)

    norm_f, later_f, relu_f = pl.pallas_call(
        _sab_tail_kernel,
        out_shape=(jax.ShapeDtypeStruct((N, HW, C16), jnp.float32),) * 3,
        grid_spec=pltpu.PrefetchScalarGridSpec(
            num_scalar_prefetch=0,
            grid=(N,),
            in_specs=[
                pl.BlockSpec((1, HW, C16), lambda n: (n, 0, 0)),
                pl.BlockSpec((1, HW, C16), lambda n: (n, 0, 0)),
                pl.BlockSpec((1, HW, C16), lambda n: (n, 0, 0)),
                full((1, 2)),
            ],
            out_specs=[pl.BlockSpec((1, HW, C16), lambda n: (n, 0, 0))] * 3,
        ),
        compiler_params=pltpu.CompilerParams(
            dimension_semantics=("parallel",)),
    )(front_f, outc_f, h_f, mm)

    def to_nchw(t):                      # (N, HW, C16) -> NCHW
        return jnp.transpose(t.reshape(N, H, W, C16), (0, 3, 1, 2))

    # (F.relu(out2), front_, front, later)
    return to_nchw(relu_f), to_nchw(front_f), to_nchw(norm_f), to_nchw(later_f)


# ----------------------------------------------------------------------------
# Deterministic parameter init and pure-JAX reference
# ----------------------------------------------------------------------------
def _conv_params(key, cout, cin, kh, kw):
    k1, k2 = jax.random.split(key)
    bound = 1.0 / np.sqrt(cin * kh * kw)
    w = jax.random.uniform(k1, (cout, cin, kh, kw), jnp.float32, -bound, bound)
    b = jax.random.uniform(k2, (cout,), jnp.float32, -bound, bound)
    return w, b


def init_raw_params(key, inplanes, planes):
    c16, c8 = inplanes // 16, inplanes // 8
    ks = jax.random.split(key, 4)
    return {
        "conv1_1": _conv_params(ks[0], c16, inplanes, 1, 1),
        "conv1_2": _conv_params(ks[1], c16, planes, 1, 1),
        "conv1x1_1": _conv_params(ks[2], 1, c16, 1, 1),
        "conv3x3": _conv_params(ks[3], c16, c8, 3, 3),
    }


def prepare_kernel_params(raw, inplanes, planes):
    c16, c8 = inplanes // 16, inplanes // 8
    w11, b11 = raw["conv1_1"]
    w12, b12 = raw["conv1_2"]
    wx, bx = raw["conv1x1_1"]
    w3, b3 = raw["conv3x3"]

    w1 = jnp.transpose(w11[:, :, 0, 0], (1, 0))          # (Cin, C16)
    w2 = jnp.transpose(w12[:, :, 0, 0], (1, 0))          # (Cp,  C16)
    # Block-diagonal weight so cat(conv1_1(x), conv1_2(y)) is ONE matmul on [x|y].
    wcat = jnp.zeros((inplanes + planes, c8), jnp.float32)
    wcat = wcat.at[:inplanes, :c16].set(w1)
    wcat = wcat.at[inplanes:, c16:].set(w2)
    bcat = jnp.concatenate([b11, b12])[None, :]          # (1, C8)

    # conv1x1_1 acts only on the x0 half of cat.
    wx1 = jnp.concatenate([jnp.transpose(wx[:, :, 0, 0], (1, 0)),
                           jnp.zeros((c16, 1), jnp.float32)], axis=0)  # (C8, 1)
    bx1 = bx.reshape(1, 1)

    # (O, I, 3, 3) -> (9, I, O), tap index k = kh*3 + kw.
    wc = jnp.transpose(w3, (2, 3, 1, 0)).reshape(9, c8, c16)
    bc = b3[None, :]
    return dict(wcat=wcat, bcat=bcat, wx=wx1, bx=bx1, wc=wc, bc=bc)


def _conv_nchw(x, w, b, padding=0):
    out = jax.lax.conv_general_dilated(
        x, w, (1, 1), [(padding, padding), (padding, padding)],
        dimension_numbers=("NCHW", "OIHW", "NCHW"),
        precision=jax.lax.Precision.HIGHEST)
    return out + b[None, :, None, None]


def reference_forward(x, y, h, raw):
    w11, b11 = raw["conv1_1"]
    w12, b12 = raw["conv1_2"]
    wx, bx = raw["conv1x1_1"]
    w3, b3 = raw["conv3x3"]

    y0 = _conv_nchw(y, w12, b12)                 # equal-spatial-size branch
    x0 = _conv_nchw(x, w11, b11)
    x1 = jax.nn.sigmoid(_conv_nchw(x0, wx, bx))
    cat = jnp.concatenate([x0, y0], axis=1)
    out_c = _conv_nchw(cat, w3, b3, padding=1)
    out = out_c * x1
    front_ = out
    out = (out - out.min()) / (out.max() - out.min())
    front = out
    out1 = out + h                               # diff == 0 -> no padding
    later = out1
    out2 = out1 + out_c
    return jax.nn.relu(out2), front_, front, later


# ----------------------------------------------------------------------------
if __name__ == "__main__":
    key = jax.random.PRNGKey(0)
    N, inplanes, planes, H, W = 2, 64, 32, 16, 16
    c16 = inplanes // 16

    k_x, k_y, k_h, k_p = jax.random.split(key, 4)
    x = jax.random.normal(k_x, (N, inplanes, H, W), jnp.float32)
    y = jax.random.normal(k_y, (N, planes, H, W), jnp.float32)
    h = jax.random.normal(k_h, (N, c16, H, W), jnp.float32)

    raw = init_raw_params(k_p, inplanes, planes)
    params = prepare_kernel_params(raw, inplanes, planes)

    outs = sab_forward(x, y, h, params)
    outs = jax.block_until_ready(outs)

    refs = reference_forward(x, y, h, raw)
    for got, ref in zip(outs, refs):
        assert got.shape == ref.shape
        np.testing.assert_allclose(np.asarray(got), np.asarray(ref),
                                   rtol=2e-4, atol=2e-4)
    print("KERNEL_OK")
</pallas_src>

<mosaic_0001>
module attributes {stable_mosaic.version = 11 : i64} {
  func.func @_sab_conv_kernel(%arg0: i32, %arg1: memref<1x256x96xf32, #tpu.memory_space<vmem>>, %arg2: memref<96x8xf32, #tpu.memory_space<vmem>>, %arg3: memref<1x8xf32, #tpu.memory_space<vmem>>, %arg4: memref<8x1xf32, #tpu.memory_space<vmem>>, %arg5: memref<1x1xf32, #tpu.memory_space<vmem>>, %arg6: memref<9x8x4xf32, #tpu.memory_space<vmem>>, %arg7: memref<1x4xf32, #tpu.memory_space<vmem>>, %arg8: memref<1x256x4xf32, #tpu.memory_space<vmem>>, %arg9: memref<1x256x4xf32, #tpu.memory_space<vmem>>, %arg10: memref<304x8xf32, #tpu.memory_space<vmem>>) attributes {dimension_semantics = [#tpu.dimension_semantics<parallel>], iteration_bounds = array<i64: 2>, scalar_prefetch = 0 : i64, scratch_operands = 1 : i64, tpu.core_type = #tpu.core_type<tc>, window_params = [{transform_indices = @transform_0, window_bounds = array<i64: 1, 256, 96>}, {pipeline_mode = #tpu.pipeline_mode<synchronous>, transform_indices = @transform_1, window_bounds = array<i64: 96, 8>}, {pipeline_mode = #tpu.pipeline_mode<synchronous>, transform_indices = @transform_2, window_bounds = array<i64: 1, 8>}, {pipeline_mode = #tpu.pipeline_mode<synchronous>, transform_indices = @transform_3, window_bounds = array<i64: 8, 1>}, {pipeline_mode = #tpu.pipeline_mode<synchronous>, transform_indices = @transform_4, window_bounds = array<i64: 1, 1>}, {pipeline_mode = #tpu.pipeline_mode<synchronous>, transform_indices = @transform_5, window_bounds = array<i64: 9, 8, 4>}, {pipeline_mode = #tpu.pipeline_mode<synchronous>, transform_indices = @transform_6, window_bounds = array<i64: 1, 4>}, {transform_indices = @transform_7, window_bounds = array<i64: 1, 256, 4>}, {transform_indices = @transform_8, window_bounds = array<i64: 1, 256, 4>}]} {
    %c0 = arith.constant 0 : index
    %c0_0 = arith.constant 0 : index
    %c0_1 = arith.constant 0 : index
    %0 = vector.load %arg1[%c0, %c0_0, %c0_1] : memref<1x256x96xf32, #tpu.memory_space<vmem>>, vector<1x256x96xf32>
    %1 = vector.shape_cast %0 : vector<1x256x96xf32> to vector<256x96xf32>
    %c0_2 = arith.constant 0 : index
    %c0_3 = arith.constant 0 : index
    %2 = vector.load %arg2[%c0_2, %c0_3] : memref<96x8xf32, #tpu.memory_space<vmem>>, vector<96x8xf32>
    %cst = arith.constant dense<0.000000e+00> : vector<256x8xf32>
    %3 = tpu.matmul %1, %2, %cst {dimension_numbers = #tpu.dot_dimension_numbers<[1], [0], [0], [1], [0, 0, 1, 1], [], []>} : vector<256x96xf32>, vector<96x8xf32>, vector<256x8xf32> -> vector<256x8xf32>
    %c0_4 = arith.constant 0 : index
    %c0_5 = arith.constant 0 : index
    %4 = vector.load %arg3[%c0_4, %c0_5] : memref<1x8xf32, #tpu.memory_space<vmem>>, vector<1x8xf32>
    %5 = vector.broadcast %4 : vector<1x8xf32> to vector<256x8xf32>
    %6 = arith.addf %3, %5 : vector<256x8xf32>
    %c0_6 = arith.constant 0 : index
    %c0_7 = arith.constant 0 : index
    %7 = vector.load %arg4[%c0_6, %c0_7] : memref<8x1xf32, #tpu.memory_space<vmem>>, vector<8x1xf32>
    %cst_8 = arith.constant dense<0.000000e+00> : vector<256x1xf32>
    %8 = tpu.matmul %6, %7, %cst_8 {dimension_numbers = #tpu.dot_dimension_numbers<[1], [0], [0], [1], [0, 0, 1, 1], [], []>} : vector<256x8xf32>, vector<8x1xf32>, vector<256x1xf32> -> vector<256x1xf32>
    %c0_9 = arith.constant 0 : index
    %c0_10 = arith.constant 0 : index
    %9 = vector.load %arg5[%c0_9, %c0_10] : memref<1x1xf32, #tpu.memory_space<vmem>>, vector<1x1xf32>
    %10 = vector.broadcast %9 : vector<1x1xf32> to vector<256x1xf32>
    %11 = arith.addf %8, %10 : vector<256x1xf32>
    %cst_11 = arith.constant 0.000000e+00 : f32
    %12 = vector.broadcast %cst_11 : f32 to vector<256x1xf32>
    %13 = arith.subf %12, %11 : vector<256x1xf32>
    %14 = math.exp %13 : vector<256x1xf32>
    %cst_12 = arith.constant 1.000000e+00 : f32
    %15 = vector.broadcast %cst_12 : f32 to vector<256x1xf32>
    %16 = arith.addf %15, %14 : vector<256x1xf32>
    %cst_13 = arith.constant 1.000000e+00 : f32
    %17 = vector.broadcast %cst_13 : f32 to vector<256x1xf32>
    %18 = arith.divf %17, %16 : vector<256x1xf32>
    %cst_14 = arith.constant 0.000000e+00 : f32
    %19 = vector.broadcast %cst_14 : f32 to vector<24x8xf32>
    %c0_15 = arith.constant 0 : index
    %c0_16 = arith.constant 0 : index
    %20 = vector.load %arg10[%c0_15, %c0_16] : memref<304x8xf32, #tpu.memory_space<vmem>>, vector<24x8xf32>
    tpu.vector_store %arg10[%c0_15, %c0_16], %19 {strides = array<i32>} : memref<304x8xf32, #tpu.memory_space<vmem>>, vector<24x8xf32>,
    %cst_17 = arith.constant 0.000000e+00 : f32
    %21 = vector.broadcast %cst_17 : f32 to vector<24x8xf32>
    %c280 = arith.constant 280 : index
    %c0_18 = arith.constant 0 : index
    %22 = vector.load %arg10[%c280, %c0_18] : memref<304x8xf32, #tpu.memory_space<vmem>>, vector<24x8xf32>
    tpu.vector_store %arg10[%c280, %c0_18], %21 {strides = array<i32>} : memref<304x8xf32, #tpu.memory_space<vmem>>, vector<24x8xf32>,
    %c24 = arith.constant 24 : index
    %c0_19 = arith.constant 0 : index
    %23 = vector.load %arg10[%c24, %c0_19] : memref<304x8xf32, #tpu.memory_space<vmem>>, vector<256x8xf32>
    tpu.vector_store %arg10[%c24, %c0_19], %6 {strides = array<i32>} : memref<304x8xf32, #tpu.memory_space<vmem>>, vector<256x8xf32>,
    %24 = tpu.iota {dimensions = array<i32: 0>} : vector<256x1xi32>
    %c16_i32 = arith.constant 16 : i32
    %c0_i32 = arith.constant 0 : i32
    %25 = arith.cmpi eq, %c16_i32, %c0_i32 : i32
    %c1_i32 = arith.constant 1 : i32
    %26 = arith.select %25, %c1_i32, %c16_i32 : i32
    %27 = vector.broadcast %26 : i32 to vector<256x1xi32>
    %28 = arith.remsi %24, %27 : vector<256x1xi32>
    %c0_i32_20 = arith.constant 0 : i32
    %29 = vector.broadcast %c0_i32_20 : i32 to vector<256x1xi32>
    %30 = arith.cmpi ne, %28, %29 : vector<256x1xi32>
    %c0_i32_21 = arith.constant 0 : i32
    %31 = vector.broadcast %c0_i32_21 : i32 to vector<256x1xi32>
    %32 = arith.cmpi slt, %28, %31 : vector<256x1xi32>
    %c0_i32_22 = arith.constant 0 : i32
    %33 = arith.cmpi slt, %26, %c0_i32_22 : i32
    %34 = vector.broadcast %33 : i1 to vector<256x1xi1>
    %35 = vector.broadcast %34 : vector<256x1xi1> to vector<256x1xi1>
    %36 = arith.xori %32, %35 : vector<256x1xi1>
    %37 = arith.andi %36, %30 : vector<256x1xi1>
    %38 = vector.broadcast %26 : i32 to vector<256x1xi32>
    %39 = arith.addi %28, %38 : vector<256x1xi32>
    %40 = arith.select %37, %39, %28 : vector<256x1xi1>, vector<256x1xi32>
    %c1_i32_23 = arith.constant 1 : i32
    %41 = vector.broadcast %c1_i32_23 : i32 to vector<256x1xi32>
    %42 = arith.cmpi sge, %40, %41 : vector<256x1xi32>
    %c15_i32 = arith.constant 15 : i32
    %43 = vector.broadcast %c15_i32 : i32 to vector<256x1xi32>
    %44 = arith.cmpi slt, %40, %43 : vector<256x1xi32>
    %cst_24 = arith.constant 0.000000e+00 : f32
    %45 = vector.broadcast %cst_24 : f32 to vector<256x4xf32>
    %c7 = arith.constant 7 : index
    %c0_25 = arith.constant 0 : index
    %46 = vector.load %arg10[%c7, %c0_25] : memref<304x8xf32, #tpu.memory_space<vmem>>, vector<256x8xf32>
    %cst_26 = arith.constant 0.000000e+00 : f32
    %47 = vector.shape_cast %42 : vector<256x1xi1> to vector<256x1xi1>
    %48 = vector.broadcast %47 : vector<256x1xi1> to vector<256x8xi1>
    %49 = vector.broadcast %cst_26 : f32 to vector<256x8xf32>
    %50 = arith.select %48, %46, %49 : vector<256x8xi1>, vector<256x8xf32>
    %c0_27 = arith.constant 0 : index
    %c0_28 = arith.constant 0 : index
    %c0_29 = arith.constant 0 : index
    %51 = vector.load %arg6[%c0_27, %c0_28, %c0_29] : memref<9x8x4xf32, #tpu.memory_space<vmem>>, vector<1x8x4xf32>
    %52 = vector.shape_cast %51 : vector<1x8x4xf32> to vector<8x4xf32>
    %cst_30 = arith.constant dense<0.000000e+00> : vector<256x4xf32>
    %53 = tpu.matmul %50, %52, %cst_30 {dimension_numbers = #tpu.dot_dimension_numbers<[1], [0], [0], [1], [0, 0, 1, 1], [], []>} : vector<256x8xf32>, vector<8x4xf32>, vector<256x4xf32> -> vector<256x4xf32>
    %54 = arith.addf %45, %53 : vector<256x4xf32>
    %c8 = arith.constant 8 : index
    %c0_31 = arith.constant 0 : index
    %55 = vector.load %arg10[%c8, %c0_31] : memref<304x8xf32, #tpu.memory_space<vmem>>, vector<256x8xf32>
    %c1 = arith.constant 1 : index
    %c0_32 = arith.constant 0 : index
    %c0_33 = arith.constant 0 : index
    %56 = vector.load %arg6[%c1, %c0_32, %c0_33] : memref<9x8x4xf32, #tpu.memory_space<vmem>>, vector<1x8x4xf32>
    %57 = vector.shape_cast %56 : vector<1x8x4xf32> to vector<8x4xf32>
    %cst_34 = arith.constant dense<0.000000e+00> : vector<256x4xf32>
    %58 = tpu.matmul %55, %57, %cst_34 {dimension_numbers = #tpu.dot_dimension_numbers<[1], [0], [0], [1], [0, 0, 1, 1], [], []>} : vector<256x8xf32>, vector<8x4xf32>, vector<256x4xf32> -> vector<256x4xf32>
    %59 = arith.addf %54, %58 : vector<256x4xf32>
    %c9 = arith.constant 9 : index
    %c0_35 = arith.constant 0 : index
    %60 = vector.load %arg10[%c9, %c0_35] : memref<304x8xf32, #tpu.memory_space<vmem>>, vector<256x8xf32>
    %cst_36 = arith.constant 0.000000e+00 : f32
    %61 = vector.shape_cast %44 : vector<256x1xi1> to vector<256x1xi1>
    %62 = vector.broadcast %61 : vector<256x1xi1> to vector<256x8xi1>
    %63 = vector.broadcast %cst_36 : f32 to vector<256x8xf32>
    %64 = arith.select %62, %60, %63 : vector<256x8xi1>, vector<256x8xf32>
    %c2 = arith.constant 2 : index
    %c0_37 = arith.constant 0 : index
    %c0_38 = arith.constant 0 : index
    %65 = vector.load %arg6[%c2, %c0_37, %c0_38] : memref<9x8x4xf32, #tpu.memory_space<vmem>>, vector<1x8x4xf32>
    %66 = vector.shape_cast %65 : vector<1x8x4xf32> to vector<8x4xf32>
    %cst_39 = arith.constant dense<0.000000e+00> : vector<256x4xf32>
    %67 = tpu.matmul %64, %66, %cst_39 {dimension_numbers = #tpu.dot_dimension_numbers<[1], [0], [0], [1], [0, 0, 1, 1], [], []>} : vector<256x8xf32>, vector<8x4xf32>, vector<256x4xf32> -> vector<256x4xf32>
    %68 = arith.addf %59, %67 : vector<256x4xf32>
    %c23 = arith.constant 23 : index
    %c0_40 = arith.constant 0 : index
    %69 = vector.load %arg10[%c23, %c0_40] : memref<304x8xf32, #tpu.memory_space<vmem>>, vector<256x8xf32>
    %cst_41 = arith.constant 0.000000e+00 : f32
    %70 = vector.shape_cast %42 : vector<256x1xi1> to vector<256x1xi1>
    %71 = vector.broadcast %70 : vector<256x1xi1> to vector<256x8xi1>
    %72 = vector.broadcast %cst_41 : f32 to vector<256x8xf32>
    %73 = arith.select %71, %69, %72 : vector<256x8xi1>, vector<256x8xf32>
    %c3 = arith.constant 3 : index
    %c0_42 = arith.constant 0 : index
    %c0_43 = arith.constant 0 : index
    %74 = vector.load %arg6[%c3, %c0_42, %c0_43] : memref<9x8x4xf32, #tpu.memory_space<vmem>>, vector<1x8x4xf32>
    %75 = vector.shape_cast %74 : vector<1x8x4xf32> to vector<8x4xf32>
    %cst_44 = arith.constant dense<0.000000e+00> : vector<256x4xf32>
    %76 = tpu.matmul %73, %75, %cst_44 {dimension_numbers = #tpu.dot_dimension_numbers<[1], [0], [0], [1], [0, 0, 1, 1], [], []>} : vector<256x8xf32>, vector<8x4xf32>, vector<256x4xf32> -> vector<256x4xf32>
    %77 = arith.addf %68, %76 : vector<256x4xf32>
    %c24_45 = arith.constant 24 : index
    %c0_46 = arith.constant 0 : index
    %78 = vector.load %arg10[%c24_45, %c0_46] : memref<304x8xf32, #tpu.memory_space<vmem>>, vector<256x8xf32>
    %c4 = arith.constant 4 : index
    %c0_47 = arith.constant 0 : index
    %c0_48 = arith.constant 0 : index
    %79 = vector.load %arg6[%c4, %c0_47, %c0_48] : memref<9x8x4xf32, #tpu.memory_space<vmem>>, vector<1x8x4xf32>
    %80 = vector.shape_cast %79 : vector<1x8x4xf32> to vector<8x4xf32>
    %cst_49 = arith.constant dense<0.000000e+00> : vector<256x4xf32>
    %81 = tpu.matmul %78, %80, %cst_49 {dimension_numbers = #tpu.dot_dimension_numbers<[1], [0], [0], [1], [0, 0, 1, 1], [], []>} : vector<256x8xf32>, vector<8x4xf32>, vector<256x4xf32> -> vector<256x4xf32>
    %82 = arith.addf %77, %81 : vector<256x4xf32>
    %c25 = arith.constant 25 : index
    %c0_50 = arith.constant 0 : index
    %83 = vector.load %arg10[%c25, %c0_50] : memref<304x8xf32, #tpu.memory_space<vmem>>, vector<256x8xf32>
    %cst_51 = arith.constant 0.000000e+00 : f32
    %84 = vector.shape_cast %44 : vector<256x1xi1> to vector<256x1xi1>
    %85 = vector.broadcast %84 : vector<256x1xi1> to vector<256x8xi1>
    %86 = vector.broadcast %cst_51 : f32 to vector<256x8xf32>
    %87 = arith.select %85, %83, %86 : vector<256x8xi1>, vector<256x8xf32>
    %c5 = arith.constant 5 : index
    %c0_52 = arith.constant 0 : index
    %c0_53 = arith.constant 0 : index
    %88 = vector.load %arg6[%c5, %c0_52, %c0_53] : memref<9x8x4xf32, #tpu.memory_space<vmem>>, vector<1x8x4xf32>
    %89 = vector.shape_cast %88 : vector<1x8x4xf32> to vector<8x4xf32>
    %cst_54 = arith.constant dense<0.000000e+00> : vector<256x4xf32>
    %90 = tpu.matmul %87, %89, %cst_54 {dimension_numbers = #tpu.dot_dimension_numbers<[1], [0], [0], [1], [0, 0, 1, 1], [], []>} : vector<256x8xf32>, vector<8x4xf32>, vector<256x4xf32> -> vector<256x4xf32>
    %91 = arith.addf %82, %90 : vector<256x4xf32>
    %c39 = arith.constant 39 : index
    %c0_55 = arith.constant 0 : index
    %92 = vector.load %arg10[%c39, %c0_55] : memref<304x8xf32, #tpu.memory_space<vmem>>, vector<256x8xf32>
    %cst_56 = arith.constant 0.000000e+00 : f32
    %93 = vector.shape_cast %42 : vector<256x1xi1> to vector<256x1xi1>
    %94 = vector.broadcast %93 : vector<256x1xi1> to vector<256x8xi1>
    %95 = vector.broadcast %cst_56 : f32 to vector<256x8xf32>
    %96 = arith.select %94, %92, %95 : vector<256x8xi1>, vector<256x8xf32>
    %c6 = arith.constant 6 : index
    %c0_57 = arith.constant 0 : index
    %c0_58 = arith.constant 0 : index
    %97 = vector.load %arg6[%c6, %c0_57, %c0_58] : memref<9x8x4xf32, #tpu.memory_space<vmem>>, vector<1x8x4xf32>
    %98 = vector.shape_cast %97 : vector<1x8x4xf32> to vector<8x4xf32>
    %cst_59 = arith.constant dense<0.000000e+00> : vector<256x4xf32>
    %99 = tpu.matmul %96, %98, %cst_59 {dimension_numbers = #tpu.dot_dimension_numbers<[1], [0], [0], [1], [0, 0, 1, 1], [], []>} : vector<256x8xf32>, vector<8x4xf32>, vector<256x4xf32> -> vector<256x4xf32>
    %100 = arith.addf %91, %99 : vector<256x4xf32>
    %c40 = arith.constant 40 : index
    %c0_60 = arith.constant 0 : index
    %101 = vector.load %arg10[%c40, %c0_60] : memref<304x8xf32, #tpu.memory_space<vmem>>, vector<256x8xf32>
    %c7_61 = arith.constant 7 : index
    %c0_62 = arith.constant 0 : index
    %c0_63 = arith.constant 0 : index
    %102 = vector.load %arg6[%c7_61, %c0_62, %c0_63] : memref<9x8x4xf32, #tpu.memory_space<vmem>>, vector<1x8x4xf32>
    %103 = vector.shape_cast %102 : vector<1x8x4xf32> to vector<8x4xf32>
    %cst_64 = arith.constant dense<0.000000e+00> : vector<256x4xf32>
    %104 = tpu.matmul %101, %103, %cst_64 {dimension_numbers = #tpu.dot_dimension_numbers<[1], [0], [0], [1], [0, 0, 1, 1], [], []>} : vector<256x8xf32>, vector<8x4xf32>, vector<256x4xf32> -> vector<256x4xf32>
    %105 = arith.addf %100, %104 : vector<256x4xf32>
    %c41 = arith.constant 41 : index
    %c0_65 = arith.constant 0 : index
    %106 = vector.load %arg10[%c41, %c0_65] : memref<304x8xf32, #tpu.memory_space<vmem>>, vector<256x8xf32>
    %cst_66 = arith.constant 0.000000e+00 : f32
    %107 = vector.shape_cast %44 : vector<256x1xi1> to vector<256x1xi1>
    %108 = vector.broadcast %107 : vector<256x1xi1> to vector<256x8xi1>
    %109 = vector.broadcast %cst_66 : f32 to vector<256x8xf32>
    %110 = arith.select %108, %106, %109 : vector<256x8xi1>, vector<256x8xf32>
    %c8_67 = arith.constant 8 : index
    %c0_68 = arith.constant 0 : index
    %c0_69 = arith.constant 0 : index
    %111 = vector.load %arg6[%c8_67, %c0_68, %c0_69] : memref<9x8x4xf32, #tpu.memory_space<vmem>>, vector<1x8x4xf32>
    %112 = vector.shape_cast %111 : vector<1x8x4xf32> to vector<8x4xf32>
    %cst_70 = arith.constant dense<0.000000e+00> : vector<256x4xf32>
    %113 = tpu.matmul %110, %112, %cst_70 {dimension_numbers = #tpu.dot_dimension_numbers<[1], [0], [0], [1], [0, 0, 1, 1], [], []>} : vector<256x8xf32>, vector<8x4xf32>, vector<256x4xf32> -> vector<256x4xf32>
    %114 = arith.addf %105, %113 : vector<256x4xf32>
    %c0_71 = arith.constant 0 : index
    %c0_72 = arith.constant 0 : index
    %115 = vector.load %arg7[%c0_71, %c0_72] : memref<1x4xf32, #tpu.memory_space<vmem>>, vector<1x4xf32>
    %116 = vector.broadcast %115 : vector<1x4xf32> to vector<256x4xf32>
    %117 = arith.addf %114, %116 : vector<256x4xf32>
    %118 = vector.broadcast %18 : vector<256x1xf32> to vector<256x4xf32>
    %119 = arith.mulf %117, %118 : vector<256x4xf32>
    %c0_73 = arith.constant 0 : index
    %c0_74 = arith.constant 0 : index
    %c0_75 = arith.constant 0 : index
    %120 = vector.load %arg8[%c0_73, %c0_74, %c0_75] : memref<1x256x4xf32, #tpu.memory_space<vmem>>, vector<1x256x4xf32>
    %121 = vector.shape_cast %120 : vector<1x256x4xf32> to vector<256x4xf32>
    %122 = vector.shape_cast %119 : vector<256x4xf32> to vector<1x256x4xf32>
    tpu.vector_store %arg8[%c0_73, %c0_74, %c0_75], %122 {strides = array<i32>} : memref<1x256x4xf32, #tpu.memory_space<vmem>>, vector<1x256x4xf32>,
    %c0_76 = arith.constant 0 : index
    %c0_77 = arith.constant 0 : index
    %c0_78 = arith.constant 0 : index
    %123 = vector.load %arg9[%c0_76, %c0_77, %c0_78] : memref<1x256x4xf32, #tpu.memory_space<vmem>>, vector<1x256x4xf32>
    %124 = vector.shape_cast %123 : vector<1x256x4xf32> to vector<256x4xf32>
    %125 = vector.shape_cast %117 : vector<256x4xf32> to vector<1x256x4xf32>
    tpu.vector_store %arg9[%c0_76, %c0_77, %c0_78], %125 {strides = array<i32>} : memref<1x256x4xf32, #tpu.memory_space<vmem>>, vector<1x256x4xf32>,
    return
  }
  func.func @transform_0(%arg0: i32) -> (i32, i32, i32) {
    %c0_i32 = arith.constant 0 : i32
    %c0_i32_0 = arith.constant 0 : i32
    %c0_i32_1 = arith.constant 0 : i32
    return %arg0, %c0_i32, %c0_i32_0 : i32, i32, i32
  }
  func.func @transform_1(%arg0: i32) -> (i32, i32) {
    %c0_i32 = arith.constant 0 : i32
    %c0_i32_0 = arith.constant 0 : i32
    %c0_i32_1 = arith.constant 0 : i32
    return %c0_i32, %c0_i32_0 : i32, i32
  }
  func.func @transform_2(%arg0: i32) -> (i32, i32) {
    %c0_i32 = arith.constant 0 : i32
    %c0_i32_0 = arith.constant 0 : i32
    %c0_i32_1 = arith.constant 0 : i32
    return %c0_i32, %c0_i32_0 : i32, i32
  }
  func.func @transform_3(%arg0: i32) -> (i32, i32) {
    %c0_i32 = arith.constant 0 : i32
    %c0_i32_0 = arith.constant 0 : i32
    %c0_i32_1 = arith.constant 0 : i32
    return %c0_i32, %c0_i32_0 : i32, i32
  }
  func.func @transform_4(%arg0: i32) -> (i32, i32) {
    %c0_i32 = arith.constant 0 : i32
    %c0_i32_0 = arith.constant 0 : i32
    %c0_i32_1 = arith.constant 0 : i32
    return %c0_i32, %c0_i32_0 : i32, i32
  }
  func.func @transform_5(%arg0: i32) -> (i32, i32, i32) {
    %c0_i32 = arith.constant 0 : i32
    %c0_i32_0 = arith.constant 0 : i32
    %c0_i32_1 = arith.constant 0 : i32
    %c0_i32_2 = arith.constant 0 : i32
    return %c0_i32, %c0_i32_0, %c0_i32_1 : i32, i32, i32
  }
  func.func @transform_6(%arg0: i32) -> (i32, i32) {
    %c0_i32 = arith.constant 0 : i32
    %c0_i32_0 = arith.constant 0 : i32
    %c0_i32_1 = arith.constant 0 : i32
    return %c0_i32, %c0_i32_0 : i32, i32
  }
  func.func @transform_7(%arg0: i32) -> (i32, i32, i32) {
    %c0_i32 = arith.constant 0 : i32
    %c0_i32_0 = arith.constant 0 : i32
    %c0_i32_1 = arith.constant 0 : i32
    return %arg0, %c0_i32, %c0_i32_0 : i32, i32, i32
  }
  func.func @transform_8(%arg0: i32) -> (i32, i32, i32) {
    %c0_i32 = arith.constant 0 : i32
    %c0_i32_0 = arith.constant 0 : i32
    %c0_i32_1 = arith.constant 0 : i32
    return %arg0, %c0_i32, %c0_i32_0 : i32, i32, i32
  }
}

</mosaic_0001>

<bundles_post_ra>
// kernel: tpu_custom_call.1
= control target key start
LH: loop header
LB: loop body
LE: loop exit
PB: predicated region body
PF: predicated region fallthrough
CT: control target
= control target key end

     0   :  { %s7663_s29 = smov 0   ;;  %s9186_s0 = inlined_call_operand.vmem [shape: f32[2,256,96], index: 0, kind: input, shape index: {}]   ;;  %s9187_s1 = inlined_call_operand.vmem [shape: f32[96,8], index: 1, kind: input, shape index: {}]   ;;  %s9188_s2 = inlined_call_operand.vmem [shape: f32[1,8], index: 2, kind: input, shape index: {}]   ;;  %s9189_s3 = inlined_call_operand.vmem [shape: f32[8,1], index: 3, kind: input, shape index: {}]   ;;  %s9190_s4 = inlined_call_operand.<no memory space> [shape: f32[1,1], index: 4, kind: input, shape index: {}]   ;;  %s9191_s5 = inlined_call_operand.vmem [shape: f32[9,8,4], index: 5, kind: input, shape index: {}]   ;;  %s9192_s6 = inlined_call_operand.vmem [shape: f32[1,4], index: 6, kind: input, shape index: {}]   ;;  %s9193_s7 = inlined_call_operand.vmem [shape: f32[2,256,4], index: 7, kind: output, shape index: {0}]   ;;  %s9194_s8 = inlined_call_operand.vmem [shape: f32[2,256,4], index: 8, kind: output, shape index: {1}]  }
   0x1   :  { %v14_v0 = vstv %s9190_s4 }
   0x2   :  { %15 = vst [vmem:[#allocation3] sm:$0x1] %v14_v0 }
   0x3 LB: > { %s5857_s30 = sadd.s32 4294967295, %s7611_s29   ;;  %p5861_p0 = scmp.ge.s32.totalorder %s7611_s29, 1  ;;  %s7611_s29 = sphi %s7663_s29, %s21_s29  }
   0x4   : > { %p267_p1 = scmp.lt.s32.totalorder %s7611_s29, 3 }
   0x6   : > { %p268_p2 = pnand %p5861_p0, %p267_p1 }
   0x8   : > { %271 = sbr.rel (%p268_p2) target bundleno = 868 (0x364), region = 48 }
   0xf   : > { %v353_v1 = vld [vmem:[%s9187_s1] sm:$0xff]  ;;  %v354_v2 = vld [vmem:[%s9187_s1 + $0x8] sm:$0xff]  ;;  %v355_v3 = vld [vmem:[%s9187_s1 + $0x10] sm:$0xff]  ;;  %p306_p3 = scmp.lt.s32.totalorder %s5857_s30, 1  ;;  %vm372_vm0 = vcmask 785408   ;;  %vm702_vm1 = vcmask 64512   ;;  %v1254_v61 = vlaneseq }
  0x10   : > { %v7182_v4 = vpack.c.bf16 %v354_v2, %v353_v1  ;;  %v356_v5 = vld [vmem:[%s9187_s1 + $0x18] sm:$0xff]  ;;  %v357_v7 = vld [vmem:[%s9187_s1 + $0x20] sm:$0xff]  ;;  %v358_v8 = vld [vmem:[%s9187_s1 + $0x28] sm:$0xff]  ;;  %v7613_v52 = vmov 0.0  }
  0x11   : > { %v7186_v6 = vpack.c.bf16 %v356_v5, %v355_v3  ;;  %s9368_s30 = smov (!%p306_p3, %s5857_s30), 1  ;;  %v7190_v9 = vpack.c.bf16 %v358_v8, %v357_v7  ;;  %v359_v10 = vld [vmem:[%s9187_s1 + $0x30] sm:$0xff]  ;;  %v360_v11 = vld [vmem:[%s9187_s1 + $0x38] sm:$0xff]  ;;  %v361_v14 = vld [vmem:[%s9187_s1 + $0x40] sm:$0xff]  ;;  %1217 = vst.msk [vmem:[#allocation2 + $0x8] sm:$0xff] %vm702_vm1, %v7613_v52  ;;  %v7823_v3 = vshrl.u32 %v1254_v61, 7 }
  0x12   : > { %7183 = vmatprep.subr.bf16.mxu0 %v7182_v4  ;;  %s7689_s20 = sshll.u32 %s9368_s30, 8  ;;  %v7194_v13 = vpack.c.bf16 %v360_v11, %v359_v10  ;;  %v362_v15 = vld [vmem:[%s9187_s1 + $0x48] sm:$0xff]  ;;  %v363_v17 = vld [vmem:[%s9187_s1 + $0x50] sm:$0xff]  ;;  %v364_v18 = vld [vmem:[%s9187_s1 + $0x58] sm:$0xff]  ;;  %1216 = vst.msk [vmem:[#allocation2] sm:$0xff] %vm702_vm1, %v7613_v52 }
  0x13   : > { %7185 = vmatpush3.bf16.msra.mxu0 %v7182_v4  ;;  %s7695_s23 = scalar_lea.vmem %s9186_s0, %s7689_s20  ;;  %v7198_v16 = vpack.c.bf16 %v362_v15, %v361_v14  ;;  %v7202_v19 = vpack.c.bf16 %v364_v18, %v363_v17  ;;  %v694_v51 = vld [vmem:[%s9189_s3] sm:$0xff]  ;;  %1218 = vst.msk [vmem:[#allocation2 + $0x10] sm:$0xff] %vm702_vm1, %v7613_v52  ;;  %1219 = vst.msk [vmem:[#allocation2 + $0x118] sm:$0xff] %vm702_vm1, %v7613_v52  ;;  %v7791_v53 = vld [vmem:[%s9191_s5 + $0x18] sm:$0xff]  ;;  %v1291_v8 = vand.u32 15, %v7823_v3  ;;  %v9239_v14 = vmov 0  ;;  %s8977_s22 = scalar_lea.vmem %s9194_s8, %s7689_s20 }
  0x14   : > { %7187 = vmatprep.subr.bf16.mxu0 %v7186_v6  ;;  %v321_v12 = vld [vmem:[%s7695_s23] sm:$0xff]  ;;  %v322_v20 = vld [vmem:[%s7695_s23 + $0x8] sm:$0xff]  ;;  %v323_v21 = vld [vmem:[%s7695_s23 + $0x10] sm:$0xff]  ;;  %1220 = vst.msk [vmem:[#allocation2 + $0x120] sm:$0xff] %vm702_vm1, %v7613_v52  ;;  %7206 = vmatprep.subr.mxu1 %v7791_v53  ;;  %s8986_s25 = scalar_lea.vmem %s9193_s7, %s7689_s20 }
  0x15   : > { %6634 = vmatprep.mubr.msk.f32.mxu0 %vm372_vm0, %v321_v12  ;;  %v324_v22 = vld [vmem:[%s7695_s23 + $0x18] sm:$0xff]  ;;  %v325_v23 = vld [vmem:[%s7695_s23 + $0x20] sm:$0xff]  ;;  %v326_v24 = vld [vmem:[%s7695_s23 + $0x28] sm:$0xff]  ;;  %1221 = vst.msk [vmem:[#allocation2 + $0x128] sm:$0xff] %vm702_vm1, %v7613_v52  ;;  %7207 = vmatpush3.msra.mxu1 %v7791_v53  ;;  %vm7840_vm2 = vcmp.ge.s32.totalorder %v1291_v8, 1 }
  0x16   : > { %v327_v25 = vld [vmem:[%s7695_s23 + $0x30] sm:$0xff]  ;;  %v328_v26 = vld [vmem:[%s7695_s23 + $0x38] sm:$0xff]  ;;  %v329_v27 = vld [vmem:[%s7695_s23 + $0x40] sm:$0xff]  ;;  %v9240_v14 = vsel %vm7840_vm2, 4294967295, %v9239_v14 }
  0x17   : > { %7189 = vmatpush3.bf16.msra.mxu0 %v7186_v6  ;;  %v330_v28 = vld [vmem:[%s7695_s23 + $0x48] sm:$0xff]  ;;  %v331_v29 = vld [vmem:[%s7695_s23 + $0x50] sm:$0xff]  ;;  %v332_v30 = vld [vmem:[%s7695_s23 + $0x58] sm:$0xff] }
  0x18   : > { %7191 = vmatprep.subr.bf16.mxu0 %v7190_v9  ;;  %v333_v31 = vld [vmem:[%s7695_s23 + $0x60] sm:$0xff]  ;;  %v334_v32 = vld [vmem:[%s7695_s23 + $0x68] sm:$0xff]  ;;  %v335_v33 = vld [vmem:[%s7695_s23 + $0x70] sm:$0xff] }
  0x19   : > { %v336_v34 = vld [vmem:[%s7695_s23 + $0x78] sm:$0xff]  ;;  %v337_v35 = vld [vmem:[%s7695_s23 + $0x80] sm:$0xff]  ;;  %v338_v36 = vld [vmem:[%s7695_s23 + $0x88] sm:$0xff] }
  0x1a   : > { %v339_v37 = vld [vmem:[%s7695_s23 + $0x90] sm:$0xff]  ;;  %v340_v38 = vld [vmem:[%s7695_s23 + $0x98] sm:$0xff]  ;;  %v341_v39 = vld [vmem:[%s7695_s23 + $0xa0] sm:$0xff] }
  0x1b   : > { %7193 = vmatpush3.bf16.msra.mxu0 %v7190_v9  ;;  %v342_v40 = vld [vmem:[%s7695_s23 + $0xa8] sm:$0xff]  ;;  %v343_v41 = vld [vmem:[%s7695_s23 + $0xb0] sm:$0xff]  ;;  %v344_v42 = vld [vmem:[%s7695_s23 + $0xb8] sm:$0xff]  ;;  %v1257_v9 = vadd.s32 16, %v7823_v3 }
  0x1c   : > { %7195 = vmatprep.subr.bf16.mxu0 %v7194_v13  ;;  %v345_v43 = vld [vmem:[%s7695_s23 + $0xc0] sm:$0xff]  ;;  %v346_v44 = vld [vmem:[%s7695_s23 + $0xc8] sm:$0xff]  ;;  %v347_v45 = vld [vmem:[%s7695_s23 + $0xd0] sm:$0xff] }
  0x1d   : > { %v348_v46 = vld [vmem:[%s7695_s23 + $0xd8] sm:$0xff]  ;;  %v349_v47 = vld [vmem:[%s7695_s23 + $0xe0] sm:$0xff]  ;;  %v350_v48 = vld [vmem:[%s7695_s23 + $0xe8] sm:$0xff]  ;;  %v1305_v15 = vand.u32 15, %v1257_v9 }
  0x1e   : > { %v351_v49 = vld [vmem:[%s7695_s23 + $0xf0] sm:$0xff]  ;;  %v352_v50 = vld [vmem:[%s7695_s23 + $0xf8] sm:$0xff]  ;;  %v7798_v54 = vld [vmem:[%s9191_s5 + $0x20] sm:$0xff] }
  0x1f   : > { %7197 = vmatpush3.bf16.msra.mxu0 %v7194_v13  ;;  %6932 = vmatprep.subr.mxu1 %v7798_v54  ;;  %v5934_v55 = vld [vmem:[%s9191_s5 + $0x8] sm:$0xff]  ;;  %v7807_v56 = vld [vmem:[%s9188_s2] ss:$0 sm:$0xff]  ;;  %vm7856_vm3 = vcmp.ge.s32.totalorder %v1305_v15, 1 }
  0x20   : > { %7199 = vmatprep.subr.bf16.mxu0 %v7198_v16  ;;  %v7817_v63 = vld [vmem:[%s9191_s5] sm:$0xff] }
  0x23   : > { %7201 = vmatpush3.bf16.msra.mxu0 %v7198_v16  ;;  %v1259_v16 = vadd.s32 32, %v7823_v3 }
  0x24   : > { %7203 = vmatprep.subr.bf16.mxu0 %v7202_v19 }
  0x27   : > { %7205 = vmatpush3.bf16.msra.mxu0 %v7202_v19 }
  0x28   : > { %6682 = vmatprep.subr.mxu0 %v694_v51 }
  0x2a   : > { %6635 = vmatmul.mubr.msk.f32.vlgmr.msra.gmra.mrb[0].mxu0 %vm372_vm0, %v322_v20 }
  0x2b   : > { %6637 = vmatprep.mubr.msk.f32.mxu0 %vm372_vm0, %v323_v21  ;;  %6683 = vmatpush3.msra.mxu0 %v694_v51  ;;  %v9247_v51 = vmov 0 }
  0x2c   : > { %6732 = vmatprep.subr.mxu0 %v5934_v55 }
  0x2e   : > { %6638 = vmatmul.mubr.msk.f32.gmra.mrb[2].mxu0 %vm372_vm0, %v324_v22 }
  0x2f   : > { %6640 = vmatprep.mubr.msk.f32.mxu0 %vm372_vm0, %v325_v23  ;;  %v9241_v23 = vmov 0 }
  0x30   : > { %v9242_v23 = vsel %vm7856_vm3, 4294967295, %v9241_v23 }
  0x32   : > { %6641 = vmatmul.mubr.msk.f32.gmra.mrb[4].mxu0 %vm372_vm0, %v326_v24  ;;  %v1319_v24 = vand.u32 15, %v1259_v16  ;;  %v9256_v16 = vmov 0 }
  0x33   : > { %6643 = vmatprep.mubr.msk.f32.mxu0 %vm372_vm0, %v327_v25  ;;  %v1261_v25 = vadd.s32 48, %v7823_v3 }
  0x34   : > { %vm7874_vm4 = vcmp.ge.s32.totalorder %v1319_v24, 1 }
  0x36   : > { %6644 = vmatmul.mubr.msk.f32.gmra.mrb[6].mxu0 %vm372_vm0, %v328_v26 }
  0x37   : > { %6646 = vmatprep.mubr.msk.f32.mxu0 %vm372_vm0, %v329_v27 }
  0x3a   : > { %6647 = vmatmul.mubr.msk.f32.gmra.mrb[8].mxu0 %vm372_vm0, %v330_v28  ;;  %v1256_v28 = vadd.s32 8, %v7823_v3 }
  0x3b   : > { %6649 = vmatprep.mubr.msk.f32.mxu0 %vm372_vm0, %v331_v29 }
  0x3e   : > { %6650 = vmatmul.mubr.msk.f32.gmra.mrb[10].mxu0 %vm372_vm0, %v332_v30 }
  0x3f   : > { %6652 = vmatprep.mubr.msk.f32.mxu0 %vm372_vm0, %v333_v31  ;;  %v1267_v31 = vadd.s32 96, %v7823_v3 }
  0x42   : > { %6653 = vmatmul.mubr.msk.f32.gmra.mrb[12].mxu0 %vm372_vm0, %v334_v32 }
  0x43   : > { %6655 = vmatprep.mubr.msk.f32.mxu0 %vm372_vm0, %v335_v33  ;;  %v1265_v33 = vadd.s32 80, %v7823_v3 }
  0x46   : > { %6656 = vmatmul.mubr.msk.f32.gmra.mrb[14].mxu0 %vm372_vm0, %v336_v34  ;;  %v9243_v34 = vmov 0 }
  0x47   : > { %6658 = vmatprep.mubr.msk.f32.mxu0 %vm372_vm0, %v337_v35  ;;  %v9244_v34 = vsel %vm7874_vm4, 4294967295, %v9243_v34  ;;  %v1333_v35 = vand.u32 15, %v1261_v25 }
  0x49   : > { %vm7890_vm5 = vcmp.ge.s32.totalorder %v1333_v35, 1  ;;  %v1277_v35 = vadd.s32 176, %v7823_v3 }
  0x4a   : > { %6659 = vmatmul.mubr.msk.f32.gmra.mrb[16].mxu0 %vm372_vm0, %v338_v36 }
  0x4b   : > { %6661 = vmatprep.mubr.msk.f32.mxu0 %vm372_vm0, %v339_v37 }
  0x4e   : > { %6662 = vmatmul.mubr.msk.f32.gmra.mrb[18].mxu0 %vm372_vm0, %v340_v38 }
  0x4f   : > { %6664 = vmatprep.mubr.msk.f32.mxu0 %vm372_vm0, %v341_v39 }
  0x52   : > { %6665 = vmatmul.mubr.msk.f32.gmra.mrb[20].mxu0 %vm372_vm0, %v342_v40 }
  0x53   : > { %6667 = vmatprep.mubr.msk.f32.mxu0 %vm372_vm0, %v343_v41  ;;  %v1375_v41 = vand.u32 15, %v1267_v31 }
  0x55   : > { %vm7903_vm6 = vcmp.ge.s32.totalorder %v1375_v41, 1 }
  0x56   : > { %6668 = vmatmul.mubr.msk.f32.gmra.mrb[22].mxu0 %vm372_vm0, %v344_v42  ;;  %v1269_v42 = vadd.s32 112, %v7823_v3  ;;  %v9248_v51 = vsel %vm7903_vm6, 4294967295, %v9247_v51 }
  0x57   : > { %6670 = vmatprep.mubr.msk.f32.mxu0 %vm372_vm0, %v345_v43  ;;  %9249 = vst [vmem:[#allocation4_spill] sm:$0xff] %v9248_v51  ;;  %v1268_v51 = vadd.s32 104, %v7823_v3 }
  0x58   : > { %v1389_v52 = vand.u32 15, %v1269_v42 }
  0x5a   : > { %6671 = vmatmul.mubr.msk.f32.gmra.mrb[24].mxu0 %vm372_vm0, %v346_v44  ;;  %v1361_v44 = vand.u32 15, %v1265_v33  ;;  %vm7929_vm8 = vcmp.ge.s32.totalorder %v1389_v52, 1  ;;  %v1279_v52 = vadd.s32 192, %v7823_v3 }
  0x5b   : > { %6673 = vmatprep.mubr.msk.f32.mxu0 %vm372_vm0, %v347_v45  ;;  %v9245_v45 = vmov 0 }
  0x5c   : > { %v9246_v45 = vsel %vm7890_vm5, 4294967295, %v9245_v45  ;;  %vm7910_vm7 = vcmp.ge.s32.totalorder %v1361_v44, 1 }
  0x5e   : > { %6674 = vmatmul.mubr.msk.f32.gmra.mrb[26].mxu0 %vm372_vm0, %v348_v46 }
  0x5f   : > { %6676 = vmatprep.mubr.msk.f32.mxu0 %vm372_vm0, %v349_v47 }
  0x62   : > { %6677 = vmatmul.mubr.msk.f32.gmra.mrb[28].mxu0 %vm372_vm0, %v350_v48 }
  0x63   : > { %6679 = vmatprep.mubr.msk.f32.mxu0 %vm372_vm0, %v351_v49 }
  0x66   : > { %6680 = vmatmul.mubr.msk.f32.gmra.mrb[30].mxu0 %vm372_vm0, %v352_v50 }
  0xfd   : > { %v6636_v57 = vpop.f32.mrb[0].mxu0 }
  0xfe   : > { %v541_v58 = vadd.f32 %v6636_v57, %v7807_v56  ;;  %v535_v59 = vpop.f32.mrb[1].mxu0 }
  0xff   : > { %v536_v60 = vadd.f32 %v7807_v56, %v535_v59 }
 0x100   : > { %1223 = vst.msk [vmem:[#allocation2 + $0x20] sm:$0xff] %vm702_vm1, %v541_v58 }
 0x101   : > { %1222 = vst.msk [vmem:[#allocation2 + $0x18] sm:$0xff] %vm702_vm1, %v536_v60  ;;  %v6639_v62 = vpop.f32.mrb[2].mxu0  ;;  %6684 = vmatprep.mubr.msk.f32.mxu0 %vm702_vm1, %v536_v60 }
 0x102   : > { %v551_v0 = vadd.f32 %v6639_v62, %v7807_v56  ;;  %v545_v1 = vpop.f32.mrb[3].mxu0  ;;  %6685 = vmatmul.mubr.msk.f32.vlgmr.msra.gmra.mrb[32].mxu0 %vm702_vm1, %v541_v58  ;;  %v9250_v58 = vmov 0  ;;  %v1266_v62 = vadd.s32 88, %v7823_v3 }
 0x103   : > { %v546_v2 = vadd.f32 %v7807_v56, %v545_v1  ;;  %6733 = vmatpush3.msra.mxu0 %v5934_v55  ;;  %v1271_v55 = vadd.s32 128, %v7823_v3  ;;  %v9251_v58 = vsel %vm7910_vm7, 4294967295, %v9250_v58 }
 0x104   : > { %1225 = vst.msk [vmem:[#allocation2 + $0x30] sm:$0xff] %vm702_vm1, %v551_v0  ;;  %6782 = vmatprep.subr.mxu0 %v7817_v63  ;;  %9252 = vst [vmem:[#allocation5_spill] sm:$0xff] %v9251_v58  ;;  %v9292_v58 = vmov 0 }
 0x105   : > { %1224 = vst.msk [vmem:[#allocation2 + $0x28] sm:$0xff] %vm702_vm1, %v546_v2  ;;  %v6642_v4 = vpop.f32.mrb[4].mxu0  ;;  %6687 = vmatprep.mubr.msk.f32.mxu0 %vm702_vm1, %v546_v2 }
 0x106   : > { %v561_v5 = vadd.f32 %v6642_v4, %v7807_v56  ;;  %v555_v6 = vpop.f32.mrb[5].mxu0  ;;  %6688 = vmatmul.mubr.msk.f32.gmra.mrb[34].mxu0 %vm702_vm1, %v551_v0  ;;  %v9253_v4 = vmov 0 }
 0x107   : > { %v556_v7 = vadd.f32 %v7807_v56, %v555_v6  ;;  %v9254_v4 = vsel %vm7929_vm8, 4294967295, %v9253_v4  ;;  %v1273_v6 = vadd.s32 144, %v7823_v3 }
 0x108   : > { %1227 = vst.msk [vmem:[#allocation2 + $0x40] sm:$0xff] %vm702_vm1, %v561_v5  ;;  %9255 = vst [vmem:[#allocation6_spill] sm:$0xff] %v9254_v4  ;;  %v1270_v4 = vadd.s32 120, %v7823_v3 }
 0x109   : > { %1226 = vst.msk [vmem:[#allocation2 + $0x38] sm:$0xff] %vm702_vm1, %v556_v7  ;;  %v6645_v10 = vpop.f32.mrb[6].mxu0  ;;  %6690 = vmatprep.mubr.msk.f32.mxu0 %vm702_vm1, %v556_v7  ;;  %v7937_v7 = vld [vmem:[%s9191_s5 + $0x28] sm:$0xff] }
 0x10a   : > { %v571_v11 = vadd.f32 %v6645_v10, %v7807_v56  ;;  %v565_v12 = vpop.f32.mrb[7].mxu0  ;;  %6691 = vmatmul.mubr.msk.f32.gmra.mrb[36].mxu0 %vm702_vm1, %v561_v5  ;;  %v1403_v5 = vand.u32 15, %v1271_v55 }
 0x10b   : > { %v566_v13 = vadd.f32 %v7807_v56, %v565_v12  ;;  %v1869_v48 = vld [vmem:[#allocation2 + $0x30] sm:$0xff] }
 0x10c   : > { %1229 = vst.msk [vmem:[#allocation2 + $0x50] sm:$0xff] %vm702_vm1, %v571_v11  ;;  %v7845_v17 = vld [vmem:[#allocation2 + $0x27] sm:$0xff]  ;;  %vm7960_vm9 = vcmp.ge.s32.totalorder %v1403_v5, 1 }
 0x10d   : > { %1228 = vst.msk [vmem:[#allocation2 + $0x48] sm:$0xff] %vm702_vm1, %v566_v13  ;;  %v6648_v18 = vpop.f32.mrb[8].mxu0  ;;  %6693 = vmatprep.mubr.msk.f32.mxu0 %vm702_vm1, %v566_v13  ;;  %v9257_v16 = vsel %vm7960_vm9, 4294967295, %v9256_v16 }
 0x10e   : > { %v581_v20 = vadd.f32 %v6648_v18, %v7807_v56  ;;  %v575_v21 = vpop.f32.mrb[9].mxu0  ;;  %6694 = vmatmul.mubr.msk.f32.gmra.mrb[38].mxu0 %vm702_vm1, %v571_v11  ;;  %9258 = vst [vmem:[#allocation7_spill] sm:$0xff] %v9257_v16  ;;  %v1417_v18 = vand.u32 15, %v1273_v6  ;;  %v1272_v16 = vadd.s32 136, %v7823_v3 }
 0x10f   : > { %v576_v22 = vadd.f32 %v7807_v56, %v575_v21 }
 0x110   : > { %1231 = vst.msk [vmem:[#allocation2 + $0x60] sm:$0xff] %vm702_vm1, %v581_v20  ;;  %v7861_v26 = vld [vmem:[#allocation2 + $0x37] sm:$0xff]  ;;  %vm7984_vm10 = vcmp.ge.s32.totalorder %v1417_v18, 1 }
 0x111   : > { %1230 = vst.msk [vmem:[#allocation2 + $0x58] sm:$0xff] %vm702_vm1, %v576_v22  ;;  %v6651_v27 = vpop.f32.mrb[10].mxu0  ;;  %6696 = vmatprep.mubr.msk.f32.mxu0 %vm702_vm1, %v576_v22  ;;  %v8278_v19 = vld [vmem:[#allocation2 + $0x31] sm:$0xff] }
 0x112   : > { %v591_v29 = vadd.f32 %v6651_v27, %v7807_v56  ;;  %v585_v30 = vpop.f32.mrb[11].mxu0  ;;  %6697 = vmatmul.mubr.msk.f32.gmra.mrb[40].mxu0 %vm702_vm1, %v581_v20  ;;  %v1275_v20 = vadd.s32 160, %v7823_v3  ;;  %v9289_v27 = vmov 0 }
 0x113   : > { %v586_v32 = vadd.f32 %v7807_v56, %v585_v30 }
 0x114   : > { %1233 = vst.msk [vmem:[#allocation2 + $0x70] sm:$0xff] %vm702_vm1, %v591_v29  ;;  %v7878_v36 = vld [vmem:[#allocation2 + $0x47] sm:$0xff]  ;;  %v1431_v33 = vand.u32 15, %v1275_v20 }
 0x115   : > { %1232 = vst.msk [vmem:[#allocation2 + $0x68] sm:$0xff] %vm702_vm1, %v586_v32  ;;  %v6654_v37 = vpop.f32.mrb[12].mxu0  ;;  %6699 = vmatprep.mubr.msk.f32.mxu0 %vm702_vm1, %v586_v32  ;;  %v9259_v32 = vmov 0 }
 0x116   : > { %v601_v39 = vadd.f32 %v6654_v37, %v7807_v56  ;;  %v595_v40 = vpop.f32.mrb[13].mxu0  ;;  %6700 = vmatmul.mubr.msk.f32.gmra.mrb[42].mxu0 %vm702_vm1, %v591_v29  ;;  %v9260_v32 = vsel %vm7984_vm10, 4294967295, %v9259_v32  ;;  %vm8008_vm11 = vcmp.ge.s32.totalorder %v1431_v33, 1 }
 0x117   : > { %v596_v43 = vadd.f32 %v7807_v56, %v595_v40  ;;  %9261 = vst [vmem:[#allocation8_spill] sm:$0xff] %v9260_v32  ;;  %v1274_v32 = vadd.s32 152, %v7823_v3 }
 0x118   : > { %1235 = vst.msk [vmem:[#allocation2 + $0x80] sm:$0xff] %vm702_vm1, %v601_v39  ;;  %v7894_v46 = vld [vmem:[#allocation2 + $0x57] sm:$0xff]  ;;  %v8330_v42 = vld [vmem:[#allocation2 + $0x5f] sm:$0xff] }
 0x119   : > { %1234 = vst.msk [vmem:[#allocation2 + $0x78] sm:$0xff] %vm702_vm1, %v596_v43  ;;  %v6657_v47 = vpop.f32.mrb[14].mxu0  ;;  %6702 = vmatprep.mubr.msk.f32.mxu0 %vm702_vm1, %v596_v43 }
 0x11a   : > { %v611_v49 = vadd.f32 %v6657_v47, %v7807_v56  ;;  %v605_v50 = vpop.f32.mrb[15].mxu0  ;;  %6703 = vmatmul.mubr.msk.f32.gmra.mrb[44].mxu0 %vm702_vm1, %v601_v39 }
 0x11b   : > { %v606_v57 = vadd.f32 %v7807_v56, %v605_v50  ;;  %v1445_v50 = vand.u32 15, %v1277_v35  ;;  %v1283_v35 = vadd.s32 224, %v7823_v3 }
 0x11c   : > { %1237 = vst.msk [vmem:[#allocation2 + $0x90] sm:$0xff] %vm702_vm1, %v611_v49  ;;  %v7914_v59 = vld [vmem:[#allocation2 + $0x67] sm:$0xff]  ;;  %v7927_v2 = vld [vmem:[#allocation2 + $0x6f] sm:$0xff] }
 0x11d   : > { %1236 = vst.msk [vmem:[#allocation2 + $0x88] sm:$0xff] %vm702_vm1, %v606_v57  ;;  %v6660_v60 = vpop.f32.mrb[16].mxu0  ;;  %6705 = vmatprep.mubr.msk.f32.mxu0 %vm702_vm1, %v606_v57  ;;  %v3065_v61 = vsel %vm7910_vm7, %v7914_v59, 0.0  ;;  %vm8032_vm12 = vcmp.ge.s32.totalorder %v1445_v50, 1 }
 0x11e   : > { %v621_v0 = vadd.f32 %v6660_v60, %v7807_v56  ;;  %v615_v1 = vpop.f32.mrb[17].mxu0  ;;  %6706 = vmatmul.mubr.msk.f32.gmra.mrb[46].mxu0 %vm702_vm1, %v611_v49  ;;  %6899 = vmatprep.mubr.msk.f32.mxu1 %vm702_vm1, %v3065_v61  ;;  %v9262_v49 = vmov 0 }
 0x11f   : > { %v616_v8 = vadd.f32 %v7807_v56, %v615_v1  ;;  %6900 = vmatmul.mubr.msk.f32.vlgmr.msra.gmra.mrb[0].mxu1 %vm702_vm1, %v7927_v2  ;;  %v9263_v49 = vsel %vm8008_vm11, 4294967295, %v9262_v49 }
 0x120   : > { %1239 = vst.msk [vmem:[#allocation2 + $0xa0] sm:$0xff] %vm702_vm1, %v621_v0  ;;  %6933 = vmatpush3.msra.mxu1 %v7798_v54  ;;  %v7944_v9 = vld [vmem:[#allocation2 + $0x77] sm:$0xff]  ;;  %v7958_v15 = vld [vmem:[#allocation2 + $0x7f] sm:$0xff]  ;;  %9264 = vst [vmem:[#allocation9_spill] sm:$0xff] %v9263_v49  ;;  %v1276_v49 = vadd.s32 168, %v7823_v3 }
 0x121   : > { %1238 = vst.msk [vmem:[#allocation2 + $0x98] sm:$0xff] %vm702_vm1, %v616_v8  ;;  %v6663_v10 = vpop.f32.mrb[18].mxu0  ;;  %6708 = vmatprep.mubr.msk.f32.mxu0 %vm702_vm1, %v616_v8  ;;  %v3067_v11 = vsel %vm7903_vm6, %v7944_v9, 0.0  ;;  %6982 = vmatprep.subr.mxu1 %v7937_v7  ;;  %v9265_v8 = vmov 0 }
 0x122   : > { %v631_v13 = vadd.f32 %v6663_v10, %v7807_v56  ;;  %v625_v54 = vpop.f32.mrb[19].mxu0  ;;  %6709 = vmatmul.mubr.msk.f32.gmra.mrb[48].mxu0 %vm702_vm1, %v621_v0  ;;  %6902 = vmatprep.mubr.msk.f32.mxu1 %vm702_vm1, %v3067_v11  ;;  %v9266_v8 = vsel %vm8032_vm12, 4294967295, %v9265_v8  ;;  %v1459_v10 = vand.u32 15, %v1279_v52  ;;  %v1281_v11 = vadd.s32 208, %v7823_v3 }
 0x123   : > { %v626_v21 = vadd.f32 %v7807_v56, %v625_v54  ;;  %6903 = vmatmul.mubr.msk.f32.gmra.mrb[2].mxu1 %vm702_vm1, %v7958_v15  ;;  %9267 = vst [vmem:[#allocation10_spill] sm:$0xff] %v9266_v8  ;;  %v1264_v0 = vadd.s32 72, %v7823_v3  ;;  %v1278_v8 = vadd.s32 184, %v7823_v3 }
 0x124   : > { %1241 = vst.msk [vmem:[#allocation2 + $0xb0] sm:$0xff] %vm702_vm1, %v631_v13  ;;  %v7969_v22 = vld [vmem:[#allocation2 + $0x87] sm:$0xff]  ;;  %v7982_v31 = vld [vmem:[#allocation2 + $0x8f] sm:$0xff]  ;;  %vm8056_vm13 = vcmp.ge.s32.totalorder %v1459_v10, 1  ;;  %v1473_v33 = vand.u32 15, %v1281_v11 }
 0x125   : > { %1240 = vst.msk [vmem:[#allocation2 + $0xa8] sm:$0xff] %vm702_vm1, %v626_v21  ;;  %v6666_v24 = vpop.f32.mrb[20].mxu0  ;;  %6711 = vmatprep.mubr.msk.f32.mxu0 %vm702_vm1, %v626_v21  ;;  %v3069_v25 = vsel %vm7929_vm8, %v7969_v22, 0.0  ;;  %v1354_v12 = vand.u32 15, %v1264_v0  ;;  %v8350_v0 = vld [vmem:[#allocation2 + $0x61] sm:$0xff] }
 0x126   : > { %v641_v29 = vadd.f32 %v6666_v24, %v7807_v56  ;;  %v635_v30 = vpop.f32.mrb[21].mxu0  ;;  %6712 = vmatmul.mubr.msk.f32.gmra.mrb[50].mxu0 %vm702_vm1, %v631_v13  ;;  %6905 = vmatprep.mubr.msk.f32.mxu1 %vm702_vm1, %v3069_v25  ;;  %vm8080_vm14 = vcmp.ge.s32.totalorder %v1473_v33, 1  ;;  %v9274_v33 = vmov 0 }
 0x127   : > { %v636_v37 = vadd.f32 %v7807_v56, %v635_v30  ;;  %6906 = vmatmul.mubr.msk.f32.gmra.mrb[4].mxu1 %vm702_vm1, %v7982_v31  ;;  %v9268_v30 = vmov 0 }
 0x128   : > { %1243 = vst.msk [vmem:[#allocation2 + $0xc0] sm:$0xff] %vm702_vm1, %v641_v29  ;;  %v7993_v39 = vld [vmem:[#allocation2 + $0x97] sm:$0xff]  ;;  %v8006_v47 = vld [vmem:[#allocation2 + $0x9f] sm:$0xff]  ;;  %v9269_v30 = vsel %vm8056_vm13, 4294967295, %v9268_v30 }
 0x129   : > { %1242 = vst.msk [vmem:[#allocation2 + $0xb8] sm:$0xff] %vm702_vm1, %v636_v37  ;;  %v6669_v40 = vpop.f32.mrb[22].mxu0  ;;  %6714 = vmatprep.mubr.msk.f32.mxu0 %vm702_vm1, %v636_v37  ;;  %v3071_v41 = vsel %vm7960_vm9, %v7993_v39, 0.0  ;;  %9270 = vst [vmem:[#allocation11_spill] sm:$0xff] %v9269_v30  ;;  %v1280_v30 = vadd.s32 200, %v7823_v3 }
 0x12a   : > { %v651_v43 = vadd.f32 %v6669_v40, %v7807_v56  ;;  %v645_v44 = vpop.f32.mrb[23].mxu0  ;;  %6715 = vmatmul.mubr.msk.f32.gmra.mrb[52].mxu0 %vm702_vm1, %v641_v29  ;;  %6908 = vmatprep.mubr.msk.f32.mxu1 %vm702_vm1, %v3071_v41 }
 0x12b   : > { %v646_v55 = vadd.f32 %v7807_v56, %v645_v44  ;;  %6909 = vmatmul.mubr.msk.f32.gmra.mrb[6].mxu1 %vm702_vm1, %v8006_v47  ;;  %v9287_v44 = vmov 0 }
 0x12c   : > { %1245 = vst.msk [vmem:[#allocation2 + $0xd0] sm:$0xff] %vm702_vm1, %v651_v43  ;;  %v8017_v57 = vld [vmem:[#allocation2 + $0xa7] sm:$0xff]  ;;  %v8030_v6 = vld [vmem:[#allocation2 + $0xaf] sm:$0xff] }
 0x12d   : > { %1244 = vst.msk [vmem:[#allocation2 + $0xc8] sm:$0xff] %vm702_vm1, %v646_v55  ;;  %v6672_v60 = vpop.f32.mrb[24].mxu0  ;;  %6717 = vmatprep.mubr.msk.f32.mxu0 %vm702_vm1, %v646_v55  ;;  %v3073_v61 = vsel %vm7984_vm10, %v8017_v57, 0.0 }
 0x12e   : > { %v661_v1 = vadd.f32 %v6672_v60, %v7807_v56  ;;  %v655_v5 = vpop.f32.mrb[25].mxu0  ;;  %6718 = vmatmul.mubr.msk.f32.gmra.mrb[54].mxu0 %vm702_vm1, %v651_v43  ;;  %6911 = vmatprep.mubr.msk.f32.mxu1 %vm702_vm1, %v3073_v61  ;;  %v9271_v60 = vmov 0  ;;  %v1487_v61 = vand.u32 15, %v1283_v35 }
 0x12f   : > { %v656_v13 = vadd.f32 %v7807_v56, %v655_v5  ;;  %6912 = vmatmul.mubr.msk.f32.gmra.mrb[8].mxu1 %vm702_vm1, %v8030_v6  ;;  %v9272_v60 = vsel %vm8080_vm14, 4294967295, %v9271_v60 }
 0x130   : > { %1247 = vst.msk [vmem:[#allocation2 + $0xe0] sm:$0xff] %vm702_vm1, %v661_v1  ;;  %v8041_v54 = vld [vmem:[#allocation2 + $0xb7] sm:$0xff]  ;;  %v8054_v29 = vld [vmem:[#allocation2 + $0xbf] sm:$0xff]  ;;  %9273 = vst [vmem:[#allocation12_spill] sm:$0xff] %v9272_v60  ;;  %vm8104_vm15 = vcmp.ge.s32.totalorder %v1487_v61, 1  ;;  %v9277_v61 = vmov 0 }
 0x131   : > { %1246 = vst.msk [vmem:[#allocation2 + $0xd8] sm:$0xff] %vm702_vm1, %v656_v13  ;;  %v6675_v18 = vpop.f32.mrb[26].mxu0  ;;  %6720 = vmatprep.mubr.msk.f32.mxu0 %vm702_vm1, %v656_v13  ;;  %v3075_v20 = vsel %vm8008_vm11, %v8041_v54, 0.0  ;;  %v9275_v33 = vsel %vm8104_vm15, 4294967295, %v9274_v33  ;;  %v1282_v60 = vadd.s32 216, %v7823_v3 }
 0x132   : > { %v671_v24 = vadd.f32 %v6675_v18, %v7807_v56  ;;  %v665_v25 = vpop.f32.mrb[27].mxu0  ;;  %6721 = vmatmul.mubr.msk.f32.gmra.mrb[56].mxu0 %vm702_vm1, %v661_v1  ;;  %6914 = vmatprep.mubr.msk.f32.mxu1 %vm702_vm1, %v3075_v20  ;;  %v1285_v1 = vadd.s32 240, %v7823_v3  ;;  %9276 = vst [vmem:[#allocation13_spill] sm:$0xff] %v9275_v33  ;;  %v8307_v18 = vld [vmem:[#allocation2 + $0x4f] sm:$0xff]  ;;  %v1284_v33 = vadd.s32 232, %v7823_v3 }
 0x133   : > { %v666_v37 = vadd.f32 %v7807_v56, %v665_v25  ;;  %6915 = vmatmul.mubr.msk.f32.gmra.mrb[10].mxu1 %vm702_vm1, %v8054_v29 }
 0x134   : > { %1249 = vst.msk [vmem:[#allocation2 + $0xf0] sm:$0xff] %vm702_vm1, %v671_v24  ;;  %v8065_v40 = vld [vmem:[#allocation2 + $0xc7] sm:$0xff]  ;;  %v8078_v55 = vld [vmem:[#allocation2 + $0xcf] sm:$0xff]  ;;  %v1501_v35 = vand.u32 15, %v1285_v1 }
 0x135   : > { %1248 = vst.msk [vmem:[#allocation2 + $0xe8] sm:$0xff] %vm702_vm1, %v666_v37  ;;  %v6678_v41 = vpop.f32.mrb[28].mxu0  ;;  %6723 = vmatprep.mubr.msk.f32.mxu0 %vm702_vm1, %v666_v37  ;;  %v3077_v43 = vsel %vm8032_vm12, %v8065_v40, 0.0  ;;  %v1865_v1 = vld [vmem:[#allocation2 + $0x10] sm:$0xff] }
 0x136   : > { %v681_v50 = vadd.f32 %v6678_v41, %v7807_v56  ;;  %v675_v52 = vpop.f32.mrb[29].mxu0  ;;  %6724 = vmatmul.mubr.msk.f32.gmra.mrb[58].mxu0 %vm702_vm1, %v671_v24  ;;  %6917 = vmatprep.mubr.msk.f32.mxu1 %vm702_vm1, %v3077_v43  ;;  %v1864_v43 = vld [vmem:[#allocation2 + $0x8] sm:$0xff]  ;;  %vm8126_vm0 = vcmp.ge.s32.totalorder %v1501_v35, 1  ;;  %v8148_v35 = vld [vmem:[%s9191_s5 + $0x10] sm:$0xff] }
 0x137   : > { %v676_v5 = vadd.f32 %v7807_v56, %v675_v52  ;;  %6918 = vmatmul.mubr.msk.f32.gmra.mrb[12].mxu1 %vm702_vm1, %v8078_v55  ;;  %v9278_v61 = vsel %vm8126_vm0, 4294967295, %v9277_v61 }
 0x138   : > { %1251 = vst.msk [vmem:[#allocation2 + $0x100] sm:$0xff] %vm702_vm1, %v681_v50  ;;  %v8089_v10 = vld [vmem:[#allocation2 + $0xd7] sm:$0xff]  ;;  %v8102_v25 = vld [vmem:[#allocation2 + $0xdf] sm:$0xff]  ;;  %9279 = vst [vmem:[#allocation14_spill] sm:$0xff] %v9278_v61  ;;  %v1494_v61 = vand.u32 15, %v1284_v33 }
 0x139   : > { %1250 = vst.msk [vmem:[#allocation2 + $0xf8] sm:$0xff] %vm702_vm1, %v676_v5  ;;  %v6681_v11 = vpop.f32.mrb[30].mxu0  ;;  %6726 = vmatprep.mubr.msk.f32.mxu0 %vm702_vm1, %v676_v5  ;;  %v3079_v13 = vsel %vm8056_vm13, %v8089_v10, 0.0 }
 0x13a   : > { %v691_v20 = vadd.f32 %v6681_v11, %v7807_v56  ;;  %v685_v24 = vpop.f32.mrb[31].mxu0  ;;  %6727 = vmatmul.mubr.msk.f32.gmra.mrb[60].mxu0 %vm702_vm1, %v681_v50  ;;  %6920 = vmatprep.mubr.msk.f32.mxu1 %vm702_vm1, %v3079_v13  ;;  %v8283_v13 = vld [vmem:[#allocation2 + $0x3f] sm:$0xff] }
 0x13b   : > { %v686_v37 = vadd.f32 %v7807_v56, %v685_v24  ;;  %6921 = vmatmul.mubr.msk.f32.gmra.mrb[14].mxu1 %vm702_vm1, %v8102_v25  ;;  %v9285_v56 = vmov 0 }
 0x13c   : > { %1253 = vst.msk [vmem:[#allocation2 + $0x110] sm:$0xff] %vm702_vm1, %v691_v20  ;;  %v8112_v41 = vld [vmem:[#allocation2 + $0xe7] sm:$0xff]  ;;  %v8124_v52 = vld [vmem:[#allocation2 + $0xef] sm:$0xff] }
 0x13d   : > { %1252 = vst.msk [vmem:[#allocation2 + $0x108] sm:$0xff] %vm702_vm1, %v686_v37  ;;  %6729 = vmatprep.mubr.msk.f32.mxu0 %vm702_vm1, %v686_v37  ;;  %v3081_v50 = vsel %vm8080_vm14, %v8112_v41, 0.0  ;;  %v1892_v38 = vld [vmem:[#allocation2 + $0xe8] sm:$0xff] }
 0x13e   : > { %6730 = vmatmul.mubr.msk.f32.gmra.mrb[62].mxu0 %vm702_vm1, %v691_v20  ;;  %6923 = vmatprep.mubr.msk.f32.mxu1 %vm702_vm1, %v3081_v50  ;;  %v1866_v20 = vld [vmem:[#allocation2 + $0x18] sm:$0xff] }
 0x13f   : > { %6924 = vmatmul.mubr.msk.f32.gmra.mrb[16].mxu1 %vm702_vm1, %v8124_v52  ;;  %6734 = vmatprep.mubr.msk.f32.mxu0 %vm702_vm1, %v1864_v43  ;;  %v1867_v43 = vld [vmem:[#allocation2 + $0x20] sm:$0xff] }
 0x140   : > { %v8133_v5 = vld [vmem:[#allocation2 + $0xf7] sm:$0xff]  ;;  %v8143_v24 = vld [vmem:[#allocation2 + $0xff] sm:$0xff] }
 0x141   : > { %v3083_v11 = vsel %vm8104_vm15, %v8133_v5, 0.0 }
 0x142   : > { %6735 = vmatmul.mubr.msk.f32.vlgmr.msra.gmra.mrb[64].mxu0 %vm702_vm1, %v1865_v1  ;;  %6926 = vmatprep.mubr.msk.f32.mxu1 %vm702_vm1, %v3083_v11  ;;  %v1868_v1 = vld [vmem:[#allocation2 + $0x28] sm:$0xff] }
 0x143   : > { %6737 = vmatprep.mubr.msk.f32.mxu0 %vm702_vm1, %v1866_v20  ;;  %6927 = vmatmul.mubr.msk.f32.gmra.mrb[18].mxu1 %vm702_vm1, %v8143_v24 }
 0x144   : > { %v3053_v37 = vld [vmem:[#allocation2 + $0x107] sm:$0xff]  ;;  %6783 = vmatpush3.msra.mxu0 %v7817_v63  ;;  %v3054_v11 = vld [vmem:[#allocation2 + $0x10f] sm:$0xff]  ;;  %v1870_v63 = vld [vmem:[#allocation2 + $0x38] sm:$0xff] }
 0x145   : > { %v3085_v50 = vsel %vm8126_vm0, %v3053_v37, 0.0  ;;  %6832 = vmatprep.subr.mxu0 %v8148_v35  ;;  %v8166_v37 = vld [vmem:[%s9191_s5 + $0x30] sm:$0xff] }
 0x146   : > { %6738 = vmatmul.mubr.msk.f32.gmra.mrb[66].mxu0 %vm702_vm1, %v1867_v43  ;;  %6929 = vmatprep.mubr.msk.f32.mxu1 %vm702_vm1, %v3085_v50  ;;  %v1871_v50 = vld [vmem:[#allocation2 + $0x40] sm:$0xff] }
 0x147   : > { %6740 = vmatprep.mubr.msk.f32.mxu0 %vm702_vm1, %v1868_v1  ;;  %6930 = vmatmul.mubr.msk.f32.gmra.mrb[20].mxu1 %vm702_vm1, %v3054_v11  ;;  %v1873_v11 = vld [vmem:[#allocation2 + $0x50] sm:$0xff] }
 0x148   : > { %6934 = vmatprep.mubr.msk.f32.mxu1 %vm702_vm1, %v1866_v20  ;;  %v1872_v20 = vld [vmem:[#allocation2 + $0x48] sm:$0xff] }
 0x14a   : > { %6741 = vmatmul.mubr.msk.f32.gmra.mrb[68].mxu0 %vm702_vm1, %v1869_v48 }
 0x14b   : > { %6743 = vmatprep.mubr.msk.f32.mxu0 %vm702_vm1, %v1870_v63  ;;  %6935 = vmatmul.mubr.msk.f32.vlgmr.msra.gmra.mrb[22].mxu1 %vm702_vm1, %v1867_v43  ;;  %v1874_v43 = vld [vmem:[#allocation2 + $0x58] sm:$0xff] }
 0x14c   : > { %6983 = vmatpush3.msra.mxu1 %v7937_v7  ;;  %6937 = vmatprep.mubr.msk.f32.mxu1 %vm702_vm1, %v1868_v1  ;;  %v1875_v7 = vld [vmem:[#allocation2 + $0x60] sm:$0xff]  ;;  %v1876_v1 = vld [vmem:[#allocation2 + $0x68] sm:$0xff] }
 0x14d   : > { %7032 = vmatprep.subr.mxu1 %v8166_v37 }
 0x14e   : > { %6744 = vmatmul.mubr.msk.f32.gmra.mrb[70].mxu0 %vm702_vm1, %v1871_v50 }
 0x14f   : > { %6746 = vmatprep.mubr.msk.f32.mxu0 %vm702_vm1, %v1872_v20  ;;  %6938 = vmatmul.mubr.msk.f32.gmra.mrb[24].mxu1 %vm702_vm1, %v1869_v48  ;;  %v1877_v48 = vld [vmem:[#allocation2 + $0x70] sm:$0xff] }
 0x150   : > { %6940 = vmatprep.mubr.msk.f32.mxu1 %vm702_vm1, %v1870_v63  ;;  %v1878_v63 = vld [vmem:[#allocation2 + $0x78] sm:$0xff] }
 0x152   : > { %6747 = vmatmul.mubr.msk.f32.gmra.mrb[72].mxu0 %vm702_vm1, %v1873_v11 }
 0x153   : > { %6749 = vmatprep.mubr.msk.f32.mxu0 %vm702_vm1, %v1874_v43  ;;  %6941 = vmatmul.mubr.msk.f32.gmra.mrb[26].mxu1 %vm702_vm1, %v1871_v50  ;;  %v1879_v50 = vld [vmem:[#allocation2 + $0x80] sm:$0xff] }
 0x154   : > { %6943 = vmatprep.mubr.msk.f32.mxu1 %vm702_vm1, %v1872_v20  ;;  %v1880_v20 = vld [vmem:[#allocation2 + $0x88] sm:$0xff] }
 0x156   : > { %6750 = vmatmul.mubr.msk.f32.gmra.mrb[74].mxu0 %vm702_vm1, %v1875_v7 }
 0x157   : > { %6752 = vmatprep.mubr.msk.f32.mxu0 %vm702_vm1, %v1876_v1  ;;  %6944 = vmatmul.mubr.msk.f32.gmra.mrb[28].mxu1 %vm702_vm1, %v1873_v11  ;;  %v1881_v11 = vld [vmem:[#allocation2 + $0x90] sm:$0xff] }
 0x158   : > { %6946 = vmatprep.mubr.msk.f32.mxu1 %vm702_vm1, %v1874_v43  ;;  %v1882_v43 = vld [vmem:[#allocation2 + $0x98] sm:$0xff] }
 0x15a   : > { %6753 = vmatmul.mubr.msk.f32.gmra.mrb[76].mxu0 %vm702_vm1, %v1877_v48 }
 0x15b   : > { %6755 = vmatprep.mubr.msk.f32.mxu0 %vm702_vm1, %v1878_v63  ;;  %6947 = vmatmul.mubr.msk.f32.gmra.mrb[30].mxu1 %vm702_vm1, %v1875_v7  ;;  %v1883_v7 = vld [vmem:[#allocation2 + $0xa0] sm:$0xff] }
 0x15c   : > { %6949 = vmatprep.mubr.msk.f32.mxu1 %vm702_vm1, %v1876_v1  ;;  %v1884_v1 = vld [vmem:[#allocation2 + $0xa8] sm:$0xff] }
 0x15e   : > { %6756 = vmatmul.mubr.msk.f32.gmra.mrb[78].mxu0 %vm702_vm1, %v1879_v50 }
 0x15f   : > { %6758 = vmatprep.mubr.msk.f32.mxu0 %vm702_vm1, %v1880_v20  ;;  %6950 = vmatmul.mubr.msk.f32.gmra.mrb[0].mxu1 %vm702_vm1, %v1877_v48  ;;  %v1885_v48 = vld [vmem:[#allocation2 + $0xb0] sm:$0xff] }
 0x160   : > { %6952 = vmatprep.mubr.msk.f32.mxu1 %vm702_vm1, %v1878_v63  ;;  %v1886_v63 = vld [vmem:[#allocation2 + $0xb8] sm:$0xff] }
 0x162   : > { %6759 = vmatmul.mubr.msk.f32.gmra.mrb[80].mxu0 %vm702_vm1, %v1881_v11 }
 0x163   : > { %6761 = vmatprep.mubr.msk.f32.mxu0 %vm702_vm1, %v1882_v43  ;;  %6953 = vmatmul.mubr.msk.f32.gmra.mrb[2].mxu1 %vm702_vm1, %v1879_v50  ;;  %v1887_v50 = vld [vmem:[#allocation2 + $0xc0] sm:$0xff] }
 0x164   : > { %6955 = vmatprep.mubr.msk.f32.mxu1 %vm702_vm1, %v1880_v20  ;;  %v1888_v20 = vld [vmem:[#allocation2 + $0xc8] sm:$0xff] }
 0x166   : > { %6762 = vmatmul.mubr.msk.f32.gmra.mrb[82].mxu0 %vm702_vm1, %v1883_v7 }
 0x167   : > { %6764 = vmatprep.mubr.msk.f32.mxu0 %vm702_vm1, %v1884_v1  ;;  %6956 = vmatmul.mubr.msk.f32.gmra.mrb[4].mxu1 %vm702_vm1, %v1881_v11  ;;  %v1889_v11 = vld [vmem:[#allocation2 + $0xd0] sm:$0xff] }
 0x168   : > { %6958 = vmatprep.mubr.msk.f32.mxu1 %vm702_vm1, %v1882_v43  ;;  %v1890_v43 = vld [vmem:[#allocation2 + $0xd8] sm:$0xff] }
 0x16a   : > { %6765 = vmatmul.mubr.msk.f32.gmra.mrb[84].mxu0 %vm702_vm1, %v1885_v48 }
 0x16b   : > { %6767 = vmatprep.mubr.msk.f32.mxu0 %vm702_vm1, %v1886_v63  ;;  %6959 = vmatmul.mubr.msk.f32.gmra.mrb[6].mxu1 %vm702_vm1, %v1883_v7  ;;  %v1891_v7 = vld [vmem:[#allocation2 + $0xe0] sm:$0xff] }
 0x16c   : > { %6961 = vmatprep.mubr.msk.f32.mxu1 %vm702_vm1, %v1884_v1  ;;  %v7614_v1 = vmov 0  }
 0x16d   : > { %7474 = vset.pattern.permute.xlu0 %v7614_v1  ;;  %7475 = vset.pattern.permute.xlu1 %v7614_v1  ;;  %v1895_v1 = vld [vmem:[#allocation2 + $0x100] sm:$0xff] }
 0x16e   : > { %6768 = vmatmul.mubr.msk.f32.gmra.mrb[86].mxu0 %vm702_vm1, %v1887_v50 }
 0x16f   : > { %6770 = vmatprep.mubr.msk.f32.mxu0 %vm702_vm1, %v1888_v20  ;;  %6962 = vmatmul.mubr.msk.f32.gmra.mrb[8].mxu1 %vm702_vm1, %v1885_v48  ;;  %v1893_v48 = vld [vmem:[#allocation2 + $0xf0] sm:$0xff] }
 0x170   : > { %6964 = vmatprep.mubr.msk.f32.mxu1 %vm702_vm1, %v1886_v63  ;;  %v1735_v63 = vld [vmem:[#allocation2 + $0x7] sm:$0xff] }
 0x172   : > { %6771 = vmatmul.mubr.msk.f32.gmra.mrb[88].mxu0 %vm702_vm1, %v1889_v11 }
 0x173   : > { %6773 = vmatprep.mubr.msk.f32.mxu0 %vm702_vm1, %v1890_v43  ;;  %6965 = vmatmul.mubr.msk.f32.gmra.mrb[10].mxu1 %vm702_vm1, %v1887_v50  ;;  %v1894_v50 = vld [vmem:[#allocation2 + $0xf8] sm:$0xff] }
 0x174   : > { %6967 = vmatprep.mubr.msk.f32.mxu1 %vm702_vm1, %v1888_v20  ;;  %v1831_v20 = vsel %vm7840_vm2, %v1735_v63, 0.0  ;;  %v1738_v63 = vld [vmem:[#allocation2 + $0x1f] sm:$0xff] }
 0x176   : > { %6774 = vmatmul.mubr.msk.f32.gmra.mrb[90].mxu0 %vm702_vm1, %v1891_v7 }
 0x177   : > { %6776 = vmatprep.mubr.msk.f32.mxu0 %vm702_vm1, %v1892_v38  ;;  %6968 = vmatmul.mubr.msk.f32.gmra.mrb[12].mxu1 %vm702_vm1, %v1889_v11  ;;  %v1736_v11 = vld [vmem:[#allocation2 + $0xf] sm:$0xff] }
 0x178   : > { %6970 = vmatprep.mubr.msk.f32.mxu1 %vm702_vm1, %v1890_v43  ;;  %v1737_v43 = vld [vmem:[#allocation2 + $0x17] sm:$0xff] }
 0x17a   : > { %6777 = vmatmul.mubr.msk.f32.gmra.mrb[92].mxu0 %vm702_vm1, %v1893_v48 }
 0x17b   : > { %6779 = vmatprep.mubr.msk.f32.mxu0 %vm702_vm1, %v1894_v50  ;;  %6971 = vmatmul.mubr.msk.f32.gmra.mrb[14].mxu1 %vm702_vm1, %v1891_v7  ;;  %v3472_v7 = vld [vmem:[#allocation2 + $0x108] sm:$0xff] }
 0x17c   : > { %6973 = vmatprep.mubr.msk.f32.mxu1 %vm702_vm1, %v1892_v38  ;;  %v1833_v38 = vsel %vm7856_vm3, %v1737_v43, 0.0  ;;  %v8244_v43 = vld [vmem:[#allocation2 + $0x19] sm:$0xff] }
 0x17e   : > { %6780 = vmatmul.mubr.msk.f32.gmra.mrb[94].mxu0 %vm702_vm1, %v1895_v1 }
 0x17f   : > { %6974 = vmatmul.mubr.msk.f32.gmra.mrb[16].mxu1 %vm702_vm1, %v1893_v48  ;;  %6784 = vmatprep.mubr.msk.f32.mxu0 %vm702_vm1, %v1831_v20  ;;  %v1263_v48 = vadd.s32 64, %v7823_v3  ;;  %v1258_v20 = vadd.s32 24, %v7823_v3 }
 0x180   : > { %6976 = vmatprep.mubr.msk.f32.mxu1 %vm702_vm1, %v1894_v50  ;;  %v1298_v50 = vand.u32 15, %v1256_v28 }
 0x181   : > { %v1347_v28 = vand.u32 15, %v1263_v48 }
 0x182   : > { %6785 = vmatmul.mubr.msk.f32.vlgmr.msra.gmra.mrb[64].mxu0 %vm702_vm1, %v1736_v11  ;;  %v1835_v11 = vsel %vm7874_vm4, %v7845_v17, 0.0  ;;  %vm8252_vm3 = vcmp.lt.s32.totalorder %v1298_v50, 15  ;;  %v8268_v50 = vld [vmem:[%s9191_s5 + $0x38] sm:$0xff] }
 0x183   : > { %6787 = vmatprep.mubr.msk.f32.mxu0 %vm702_vm1, %v1833_v38  ;;  %6977 = vmatmul.mubr.msk.f32.gmra.mrb[18].mxu1 %vm702_vm1, %v1895_v1  ;;  %v3473_v1 = vld [vmem:[#allocation2 + $0x110] sm:$0xff]  ;;  %v9280_v38 = vmov 0  ;;  %vm8274_vm4 = vcmp.ge.s32.totalorder %v1347_v28, 1 }
 0x184   : > { %6979 = vmatprep.mubr.msk.f32.mxu1 %vm702_vm1, %v3472_v7  ;;  %6833 = vmatpush3.msra.mxu0 %v8148_v35  ;;  %v8246_v35 = vld [vmem:[#allocation2 + $0x21] sm:$0xff]  ;;  %v9281_v38 = vsel %vm8252_vm3, 4294967295, %v9280_v38  ;;  %v1312_v7 = vand.u32 15, %v1258_v20  ;;  %v8272_v20 = vld [vmem:[#allocation2 + $0x29] sm:$0xff] }
 0x185   : > { %6882 = vmatprep.subr.mxu0 %v7791_v53  ;;  %v8250_v53 = vld [vmem:[#allocation2 + $0x2f] sm:$0xff]  ;;  %v3862_v48 = vsel %vm8252_vm3, %v8246_v35, 0.0 }
 0x186   : > { %6788 = vmatmul.mubr.msk.f32.gmra.mrb[66].mxu0 %vm702_vm1, %v1738_v63  ;;  %v1260_v63 = vadd.s32 40, %v7823_v3 }
 0x187   : > { %6790 = vmatprep.mubr.msk.f32.mxu0 %vm702_vm1, %v1835_v11  ;;  %6980 = vmatmul.mubr.msk.f32.gmra.mrb[20].mxu1 %vm702_vm1, %v3473_v1  ;;  %v1837_v11 = vsel %vm7890_vm5, %v7861_v26, 0.0  ;;  %v9282_v1 = vmov 0  ;;  %vm8285_vm5 = vcmp.lt.s32.totalorder %v1312_v7, 15  ;;  %v8301_v7 = vld [vmem:[#allocation2 + $0x39] sm:$0xff] }
 0x188   : > { %6984 = vmatprep.mubr.msk.f32.mxu1 %vm702_vm1, %v8244_v43  ;;  %v9283_v1 = vsel %vm8274_vm4, 4294967295, %v9282_v1  ;;  %v9286_v56 = vsel %vm8285_vm5, 4294967295, %v9285_v56  ;;  %v3864_v28 = vsel %vm8285_vm5, %v8278_v19, 0.0 }
 0x189   : > { %9284 = vst [vmem:[#allocation15_spill] sm:$0xff] %v9283_v1  ;;  %v1368_v1 = vand.u32 15, %v1266_v62  ;;  %v8372_v62 = vld [vmem:[#allocation2 + $0x71] sm:$0xff] }
 0x18a   : > { %6791 = vmatmul.mubr.msk.f32.gmra.mrb[68].mxu0 %vm702_vm1, %v8250_v53 }
 0x18b   : > { %6793 = vmatprep.mubr.msk.f32.mxu0 %vm702_vm1, %v1837_v11  ;;  %6985 = vmatmul.mubr.msk.f32.vlgmr.msra.gmra.mrb[22].mxu1 %vm702_vm1, %v3862_v48  ;;  %v1326_v11 = vand.u32 15, %v1260_v63  ;;  %v1262_v48 = vadd.s32 56, %v7823_v3  ;;  %v8303_v63 = vld [vmem:[#allocation2 + $0x41] sm:$0xff] }
 0x18c   : > { %7033 = vmatpush3.msra.mxu1 %v8166_v37  ;;  %6987 = vmatprep.mubr.msk.f32.mxu1 %vm702_vm1, %v8272_v20  ;;  %v1839_v37 = vsel %vm8274_vm4, %v7878_v36, 0.0 }
 0x18d   : > { %7082 = vmatprep.subr.mxu1 %v8268_v50  ;;  %vm8309_vm2 = vcmp.lt.s32.totalorder %v1326_v11, 15  ;;  %v1340_v21 = vand.u32 15, %v1262_v48  ;;  %v8324_v11 = vld [vmem:[#allocation2 + $0x49] sm:$0xff]  ;;  %v8326_v48 = vld [vmem:[#allocation2 + $0x51] sm:$0xff] }
 0x18e   : > { %6794 = vmatmul.mubr.msk.f32.gmra.mrb[70].mxu0 %vm702_vm1, %v8283_v13  ;;  %v9288_v44 = vsel %vm8309_vm2, 4294967295, %v9287_v44 }
 0x18f   : > { %6796 = vmatprep.mubr.msk.f32.mxu0 %vm702_vm1, %v1839_v37  ;;  %6988 = vmatmul.mubr.msk.f32.gmra.mrb[24].mxu1 %vm702_vm1, %v3864_v28  ;;  %v1841_v37 = vsel %vm7910_vm7, %v7894_v46, 0.0  ;;  %v3866_v28 = vsel %vm8309_vm2, %v8303_v63, 0.0  ;;  %vm8332_vm4 = vcmp.lt.s32.totalorder %v1340_v21, 15  ;;  %v8348_v21 = vld [vmem:[#allocation2 + $0x59] sm:$0xff]  ;;  %vm8354_vm7 = vcmp.lt.s32.totalorder %v1354_v12, 15  ;;  %v8370_v12 = vld [vmem:[#allocation2 + $0x69] sm:$0xff] }
 0x190   : > { %6990 = vmatprep.mubr.msk.f32.mxu1 %vm702_vm1, %v8301_v7  ;;  %v9290_v27 = vsel %vm8332_vm4, 4294967295, %v9289_v27  ;;  %v9293_v58 = vsel %vm8354_vm7, 4294967295, %v9292_v58 }
 0x192   : > { %6797 = vmatmul.mubr.msk.f32.gmra.mrb[72].mxu0 %vm702_vm1, %v8307_v18 }
 0x193   : > { %6799 = vmatprep.mubr.msk.f32.mxu0 %vm702_vm1, %v1841_v37  ;;  %6991 = vmatmul.mubr.msk.f32.gmra.mrb[26].mxu1 %vm702_vm1, %v3866_v28  ;;  %v3868_v37 = vsel %vm8332_vm4, %v8326_v48, 0.0  ;;  %v9291_v28 = vsel %vm7903_vm6, %v7914_v59, 0.0  ;;  %v3870_v59 = vsel %vm8354_vm7, %v8350_v0, 0.0  ;;  %vm8376_vm6 = vcmp.lt.s32.totalorder %v1368_v1, 15  ;;  %v8392_v1 = vld [vmem:[#allocation2 + $0x79] sm:$0xff] }
 0x194   : > { %6993 = vmatprep.mubr.msk.f32.mxu1 %vm702_vm1, %v8324_v11 }
 0x196   : > { %6800 = vmatmul.mubr.msk.f32.gmra.mrb[74].mxu0 %vm702_vm1, %v8330_v42 }
 0x197   : > { %6802 = vmatprep.mubr.msk.f32.mxu0 %vm702_vm1, %v9291_v28  ;;  %6994 = vmatmul.mubr.msk.f32.gmra.mrb[28].mxu1 %vm702_vm1, %v3868_v37  ;;  %v9294_v37 = vsel %vm7929_vm8, %v7944_v9, 0.0  ;;  %v1382_v28 = vand.u32 15, %v1268_v51  ;;  %v3872_v9 = vsel %vm8376_vm6, %v8372_v62, 0.0  ;;  %v8394_v51 = vld [vmem:[#allocation2 + $0x81] sm:$0xff] }
 0x198   : > { %6996 = vmatprep.mubr.msk.f32.mxu1 %vm702_vm1, %v8348_v21 }
 0x199   : > { %vm8398_vm8 = vcmp.lt.s32.totalorder %v1382_v28, 15  ;;  %v8414_v28 = vld [vmem:[#allocation2 + $0x89] sm:$0xff] }
 0x19a   : > { %6803 = vmatmul.mubr.msk.f32.gmra.mrb[76].mxu0 %vm702_vm1, %v7927_v2  ;;  %v9295_v2 = vmov 0 }
 0x19b   : > { %6805 = vmatprep.mubr.msk.f32.mxu0 %vm702_vm1, %v9294_v37  ;;  %6997 = vmatmul.mubr.msk.f32.gmra.mrb[30].mxu1 %vm702_vm1, %v3870_v59  ;;  %v9296_v2 = vsel %vm8376_vm6, 4294967295, %v9295_v2  ;;  %v9297_v59 = vsel %vm7960_vm9, %v7969_v22, 0.0  ;;  %v1396_v37 = vand.u32 15, %v1270_v4  ;;  %v3874_v22 = vsel %vm8398_vm8, %v8394_v51, 0.0  ;;  %v8416_v4 = vld [vmem:[#allocation2 + $0x91] sm:$0xff] }
 0x19c   : > { %6999 = vmatprep.mubr.msk.f32.mxu1 %vm702_vm1, %v8370_v12 }
 0x19d   : > { %vm8420_vm9 = vcmp.lt.s32.totalorder %v1396_v37, 15  ;;  %v8436_v37 = vld [vmem:[#allocation2 + $0x99] sm:$0xff] }
 0x19e   : > { %6806 = vmatmul.mubr.msk.f32.gmra.mrb[78].mxu0 %vm702_vm1, %v7958_v15  ;;  %v5072_v15 = vld [vmem:[#allocation2 + $0xb9] sm:$0xff] }
 0x19f   : > { %6808 = vmatprep.mubr.msk.f32.mxu0 %vm702_vm1, %v9297_v59  ;;  %7000 = vmatmul.mubr.msk.f32.gmra.mrb[0].mxu1 %vm702_vm1, %v3872_v9  ;;  %v9300_v9 = vsel %vm7984_vm10, %v7993_v39, 0.0  ;;  %v1410_v59 = vand.u32 15, %v1272_v16  ;;  %v3876_v39 = vsel %vm8420_vm9, %v8416_v4, 0.0  ;;  %v8438_v16 = vld [vmem:[#allocation2 + $0xa1] sm:$0xff] }
 0x1a0   : > { %7002 = vmatprep.mubr.msk.f32.mxu1 %vm702_vm1, %v8392_v1 }
 0x1a1   : > { %vm8442_vm10 = vcmp.lt.s32.totalorder %v1410_v59, 15  ;;  %v8458_v59 = vld [vmem:[#allocation2 + $0xa9] sm:$0xff] }
 0x1a2   : > { %6809 = vmatmul.mubr.msk.f32.gmra.mrb[80].mxu0 %vm702_vm1, %v7982_v31  ;;  %v5074_v31 = vld [vmem:[#allocation2 + $0xc9] sm:$0xff] }
 0x1a3   : > { %6811 = vmatprep.mubr.msk.f32.mxu0 %vm702_vm1, %v9300_v9  ;;  %7003 = vmatmul.mubr.msk.f32.gmra.mrb[2].mxu1 %vm702_vm1, %v3874_v22  ;;  %v9303_v22 = vsel %vm8008_vm11, %v8017_v57, 0.0  ;;  %v1424_v9 = vand.u32 15, %v1274_v32  ;;  %v3878_v57 = vsel %vm8442_vm10, %v8438_v16, 0.0  ;;  %v8460_v32 = vld [vmem:[#allocation2 + $0xb1] sm:$0xff] }
 0x1a4   : > { %7005 = vmatprep.mubr.msk.f32.mxu1 %vm702_vm1, %v8414_v28 }
 0x1a5   : > { %vm8464_vm11 = vcmp.lt.s32.totalorder %v1424_v9, 15  ;;  %v8480_v9 = vld [vmem:[#allocation2 + $0xb9] sm:$0xff] }
 0x1a6   : > { %6812 = vmatmul.mubr.msk.f32.gmra.mrb[82].mxu0 %vm702_vm1, %v8006_v47  ;;  %v5076_v47 = vld [vmem:[#allocation2 + $0xd9] sm:$0xff] }
 0x1a7   : > { %6814 = vmatprep.mubr.msk.f32.mxu0 %vm702_vm1, %v9303_v22  ;;  %7006 = vmatmul.mubr.msk.f32.gmra.mrb[4].mxu1 %vm702_vm1, %v3876_v39  ;;  %v9306_v39 = vsel %vm8032_vm12, %v8041_v54, 0.0  ;;  %v1438_v22 = vand.u32 15, %v1276_v49  ;;  %v3880_v54 = vsel %vm8464_vm11, %v8460_v32, 0.0  ;;  %v8482_v49 = vld [vmem:[#allocation2 + $0xc1] sm:$0xff] }
 0x1a8   : > { %7008 = vmatprep.mubr.msk.f32.mxu1 %vm702_vm1, %v8436_v37 }
 0x1a9   : > { %vm8486_vm12 = vcmp.lt.s32.totalorder %v1438_v22, 15  ;;  %v8502_v22 = vld [vmem:[#allocation2 + $0xc9] sm:$0xff] }
 0x1aa   : > { %6815 = vmatmul.mubr.msk.f32.gmra.mrb[84].mxu0 %vm702_vm1, %v8030_v6  ;;  %v5078_v6 = vld [vmem:[#allocation2 + $0xe9] sm:$0xff] }
 0x1ab   : > { %6817 = vmatprep.mubr.msk.f32.mxu0 %vm702_vm1, %v9306_v39  ;;  %7009 = vmatmul.mubr.msk.f32.gmra.mrb[6].mxu1 %vm702_vm1, %v3878_v57  ;;  %v9309_v57 = vsel %vm8056_vm13, %v8065_v40, 0.0  ;;  %v1452_v39 = vand.u32 15, %v1278_v8  ;;  %v3882_v40 = vsel %vm8486_vm12, %v8482_v49, 0.0  ;;  %v8504_v8 = vld [vmem:[#allocation2 + $0xd1] sm:$0xff] }
 0x1ac   : > { %7011 = vmatprep.mubr.msk.f32.mxu1 %vm702_vm1, %v8458_v59 }
 0x1ad   : > { %vm8508_vm13 = vcmp.lt.s32.totalorder %v1452_v39, 15  ;;  %v8524_v39 = vld [vmem:[#allocation2 + $0xd9] sm:$0xff] }
 0x1ae   : > { %6818 = vmatmul.mubr.msk.f32.gmra.mrb[86].mxu0 %vm702_vm1, %v8054_v29  ;;  %v5080_v29 = vld [vmem:[#allocation2 + $0xf9] sm:$0xff] }
 0x1af   : > { %6820 = vmatprep.mubr.msk.f32.mxu0 %vm702_vm1, %v9309_v57  ;;  %7012 = vmatmul.mubr.msk.f32.gmra.mrb[8].mxu1 %vm702_vm1, %v3880_v54  ;;  %v9312_v54 = vsel %vm8080_vm14, %v8089_v10, 0.0  ;;  %v1466_v57 = vand.u32 15, %v1280_v30  ;;  %v3884_v10 = vsel %vm8508_vm13, %v8504_v8, 0.0  ;;  %v8526_v30 = vld [vmem:[#allocation2 + $0xe1] sm:$0xff] }
 0x1b0   : > { %7014 = vmatprep.mubr.msk.f32.mxu1 %vm702_vm1, %v8480_v9  ;;  %9316 = vst [vmem:[#allocation16_spill] sm:$0xff] %v8526_v30 }
 0x1b1   : > { %vm8530_vm14 = vcmp.lt.s32.totalorder %v1466_v57, 15  ;;  %v8546_v57 = vld [vmem:[#allocation2 + $0xe9] sm:$0xff] }
 0x1b2   : > { %6821 = vmatmul.mubr.msk.f32.gmra.mrb[88].mxu0 %vm702_vm1, %v8078_v55  ;;  %v5082_v55 = vld [vmem:[#allocation2 + $0x109] sm:$0xff] }
 0x1b3   : > { %6823 = vmatprep.mubr.msk.f32.mxu0 %vm702_vm1, %v9312_v54  ;;  %7015 = vmatmul.mubr.msk.f32.gmra.mrb[10].mxu1 %vm702_vm1, %v3882_v40  ;;  %v9315_v40 = vsel %vm8104_vm15, %v8112_v41, 0.0  ;;  %v1480_v54 = vand.u32 15, %v1282_v60  ;;  %v3886_v41 = vsel %vm8530_vm14, %v8526_v30, 0.0  ;;  %v8548_v60 = vld [vmem:[#allocation2 + $0xf1] sm:$0xff]  ;;  %v9320_v30 = vmov 0 }
 0x1b4   : > { %7017 = vmatprep.mubr.msk.f32.mxu1 %vm702_vm1, %v8502_v22 }
 0x1b5   : > { %vm8553_vm15 = vcmp.lt.s32.totalorder %v1480_v54, 15 }
 0x1b6   : > { %6824 = vmatmul.mubr.msk.f32.gmra.mrb[90].mxu0 %vm702_vm1, %v8102_v25  ;;  %v9317_v25 = vmov 0  ;;  %v9321_v30 = vsel %vm8553_vm15, 4294967295, %v9320_v30 }
 0x1b7   : > { %6826 = vmatprep.mubr.msk.f32.mxu0 %vm702_vm1, %v9315_v40  ;;  %7018 = vmatmul.mubr.msk.f32.gmra.mrb[12].mxu1 %vm702_vm1, %v3884_v10  ;;  %v9318_v25 = vsel %vm8530_vm14, 4294967295, %v9317_v25  ;;  %v9319_v10 = vsel %vm8126_vm0, %v8133_v5, 0.0  ;;  %v1286_v40 = vadd.s32 248, %v7823_v3  ;;  %v3888_v5 = vsel %vm8553_vm15, %v8548_v60, 0.0  ;;  %v8563_v3 = vld [vmem:[#allocation2 + $0xf9] sm:$0xff] }
 0x1b8   : > { %7020 = vmatprep.mubr.msk.f32.mxu1 %vm702_vm1, %v8524_v39  ;;  %vm8572_vm0 = vcmp.lt.s32.totalorder %v1494_v61, 15  ;;  %v3860_v61 = vld [vmem:[#allocation2 + $0x111] sm:$0xff] }
 0x1b9   : > { %v1508_v54 = vand.u32 15, %v1286_v40  ;;  %v3859_v40 = vld [vmem:[#allocation2 + $0x109] sm:$0xff] }
 0x1ba   : > { %6827 = vmatmul.mubr.msk.f32.gmra.mrb[92].mxu0 %vm702_vm1, %v8124_v52  ;;  %v2540_v52 = vld [vmem:[#allocation2 + $0x9] sm:$0xff] }
 0x1bb   : > { %6829 = vmatprep.mubr.msk.f32.mxu0 %vm702_vm1, %v9319_v10  ;;  %7021 = vmatmul.mubr.msk.f32.gmra.mrb[14].mxu1 %vm702_vm1, %v3886_v41  ;;  %v2541_v41 = vld [vmem:[#allocation2 + $0x11] sm:$0xff]  ;;  %v8566_v10 = vld [vmem:[#allocation2 + $0x101] sm:$0xff]  ;;  %vm8583_vm15 = vcmp.lt.s32.totalorder %v1508_v54, 15 }
 0x1bc   : > { %7023 = vmatprep.mubr.msk.f32.mxu1 %vm702_vm1, %v8546_v57  ;;  %v2637_v33 = vsel %vm8252_vm3, %v2541_v41, 0.0  ;;  %v7604_v41 = vld [vmem:[%s9191_s5 + $0x18] sm:$0xff]  ;;  %vm9326_vm3 = vnez %v9240_v14 }
 0x1bd   : > { %v9327_v54 = vsel %vm9326_vm3, %v7845_v17, 0.0  ;;  %v9356_v14 = vld [vmem:[#allocation13_spill] sm:$0xff] }
 0x1be   : > { %6830 = vmatmul.mubr.msk.f32.gmra.mrb[94].mxu0 %vm702_vm1, %v8143_v24 }
 0x1bf   : > { %7024 = vmatmul.mubr.msk.f32.gmra.mrb[16].mxu1 %vm702_vm1, %v3888_v5  ;;  %6834 = vmatprep.mubr.msk.f32.mxu0 %vm702_vm1, %v2540_v52  ;;  %v3890_v5 = vsel %vm8572_vm0, %v8566_v10, 0.0 }
 0x1c0   : > { %7026 = vmatprep.mubr.msk.f32.mxu1 %vm702_vm1, %v8563_v3 }
 0x1c2   : > { %6835 = vmatmul.mubr.msk.f32.vlgmr.msra.gmra.mrb[64].mxu0 %vm702_vm1, %v2637_v33  ;;  %v2639_v33 = vsel %vm8285_vm5, %v8246_v35, 0.0  ;;  %v2641_v35 = vsel %vm8309_vm2, %v8278_v19, 0.0  ;;  %vm9328_vm5 = vnez %v9242_v23  ;;  %v2643_v19 = vsel %vm8332_vm4, %v8303_v63, 0.0 }
 0x1c3   : > { %6837 = vmatprep.mubr.msk.f32.mxu0 %vm702_vm1, %v8244_v43  ;;  %7027 = vmatmul.mubr.msk.f32.gmra.mrb[18].mxu1 %vm702_vm1, %v3890_v5  ;;  %v3892_v43 = vsel %vm8583_vm15, %v3860_v61, 0.0  ;;  %v8612_v5 = vld [vmem:[%s9191_s5 + $0x40] sm:$0xff]  ;;  %v9329_v17 = vsel %vm9328_vm5, %v7861_v26, 0.0  ;;  %vm9330_vm2 = vnez %v9244_v34  ;;  %vm9332_vm4 = vnez %v9246_v45  ;;  %v4668_v45 = vld [vmem:[#allocation2 + $0x30] sm:$0xff] }
 0x1c4   : > { %7029 = vmatprep.mubr.msk.f32.mxu1 %vm702_vm1, %v3859_v40  ;;  %6883 = vmatpush3.msra.mxu0 %v7604_v41  ;;  %v9331_v26 = vsel %vm9330_vm2, %v7878_v36, 0.0  ;;  %v9333_v36 = vsel %vm9332_vm4, %v7894_v46, 0.0  ;;  %v9334_v46 = vld [vmem:[#allocation15_spill] sm:$0xff]  ;;  %v2649_v41 = vsel %vm8398_vm8, %v8372_v62, 0.0 }
 0x1c6   : > { %6838 = vmatmul.mubr.msk.f32.gmra.mrb[66].mxu0 %vm702_vm1, %v2639_v33 }
 0x1c7   : > { %6840 = vmatprep.mubr.msk.f32.mxu0 %vm702_vm1, %v8272_v20  ;;  %7030 = vmatmul.mubr.msk.f32.gmra.mrb[20].mxu1 %vm702_vm1, %v3892_v43 }
 0x1c8   : > { %7034 = vmatprep.mubr.msk.f32.mxu1 %vm702_vm1, %v9327_v54 }
 0x1ca   : > { %6841 = vmatmul.mubr.msk.f32.gmra.mrb[68].mxu0 %vm702_vm1, %v2641_v35 }
 0x1cb   : > { %6843 = vmatprep.mubr.msk.f32.mxu0 %vm702_vm1, %v8301_v7  ;;  %7035 = vmatmul.mubr.msk.f32.vlgmr.msra.gmra.mrb[22].mxu1 %vm702_vm1, %v8250_v53  ;;  %v2645_v53 = vsel %vm8354_vm7, %v8326_v48, 0.0  ;;  %v2647_v7 = vsel %vm8376_vm6, %v8350_v0, 0.0  ;;  %vm9335_vm7 = vnez %v9334_v46  ;;  %v4258_v0 = vld [vmem:[#allocation2 + $0x77] sm:$0xff] }
 0x1cc   : > { %7083 = vmatpush3.msra.mxu1 %v8268_v50  ;;  %7037 = vmatprep.mubr.msk.f32.mxu1 %vm702_vm1, %v9329_v17  ;;  %v8646_v50 = vld [vmem:[#allocation3] ss:$0 sm:$0xff]  ;;  %v9336_v17 = vld [vmem:[#allocation5_spill] sm:$0xff] }
 0x1cd   : > { %7132 = vmatprep.subr.mxu1 %v8612_v5  ;;  %vm9337_vm6 = vnez %v9336_v17 }
 0x1ce   : > { %6844 = vmatmul.mubr.msk.f32.gmra.mrb[70].mxu0 %vm702_vm1, %v2643_v19  ;;  %v4290_v19 = vsel %vm9337_vm6, %v4258_v0, 0.0  ;;  %v4262_v0 = vld [vmem:[#allocation2 + $0x97] sm:$0xff] }
 0x1cf   : > { %6846 = vmatprep.mubr.msk.f32.mxu0 %vm702_vm1, %v8324_v11  ;;  %7038 = vmatmul.mubr.msk.f32.gmra.mrb[24].mxu1 %vm702_vm1, %v8283_v13  ;;  %v4256_v13 = vld [vmem:[#allocation2 + $0x67] sm:$0xff] }
 0x1d0   : > { %7040 = vmatprep.mubr.msk.f32.mxu1 %vm702_vm1, %v9331_v26  ;;  %v4288_v48 = vsel %vm9335_vm7, %v4256_v13, 0.0  ;;  %v4260_v26 = vld [vmem:[#allocation2 + $0x87] sm:$0xff]  ;;  %v2651_v13 = vsel %vm8420_vm9, %v8394_v51, 0.0 }
 0x1d2   : > { %6847 = vmatmul.mubr.msk.f32.gmra.mrb[72].mxu0 %vm702_vm1, %v2645_v53 }
 0x1d3   : > { %6849 = vmatprep.mubr.msk.f32.mxu0 %vm702_vm1, %v8348_v21  ;;  %7041 = vmatmul.mubr.msk.f32.gmra.mrb[26].mxu1 %vm702_vm1, %v8307_v18 }
 0x1d4   : > { %7043 = vmatprep.mubr.msk.f32.mxu1 %vm702_vm1, %v9333_v36 }
 0x1d5   : > { %v6686_v20 = vpop.f32.mrb[32].mxu0 }
 0x1d6   : > { %v871_v63 = vadd.f32 %v6686_v20, %v8646_v50  ;;  %v865_v11 = vpop.f32.mrb[33].mxu0  ;;  %6850 = vmatmul.mubr.msk.f32.gmra.mrb[74].mxu0 %vm702_vm1, %v2647_v7 }
 0x1d7   : > { %v866_v18 = vadd.f32 %v8646_v50, %v865_v11  ;;  %6852 = vmatprep.mubr.msk.f32.mxu0 %vm702_vm1, %v8370_v12  ;;  %7044 = vmatmul.mubr.msk.f32.gmra.mrb[28].mxu1 %vm702_vm1, %v8330_v42  ;;  %v4257_v42 = vld [vmem:[#allocation2 + $0x6f] sm:$0xff] }
 0x1d8   : > { %v1025_v21 = vsub.f32 0.0, %v871_v63  ;;  %7046 = vmatprep.mubr.msk.f32.mxu1 %vm702_vm1, %v4288_v48  ;;  %v4259_v63 = vld [vmem:[#allocation2 + $0x7f] sm:$0xff]  ;;  %v9338_v48 = vld [vmem:[#allocation4_spill] sm:$0xff] }
 0x1d9   : > { %v1024_v40 = vsub.f32 0.0, %v866_v18  ;;  %v6689_v61 = vpop.f32.mrb[34].mxu0  ;;  %vm9339_vm6 = vnez %v9338_v48  ;;  %v9342_v48 = vld [vmem:[#allocation7_spill] sm:$0xff] }
 0x1da   : > { %v1058_v33 = vmul.f32 1.442695, %v1025_v21  ;;  %v881_v43 = vadd.f32 %v6689_v61, %v8646_v50  ;;  %v875_v12 = vpop.f32.mrb[35].mxu0  ;;  %6853 = vmatmul.mubr.msk.f32.gmra.mrb[76].mxu0 %vm702_vm1, %v2649_v41  ;;  %v4292_v21 = vsel %vm9339_vm6, %v4260_v26, 0.0  ;;  %v2653_v41 = vsel %vm8442_vm10, %v8416_v4, 0.0 }
 0x1db   : > { %v1056_v54 = vmul.f32 1.442695, %v1024_v40  ;;  %v876_v35 = vadd.f32 %v8646_v50, %v875_v12  ;;  %6855 = vmatprep.mubr.msk.f32.mxu0 %vm702_vm1, %v8392_v1  ;;  %7047 = vmatmul.mubr.msk.f32.gmra.mrb[30].mxu1 %vm702_vm1, %v4257_v42  ;;  %v4261_v12 = vld [vmem:[#allocation2 + $0x8f] sm:$0xff] }
 0x1dc   : > { %7476 = vpow2.f32 %v1058_v33  ;;  %v1027_v62 = vsub.f32 0.0, %v881_v43  ;;  %7049 = vmatprep.mubr.msk.f32.mxu1 %vm702_vm1, %v4290_v19  ;;  %v4264_v19 = vld [vmem:[#allocation2 + $0xa7] sm:$0xff] }
 0x1dd   : > { %7478 = vpow2.f32 %v1056_v54  ;;  %v1026_v53 = vsub.f32 0.0, %v876_v35  ;;  %v6692_v36 = vpop.f32.mrb[36].mxu0  ;;  %v9340_v35 = vld [vmem:[#allocation6_spill] sm:$0xff] }
 0x1de   : > { %v1062_v20 = vmul.f32 1.442695, %v1027_v62  ;;  %v891_v1 = vadd.f32 %v6692_v36, %v8646_v50  ;;  %v885_v7 = vpop.f32.mrb[37].mxu0  ;;  %6856 = vmatmul.mubr.msk.f32.gmra.mrb[78].mxu0 %vm702_vm1, %v2651_v13  ;;  %vm9341_vm6 = vnez %v9340_v35 }
 0x1df   : > { %v1060_v11 = vmul.f32 1.442695, %v1026_v53  ;;  %v886_v18 = vadd.f32 %v8646_v50, %v885_v7  ;;  %6858 = vmatprep.mubr.msk.f32.mxu0 %vm702_vm1, %v8414_v28  ;;  %7050 = vmatmul.mubr.msk.f32.gmra.mrb[0].mxu1 %vm702_vm1, %v4259_v63  ;;  %v4294_v17 = vsel %vm9341_vm6, %v4262_v0, 0.0  ;;  %v2655_v53 = vsel %vm8464_vm11, %v8438_v16, 0.0 }
 0x1e0   : > { %7480 = vpow2.f32 %v1062_v20  ;;  %v1029_v51 = vsub.f32 0.0, %v891_v1  ;;  %7052 = vmatprep.mubr.msk.f32.mxu1 %vm702_vm1, %v4292_v21  ;;  %v4263_v1 = vld [vmem:[#allocation2 + $0x9f] sm:$0xff]  ;;  %vm9343_vm6 = vnez %v9342_v48  ;;  %v4266_v21 = vld [vmem:[#allocation2 + $0xb7] sm:$0xff] }
 0x1e1   : > { %7482 = vpow2.f32 %v1060_v11  ;;  %v1028_v40 = vsub.f32 0.0, %v886_v18  ;;  %v6695_v61 = vpop.f32.mrb[38].mxu0  ;;  %v4296_v16 = vsel %vm9343_vm6, %v4264_v19, 0.0 }
 0x1e2   : > { %v1066_v33 = vmul.f32 1.442695, %v1029_v51  ;;  %v901_v28 = vadd.f32 %v6695_v61, %v8646_v50  ;;  %v895_v43 = vpop.f32.mrb[39].mxu0  ;;  %6859 = vmatmul.mubr.msk.f32.gmra.mrb[80].mxu0 %vm702_vm1, %v2653_v41  ;;  %v2657_v61 = vsel %vm8486_vm12, %v8460_v32, 0.0 }
 0x1e3   : > { %v1064_v42 = vmul.f32 1.442695, %v1028_v40  ;;  %v896_v54 = vadd.f32 %v8646_v50, %v895_v43  ;;  %6861 = vmatprep.mubr.msk.f32.mxu0 %vm702_vm1, %v8436_v37  ;;  %7053 = vmatmul.mubr.msk.f32.gmra.mrb[2].mxu1 %vm702_vm1, %v4261_v12  ;;  %v4265_v12 = vld [vmem:[#allocation2 + $0xaf] sm:$0xff] }
 0x1e4   : > { %7484 = vpow2.f32 %v1066_v33  ;;  %v1031_v4 = vsub.f32 0.0, %v901_v28  ;;  %7055 = vmatprep.mubr.msk.f32.mxu1 %vm702_vm1, %v4294_v17 }
 0x1e5   : > { %7486 = vpow2.f32 %v1064_v42  ;;  %v1030_v62 = vsub.f32 0.0, %v896_v54  ;;  %v6698_v26 = vpop.f32.mrb[40].mxu0  ;;  %v9344_v42 = vld [vmem:[#allocation8_spill] sm:$0xff] }
 0x1e6   : > { %v7477_v36 = vpop.eup %7476  ;;  %v1070_v13 = vmul.f32 1.442695, %v1031_v4  ;;  %v911_v37 = vadd.f32 %v6698_v26, %v8646_v50  ;;  %v905_v20 = vpop.f32.mrb[41].mxu0  ;;  %6862 = vmatmul.mubr.msk.f32.gmra.mrb[82].mxu0 %vm702_vm1, %v2655_v53  ;;  %vm9345_vm6 = vnez %v9344_v42 }
 0x1e7   : > { %v7479_v7 = vpop.eup %7478  ;;  %v1121_v63 = vadd.f32 1.0, %v7477_v36  ;;  %v1068_v11 = vmul.f32 1.442695, %v1030_v62  ;;  %v906_v18 = vadd.f32 %v8646_v50, %v905_v20  ;;  %6864 = vmatprep.mubr.msk.f32.mxu0 %vm702_vm1, %v8458_v59  ;;  %7056 = vmatmul.mubr.msk.f32.gmra.mrb[4].mxu1 %vm702_vm1, %v4263_v1  ;;  %v4298_v54 = vsel %vm9345_vm6, %v4266_v21, 0.0  ;;  %v4268_v62 = vld [vmem:[#allocation2 + $0xc7] sm:$0xff] }
 0x1e8   : > { %7488 = vpow2.f32 %v1070_v13  ;;  %v1033_v51 = vsub.f32 0.0, %v911_v37  ;;  %7058 = vmatprep.mubr.msk.f32.mxu1 %vm702_vm1, %v4296_v16  ;;  %v1120_v33 = vadd.f32 1.0, %v7479_v7  ;;  %v2659_v13 = vsel %vm8508_vm13, %v8482_v49, 0.0  ;;  %v4267_v7 = vld [vmem:[#allocation2 + $0xbf] sm:$0xff]  ;;  %v4270_v16 = vld [vmem:[#allocation2 + $0xd7] sm:$0xff] }
 0x1e9   : > { %7490 = vrcp.f32 %v1121_v63  ;;  %v1032_v0 = vsub.f32 0.0, %v906_v18  ;;  %v6701_v40 = vpop.f32.mrb[42].mxu0  ;;  %v9346_v49 = vld [vmem:[#allocation9_spill] sm:$0xff] }
 0x1ea   : > { %v7481_v41 = vpop.eup %7480  ;;  %v1074_v59 = vmul.f32 1.442695, %v1033_v51  ;;  %v921_v28 = vadd.f32 %v6701_v40, %v8646_v50  ;;  %v915_v43 = vpop.f32.mrb[43].mxu0  ;;  %6865 = vmatmul.mubr.msk.f32.gmra.mrb[84].mxu0 %vm702_vm1, %v2657_v61  ;;  %7492 = vpow2.f32 %v1068_v11  ;;  %vm9347_vm6 = vnez %v9346_v49 }
 0x1eb   : > { %v7483_v35 = vpop.eup %7482  ;;  %v1123_v17 = vadd.f32 1.0, %v7481_v41  ;;  %v1072_v4 = vmul.f32 1.442695, %v1032_v0  ;;  %v916_v19 = vadd.f32 %v8646_v50, %v915_v43  ;;  %6867 = vmatprep.mubr.msk.f32.mxu0 %vm702_vm1, %v8480_v9  ;;  %7059 = vmatmul.mubr.msk.f32.gmra.mrb[6].mxu1 %vm702_vm1, %v4265_v12  ;;  %v4300_v48 = vsel %vm9347_vm6, %v4268_v62, 0.0  ;;  %v4269_v43 = vld [vmem:[#allocation2 + $0xcf] sm:$0xff]  ;;  %v9348_v12 = vld [vmem:[#allocation10_spill] sm:$0xff] }
 0x1ec   : > { %7494 = vpow2.f32 %v1074_v59  ;;  %v1035_v32 = vsub.f32 0.0, %v921_v28  ;;  %7061 = vmatprep.mubr.msk.f32.mxu1 %vm702_vm1, %v4298_v54  ;;  %v1122_v26 = vadd.f32 1.0, %v7483_v35  ;;  %v2661_v41 = vsel %vm8530_vm14, %v8504_v8, 0.0  ;;  %v4272_v54 = vld [vmem:[#allocation2 + $0xe7] sm:$0xff] }
 0x1ed   : > { %7496 = vrcp.f32 %v1123_v17  ;;  %v1034_v53 = vsub.f32 0.0, %v916_v19  ;;  %v6704_v36 = vpop.f32.mrb[44].mxu0  ;;  %vm9349_vm6 = vnez %v9348_v12 }
 0x1ee   : > { %v7485_v37 = vpop.eup %7484  ;;  %7498 = vrcp.f32 %v1120_v33  ;;  %v1078_v20 = vmul.f32 1.442695, %v1035_v32  ;;  %v931_v9 = vadd.f32 %v6704_v36, %v8646_v50  ;;  %v925_v1 = vpop.f32.mrb[45].mxu0  ;;  %6868 = vmatmul.mubr.msk.f32.gmra.mrb[86].mxu0 %vm702_vm1, %v2659_v13  ;;  %v4302_v42 = vsel %vm9349_vm6, %v4270_v16, 0.0  ;;  %v9352_v13 = vld [vmem:[#allocation11_spill] sm:$0xff] }
 0x1ef   : > { %v7487_v63 = vpop.eup %7486  ;;  %7500 = vpow2.f32 %v1072_v4  ;;  %v1076_v11 = vmul.f32 1.442695, %v1034_v53  ;;  %v926_v18 = vadd.f32 %v8646_v50, %v925_v1  ;;  %6870 = vmatprep.mubr.msk.f32.mxu0 %vm702_vm1, %v8502_v22  ;;  %7062 = vmatmul.mubr.msk.f32.gmra.mrb[8].mxu1 %vm702_vm1, %v4267_v7  ;;  %v1125_v0 = vadd.f32 1.0, %v7485_v37  ;;  %v9350_v53 = vld [vmem:[#allocation16_spill] sm:$0xff] }
 0x1f0   : > { %v1124_v21 = vadd.f32 1.0, %v7487_v63  ;;  %7502 = vpow2.f32 %v1078_v20  ;;  %v1037_v51 = vsub.f32 0.0, %v931_v9  ;;  %7064 = vmatprep.mubr.msk.f32.mxu1 %vm702_vm1, %v4300_v48  ;;  %vm9351_vm6 = vnez %v9321_v30  ;;  %v4271_v63 = vld [vmem:[#allocation2 + $0xdf] sm:$0xff] }
 0x1f1   : > { %7504 = vrcp.f32 %v1122_v26  ;;  %v1036_v40 = vsub.f32 0.0, %v926_v18  ;;  %v6707_v61 = vpop.f32.mrb[46].mxu0  ;;  %v2663_v36 = vsel %vm9351_vm6, %v9350_v53, 0.0  ;;  %vm9353_vm14 = vnez %v9352_v13 }
 0x1f2   : > { %v7489_v22 = vpop.eup %7488  ;;  %7506 = vrcp.f32 %v1124_v21  ;;  %v1082_v33 = vmul.f32 1.442695, %v1037_v51  ;;  %v941_v59 = vadd.f32 %v6707_v61, %v8646_v50  ;;  %v935_v28 = vpop.f32.mrb[47].mxu0  ;;  %6871 = vmatmul.mubr.msk.f32.gmra.mrb[88].mxu0 %vm702_vm1, %v2661_v41  ;;  %v4304_v37 = vsel %vm9353_vm14, %v4272_v54, 0.0  ;;  %v3023_v54 = vld [vmem:[#allocation2 + $0x17] sm:$0xff] }
 0x1f3   : > { %v7491_v35 = vpop.eup %7490  ;;  %v1127_v17 = vadd.f32 1.0, %v7489_v22  ;;  %7508 = vpow2.f32 %v1076_v11  ;;  %v1080_v4 = vmul.f32 1.442695, %v1036_v40  ;;  %v936_v19 = vadd.f32 %v8646_v50, %v935_v28  ;;  %6873 = vmatprep.mubr.msk.f32.mxu0 %vm702_vm1, %v8524_v39  ;;  %7065 = vmatmul.mubr.msk.f32.gmra.mrb[10].mxu1 %vm702_vm1, %v4269_v43  ;;  %v4274_v11 = vld [vmem:[#allocation2 + $0xf7] sm:$0xff] }
 0x1f4   : > { %7510 = vpow2.f32 %v1082_v33  ;;  %v1039_v8 = vsub.f32 0.0, %v941_v59  ;;  %7067 = vmatprep.mubr.msk.f32.mxu1 %vm702_vm1, %v4302_v42  ;;  %5519 = vperm.xlu0 %7474, %v7491_v35   ;;  %v7493_v32 = vpop.eup %7492  ;;  %v2665_v41 = vsel %vm8572_vm0, %v8548_v60, 0.0  ;;  %v9354_v22 = vld [vmem:[#allocation12_spill] sm:$0xff] }
 0x1f5   : > { %7512 = vrcp.f32 %v1125_v0  ;;  %v1038_v62 = vsub.f32 0.0, %v936_v19  ;;  %v6710_v26 = vpop.f32.mrb[48].mxu0  ;;  %v1126_v39 = vadd.f32 1.0, %v7493_v32  ;;  %vm9355_vm14 = vnez %v9354_v22  ;;  %v4273_v42 = vld [vmem:[#allocation2 + $0xef] sm:$0xff]  ;;  %v4276_v32 = vld [vmem:[#allocation2 + $0x107] sm:$0xff] }
 0x1f6   : > { %v7495_v20 = vpop.eup %7494  ;;  %7514 = vpow2.f32 %v1080_v4  ;;  %v1086_v9 = vmul.f32 1.442695, %v1039_v8  ;;  %v951_v1 = vadd.f32 %v6710_v26, %v8646_v50  ;;  %v945_v7 = vpop.f32.mrb[49].mxu0  ;;  %6874 = vmatmul.mubr.msk.f32.gmra.mrb[90].mxu0 %vm702_vm1, %v2663_v36  ;;  %v2667_v36 = vsel %vm8583_vm15, %v8566_v10, 0.0 }
 0x1f7   : > { %v7497_v18 = vpop.eup %7496  ;;  %7516 = vrcp.f32 %v1127_v17  ;;  %v1129_v49 = vadd.f32 1.0, %v7495_v20  ;;  %v1084_v48 = vmul.f32 1.442695, %v1038_v62  ;;  %v946_v16 = vadd.f32 %v8646_v50, %v945_v7  ;;  %6876 = vmatprep.mubr.msk.f32.mxu0 %vm702_vm1, %v8546_v57  ;;  %7068 = vmatmul.mubr.msk.f32.gmra.mrb[12].mxu1 %vm702_vm1, %v4271_v63 }
 0x1f8   : > { %v7499_v21 = vpop.eup %7498  ;;  %7518 = vrcp.f32 %v1126_v39  ;;  %v1041_v51 = vsub.f32 0.0, %v951_v1  ;;  %7070 = vmatprep.mubr.msk.f32.mxu1 %vm702_vm1, %v4304_v37  ;;  %5529 = vperm.xlu1 %7475, %v7497_v18   ;;  %v4306_v57 = vsel %vm9355_vm14, %v4274_v11, 0.0  ;;  %v4275_v1 = vld [vmem:[#allocation2 + $0xff] sm:$0xff]  ;;  %v3025_v18 = vld [vmem:[#allocation2 + $0x27] sm:$0xff] }
 0x1f9   : > { %v7501_v0 = vpop.eup %7500  ;;  %7520 = vrcp.f32 %v1129_v49  ;;  %v1040_v40 = vsub.f32 0.0, %v946_v16  ;;  %5514 = vperm.xlu0 %7474, %v7499_v21   ;;  %v6713_v61 = vpop.f32.mrb[50].mxu0 }
 0x1fa   : > { %v7503_v33 = vpop.eup %7502  ;;  %v1128_v59 = vadd.f32 1.0, %v7501_v0  ;;  %7522 = vpow2.f32 %v1086_v9  ;;  %v1090_v28 = vmul.f32 1.442695, %v1041_v51  ;;  %v961_v43 = vadd.f32 %v6713_v61, %v8646_v50  ;;  %v955_v12 = vpop.f32.mrb[51].mxu0  ;;  %6877 = vmatmul.mubr.msk.f32.gmra.mrb[92].mxu0 %vm702_vm1, %v2665_v41  ;;  %v3024_v61 = vld [vmem:[#allocation2 + $0x1f] sm:$0xff]  ;;  %v4278_v41 = vld [vmem:[#allocation2 + $0x117] sm:$0xff] }
 0x1fb   : > { %v7505_v35 = vpop.eup %7504  ;;  %v1131_v17 = vadd.f32 1.0, %v7503_v33  ;;  %7524 = vpow2.f32 %v1084_v48  ;;  %v1088_v4 = vmul.f32 1.442695, %v1040_v40  ;;  %v956_v60 = vadd.f32 %v8646_v50, %v955_v12  ;;  %6879 = vmatprep.mubr.msk.f32.mxu0 %vm702_vm1, %v8563_v3  ;;  %7071 = vmatmul.mubr.msk.f32.gmra.mrb[14].mxu1 %vm702_vm1, %v4273_v42 }
 0x1fc   : > { %v7507_v19 = vpop.eup %7506  ;;  %7526 = vrcp.f32 %v1128_v59  ;;  %v1043_v8 = vsub.f32 0.0, %v961_v43  ;;  %7073 = vmatprep.mubr.msk.f32.mxu1 %vm702_vm1, %v4306_v57  ;;  %5524 = vperm.xlu1 %7475, %v7505_v35   ;;  %v3055_v3 = vsel %vm9326_vm3, %v3023_v54, 0.0  ;;  %vm9357_vm3 = vnez %v9356_v14  ;;  %v3027_v43 = vld [vmem:[#allocation2 + $0x37] sm:$0xff]  ;;  %v4277_v35 = vld [vmem:[#allocation2 + $0x10f] sm:$0xff] }
 0x1fd   : > { %v7509_v62 = vpop.eup %7508  ;;  %7528 = vrcp.f32 %v1131_v17  ;;  %v1042_v26 = vsub.f32 0.0, %v956_v60  ;;  %v6716_v53 = vpop.f32.mrb[52].mxu0  ;;  %5534 = vperm.xlu0 %7474, %v7507_v19   ;;  %v4308_v10 = vsel %vm9357_vm3, %v4276_v32, 0.0  ;;  %v9358_v60 = vld [vmem:[#allocation14_spill] sm:$0xff]  ;;  %vm9364_vm3 = vnez %v9293_v58  ;;  %v5068_v58 = vld [vmem:[#allocation2 + $0x99] sm:$0xff] }
 0x1fe   : > { %v7511_v13 = vpop.eup %7510  ;;  %v1130_v37 = vadd.f32 1.0, %v7509_v62  ;;  %7530 = vpow2.f32 %v1090_v28  ;;  %v1094_v20 = vmul.f32 1.442695, %v1043_v8  ;;  %v971_v39 = vadd.f32 %v6716_v53, %v8646_v50  ;;  %v965_v9 = vpop.f32.mrb[53].mxu0  ;;  %6880 = vmatmul.mubr.msk.f32.gmra.mrb[94].mxu0 %vm702_vm1, %v2667_v36  ;;  %v4279_v36 = vld [vmem:[#allocation2 + $0x11f] sm:$0xff]  ;;  %v4667_v14 = vld [vmem:[#allocation2 + $0x28] sm:$0xff] }
 0x1ff   : > { %v7513_v7 = vpop.eup %7512  ;;  %v1133_v63 = vadd.f32 1.0, %v7511_v13  ;;  %7532 = vpow2.f32 %v1088_v4  ;;  %v966_v11 = vadd.f32 %v8646_v50, %v965_v9  ;;  %6884 = vmatprep.mubr.msk.f32.mxu0 %vm702_vm1, %v3055_v3  ;;  %7074 = vmatmul.mubr.msk.f32.gmra.mrb[16].mxu1 %vm702_vm1, %v4275_v1  ;;  %v1092_v48 = vmul.f32 1.442695, %v1042_v26  ;;  %v3026_v26 = vld [vmem:[#allocation2 + $0x2f] sm:$0xff]  ;;  %v3029_v9 = vld [vmem:[#allocation2 + $0x47] sm:$0xff] }
 0x200   : > { %v7515_v49 = vpop.eup %7514  ;;  %7534 = vrcp.f32 %v1130_v37  ;;  %v1045_v16 = vsub.f32 0.0, %v971_v39  ;;  %7076 = vmatprep.mubr.msk.f32.mxu1 %vm702_vm1, %v4308_v10  ;;  %5539 = vperm.xlu1 %7475, %v7513_v7   ;;  %v3057_v28 = vsel %vm9328_vm5, %v3025_v18, 0.0  ;;  %vm9359_vm14 = vnez %v9358_v60 }
 0x201   : > { %v7517_v21 = vpop.eup %7516  ;;  %7536 = vrcp.f32 %v1133_v63  ;;  %v1132_v51 = vadd.f32 1.0, %v7515_v49  ;;  %v1044_v0 = vsub.f32 0.0, %v966_v11  ;;  %v6719_v40 = vpop.f32.mrb[54].mxu0  ;;  %v4310_v19 = vsel %vm9359_vm14, %v4278_v41, 0.0 }
 0x202   : > { %v7519_v22 = vpop.eup %7518  ;;  %7538 = vpow2.f32 %v1094_v20  ;;  %v1098_v57 = vmul.f32 1.442695, %v1045_v16  ;;  %v981_v33 = vadd.f32 %v6719_v40, %v8646_v50  ;;  %v975_v59 = vpop.f32.mrb[55].mxu0  ;;  %6885 = vmatmul.mubr.msk.f32.vlgmr.msra.gmra.mrb[64].mxu0 %vm702_vm1, %v3024_v61  ;;  %v3059_v53 = vsel %vm9330_vm2, %v3027_v43, 0.0  ;;  %v3028_v16 = vld [vmem:[#allocation2 + $0x3f] sm:$0xff] }
 0x203   : > { %v7521_v12 = vpop.eup %7520  ;;  %7540 = vrcp.f32 %v1132_v51  ;;  %v1096_v42 = vmul.f32 1.442695, %v1044_v0  ;;  %5544 = vperm.xlu0 %7474, %v7519_v22   ;;  %v976_v54 = vadd.f32 %v8646_v50, %v975_v59  ;;  %6887 = vmatprep.mubr.msk.f32.mxu0 %vm702_vm1, %v3057_v28  ;;  %v3031_v22 = vld [vmem:[#allocation2 + $0x57] sm:$0xff]  ;;  %vm9360_vm2 = vnez %v9281_v38 }
 0x204   : > { %v7523_v17 = vpop.eup %7522  ;;  %7542 = vpow2.f32 %v1092_v48  ;;  %v1047_v4 = vsub.f32 0.0, %v981_v33  ;;  %7077 = vmatmul.mubr.msk.f32.gmra.mrb[18].mxu1 %vm702_vm1, %v4277_v35  ;;  %5549 = vperm.xlu1 %7475, %v7517_v21   ;;  %v3061_v21 = vsel %vm9332_vm4, %v3029_v9, 0.0  ;;  %vm9361_vm4 = vnez %v9286_v56  ;;  %v5060_v38 = vld [vmem:[#allocation2 + $0x59] sm:$0xff]  ;;  %v5062_v56 = vld [vmem:[#allocation2 + $0x69] sm:$0xff] }
 0x205   : > { %v7525_v23 = vpop.eup %7524  ;;  %v1135_v8 = vadd.f32 1.0, %v7523_v17  ;;  %7544 = vpow2.f32 %v1098_v57  ;;  %v1046_v32 = vsub.f32 0.0, %v976_v54  ;;  %7079 = vmatprep.mubr.msk.f32.mxu1 %vm702_vm1, %v4310_v19  ;;  %v6722_v62 = vpop.f32.mrb[56].mxu0  ;;  %v3030_v17 = vld [vmem:[#allocation2 + $0x4f] sm:$0xff]  ;;  %vm9362_vm5 = vnez %v9288_v44  ;;  %v5064_v44 = vld [vmem:[#allocation2 + $0x79] sm:$0xff] }
 0x206   : > { %v7527_v3 = vpop.eup %7526  ;;  %v1134_v13 = vadd.f32 1.0, %v7525_v23  ;;  %7546 = vpow2.f32 %v1096_v42  ;;  %v1102_v37 = vmul.f32 1.442695, %v1047_v4  ;;  %v991_v20 = vadd.f32 %v6722_v62, %v8646_v50  ;;  %v985_v39 = vpop.f32.mrb[57].mxu0  ;;  %6888 = vmatmul.mubr.msk.f32.gmra.mrb[66].mxu0 %vm702_vm1, %v3026_v26 }
 0x207   : > { %v7529_v1 = vpop.eup %7528  ;;  %7548 = vrcp.f32 %v1135_v8  ;;  %v1100_v7 = vmul.f32 1.442695, %v1046_v32  ;;  %5554 = vperm.xlu0 %7474, %v7527_v3   ;;  %v986_v63 = vadd.f32 %v8646_v50, %v985_v39  ;;  %6890 = vmatprep.mubr.msk.f32.mxu0 %vm702_vm1, %v3059_v53  ;;  %v3063_v4 = vsel %vm9335_vm7, %v3031_v22, 0.0  ;;  %v4670_v53 = vld [vmem:[#allocation2 + $0x40] sm:$0xff] }
 0x208   : > { %v7531_v34 = vpop.eup %7530  ;;  %7550 = vrcp.f32 %v1134_v13  ;;  %v1049_v11 = vsub.f32 0.0, %v991_v20  ;;  %7080 = vmatmul.mubr.msk.f32.gmra.mrb[20].mxu1 %vm702_vm1, %v4279_v36  ;;  %5559 = vperm.xlu1 %7475, %v7521_v12   ;;  %v4669_v12 = vld [vmem:[#allocation2 + $0x38] sm:$0xff]  ;;  %v4671_v13 = vld [vmem:[#allocation2 + $0x48] sm:$0xff]  ;;  %vm9363_vm7 = vnez %v9290_v27  ;;  %vm9365_vm14 = vnez %v9296_v2 }
 0x209   : > { %v7533_v10 = vpop.eup %7532  ;;  %v1137_v18 = vadd.f32 1.0, %v7531_v34  ;;  %7552 = vpow2.f32 %v1102_v37  ;;  %v1048_v49 = vsub.f32 0.0, %v986_v63  ;;  %7084 = vmatprep.mubr.msk.f32.mxu1 %vm702_vm1, %v4667_v14  ;;  %v6725_v48 = vpop.f32.mrb[58].mxu0  ;;  %v5066_v27 = vld [vmem:[#allocation2 + $0x89] sm:$0xff] }
 0x20a   : > { %v7535_v51 = vpop.eup %7534  ;;  %v1136_v0 = vadd.f32 1.0, %v7533_v10  ;;  %7554 = vpow2.f32 %v1100_v7  ;;  %v1106_v40 = vmul.f32 1.442695, %v1049_v11  ;;  %v1001_v61 = vadd.f32 %v6725_v48, %v8646_v50  ;;  %v995_v41 = vpop.f32.mrb[59].mxu0  ;;  %6891 = vmatmul.mubr.msk.f32.gmra.mrb[68].mxu0 %vm702_vm1, %v3028_v16  ;;  %v5070_v2 = vld [vmem:[#allocation2 + $0xa9] sm:$0xff] }
 0x20b   : > { %v7537_v57 = vpop.eup %7536  ;;  %7556 = vrcp.f32 %v1137_v18  ;;  %v1104_v33 = vmul.f32 1.442695, %v1048_v49  ;;  %5564 = vperm.xlu0 %7474, %v7535_v51   ;;  %v996_v59 = vadd.f32 %v8646_v50, %v995_v41  ;;  %6893 = vmatprep.mubr.msk.f32.mxu0 %vm702_vm1, %v3061_v21  ;;  %v4672_v49 = vld [vmem:[#allocation2 + $0x50] sm:$0xff]  ;;  %v4673_v51 = vld [vmem:[#allocation2 + $0x58] sm:$0xff] }
 0x20c   : > { %v7539_v28 = vpop.eup %7538  ;;  %7558 = vrcp.f32 %v1136_v0  ;;  %v1051_v43 = vsub.f32 0.0, %v1001_v61  ;;  %7085 = vmatmul.mubr.msk.f32.vlgmr.msra.gmra.mrb[22].mxu1 %vm702_vm1, %v4668_v45  ;;  %5569 = vperm.xlu1 %7475, %v7529_v1   ;;  %v3032_v1 = vld [vmem:[#allocation2 + $0x5f] sm:$0xff] }
 0x20d   : > { %v7541_v42 = vpop.eup %7540  ;;  %7560 = vpow2.f32 %v1106_v40  ;;  %v1050_v54 = vsub.f32 0.0, %v996_v59  ;;  %7133 = vmatpush3.msra.mxu1 %v8612_v5  ;;  %7087 = vmatprep.mubr.msk.f32.mxu1 %vm702_vm1, %v4669_v12  ;;  %v6728_v35 = vpop.f32.mrb[60].mxu0  ;;  %v1139_v19 = vadd.f32 1.0, %v7539_v28  ;;  %v4675_v28 = vld [vmem:[#allocation2 + $0x68] sm:$0xff] }
 0x20e   : > { %v7543_v60 = vpop.eup %7542  ;;  %7562 = vpow2.f32 %v1104_v33  ;;  %v1110_v23 = vmul.f32 1.442695, %v1051_v43  ;;  %v1011_v8 = vadd.f32 %v6728_v35, %v8646_v50  ;;  %v1005_v32 = vpop.f32.mrb[61].mxu0  ;;  %6894 = vmatmul.mubr.msk.f32.gmra.mrb[70].mxu0 %vm702_vm1, %v3030_v17  ;;  %v4674_v33 = vld [vmem:[#allocation2 + $0x60] sm:$0xff]  ;;  %v4676_v35 = vld [vmem:[#allocation2 + $0x70] sm:$0xff] }
 0x20f   : > { %v7545_v62 = vpop.eup %7544  ;;  %v1138_v26 = vadd.f32 1.0, %v7543_v60  ;;  %5574 = vperm.xlu0 %7474, %v7541_v42   ;;  %v1006_v5 = vadd.f32 %v8646_v50, %v1005_v32  ;;  %6896 = vmatprep.mubr.msk.f32.mxu0 %vm702_vm1, %v3063_v4  ;;  %v1108_v46 = vmul.f32 1.442695, %v1050_v54  ;;  %v4677_v4 = vld [vmem:[#allocation2 + $0x78] sm:$0xff] }
 0x210   : > { %v7547_v36 = vpop.eup %7546  ;;  %7564 = vpow2.f32 %v1110_v23  ;;  %v1053_v3 = vsub.f32 0.0, %v1011_v8  ;;  %7088 = vmatmul.mubr.msk.f32.gmra.mrb[24].mxu1 %vm702_vm1, %v4670_v53  ;;  %5579 = vperm.xlu1 %7475, %v7537_v57   ;;  %v1141_v63 = vadd.f32 1.0, %v7545_v62  ;;  %v4678_v62 = vld [vmem:[#allocation2 + $0x80] sm:$0xff] }
 0x211   : > { %v7549_v37 = vpop.eup %7548  ;;  %7566 = vrcp.f32 %v1138_v26  ;;  %v1140_v20 = vadd.f32 1.0, %v7547_v36  ;;  %v1052_v39 = vsub.f32 0.0, %v1006_v5  ;;  %7090 = vmatprep.mubr.msk.f32.mxu1 %vm702_vm1, %v4671_v13  ;;  %v6731_v9 = vpop.f32.mrb[62].mxu0  ;;  %v4679_v5 = vld [vmem:[#allocation2 + $0x88] sm:$0xff] }
 0x212   : > { %v7551_v7 = vpop.eup %7550  ;;  %7568 = vrcp.f32 %v1139_v19  ;;  %v1114_v34 = vmul.f32 1.442695, %v1053_v3  ;;  %v1021_v11 = vadd.f32 %v6731_v9, %v8646_v50  ;;  %v1015_v14 = vpop.f32.mrb[63].mxu0  ;;  %6897 = vmatmul.mubr.msk.f32.gmra.mrb[72].mxu0 %vm702_vm1, %v3032_v1 }
 0x213   : > { %v7553_v10 = vpop.eup %7552  ;;  %7570 = vrcp.f32 %v1140_v20  ;;  %5584 = vperm.xlu0 %7474, %v7551_v7   ;;  %v1016_v18 = vadd.f32 %v8646_v50, %v1015_v14  ;;  %v1112_v16 = vmul.f32 1.442695, %v1052_v39  ;;  %v4681_v39 = vld [vmem:[#allocation2 + $0x98] sm:$0xff]  ;;  %v4683_v14 = vld [vmem:[#allocation2 + $0xa8] sm:$0xff] }
 0x214   : > { %v7555_v48 = vpop.eup %7554  ;;  %7572 = vpow2.f32 %v1108_v46  ;;  %v1055_v21 = vsub.f32 0.0, %v1021_v11  ;;  %7091 = vmatmul.mubr.msk.f32.gmra.mrb[26].mxu1 %vm702_vm1, %v4672_v49  ;;  %5589 = vperm.xlu1 %7475, %v7549_v37   ;;  %v1143_v22 = vadd.f32 1.0, %v7553_v10  ;;  %v4680_v37 = vld [vmem:[#allocation2 + $0x90] sm:$0xff] }
 0x215   : > { %v7557_v0 = vpop.eup %7556  ;;  %v1142_v40 = vadd.f32 1.0, %v7555_v48  ;;  %7574 = vpow2.f32 %v1114_v34  ;;  %v1054_v61 = vsub.f32 0.0, %v1016_v18  ;;  %7093 = vmatprep.mubr.msk.f32.mxu1 %vm702_vm1, %v4673_v51  ;;  %v4682_v34 = vld [vmem:[#allocation2 + $0xa0] sm:$0xff]  ;;  %v4684_v18 = vld [vmem:[#allocation2 + $0xb0] sm:$0xff]  ;;  %v4685_v48 = vld [vmem:[#allocation2 + $0xb8] sm:$0xff] }
 0x216   : > { %v7559_v41 = vpop.eup %7558  ;;  %7576 = vrcp.f32 %v1141_v63  ;;  %v1118_v57 = vmul.f32 1.442695, %v1055_v21  ;;  %v4686_v21 = vld [vmem:[#allocation2 + $0xc0] sm:$0xff] }
 0x217   : > { %v7561_v50 = vpop.eup %7560  ;;  %7578 = vrcp.f32 %v1142_v40  ;;  %5594 = vperm.xlu0 %7474, %v7559_v41   ;;  %v1116_v45 = vmul.f32 1.442695, %v1054_v61  ;;  %v4688_v61 = vld [vmem:[#allocation2 + $0xd0] sm:$0xff] }
 0x218   : > { %v7563_v59 = vpop.eup %7562  ;;  %7580 = vpow2.f32 %v1112_v16  ;;  %7094 = vmatmul.mubr.msk.f32.gmra.mrb[28].mxu1 %vm702_vm1, %v4674_v33  ;;  %5599 = vperm.xlu1 %7475, %v7557_v0   ;;  %v1145_v42 = vadd.f32 1.0, %v7561_v50  ;;  %v4687_v0 = vld [vmem:[#allocation2 + $0xc8] sm:$0xff]  ;;  %v4692_v33 = vld [vmem:[#allocation2 + $0xf0] sm:$0xff] }
 0x219   : > { %v1144_v43 = vadd.f32 1.0, %v7563_v59  ;;  %7582 = vpow2.f32 %v1118_v57  ;;  %7096 = vmatprep.mubr.msk.f32.mxu1 %vm702_vm1, %v4675_v28  ;;  %v4690_v57 = vld [vmem:[#allocation2 + $0xe0] sm:$0xff]  ;;  %v4691_v50 = vld [vmem:[#allocation2 + $0xe8] sm:$0xff]  ;;  %v4693_v59 = vld [vmem:[#allocation2 + $0xf8] sm:$0xff] }
 0x21a   : > { %v7565_v12 = vpop.eup %7564  ;;  %7584 = vrcp.f32 %v1143_v22  ;;  %v4689_v22 = vld [vmem:[#allocation2 + $0xd8] sm:$0xff]  ;;  %v4695_v28 = vld [vmem:[#allocation2 + $0x108] sm:$0xff] }
 0x21b   : > { %v7567_v54 = vpop.eup %7566  ;;  %7586 = vrcp.f32 %v1144_v43  ;;  %v1147_v23 = vadd.f32 1.0, %v7565_v12  ;;  %v4697_v43 = vld [vmem:[#allocation2 + $0x118] sm:$0xff]  ;;  %v4696_v12 = vld [vmem:[#allocation2 + $0x110] sm:$0xff] }
 0x21c   : > { %v7569_v17 = vpop.eup %7568  ;;  %7588 = vpow2.f32 %v1116_v45  ;;  %5604 = vperm.xlu0 %7474, %v7567_v54   ;;  %7097 = vmatmul.mubr.msk.f32.gmra.mrb[30].mxu1 %vm702_vm1, %v4676_v35  ;;  %v4694_v45 = vld [vmem:[#allocation2 + $0x100] sm:$0xff]  ;;  %v5054_v54 = vld [vmem:[#allocation2 + $0x29] sm:$0xff]  ;;  %v5055_v35 = vld [vmem:[#allocation2 + $0x31] sm:$0xff] }
 0x21d   : > { %v7571_v60 = vpop.eup %7570  ;;  %7099 = vmatprep.mubr.msk.f32.mxu1 %vm702_vm1, %v4677_v4  ;;  %5609 = vperm.xlu1 %7475, %v7569_v17   ;;  %7590 = vrcp.f32 %v1145_v42  ;;  %v4698_v42 = vld [vmem:[#allocation2 + $0x120] sm:$0xff]  ;;  %v5087_v17 = vsel %vm9360_vm2, %v5055_v35, 0.0 }
 0x21e   : > { %v7573_v19 = vpop.eup %7572  ;;  %v5056_v4 = vld [vmem:[#allocation2 + $0x39] sm:$0xff] }
 0x21f   : > { %v7575_v8 = vpop.eup %7574  ;;  %v1146_v32 = vadd.f32 1.0, %v7573_v19 }
 0x220   : > { %v7577_v26 = vpop.eup %7576  ;;  %5614 = vperm.xlu0 %7474, %v7571_v60   ;;  %7100 = vmatmul.mubr.msk.f32.gmra.mrb[0].mxu1 %vm702_vm1, %v4678_v62  ;;  %v1149_v46 = vadd.f32 1.0, %v7575_v8  ;;  %v5057_v60 = vld [vmem:[#allocation2 + $0x41] sm:$0xff]  ;;  %v5059_v8 = vld [vmem:[#allocation2 + $0x51] sm:$0xff] }
 0x221   : > { %v7579_v53 = vpop.eup %7578  ;;  %7592 = vrcp.f32 %v1146_v32  ;;  %7102 = vmatprep.mubr.msk.f32.mxu1 %vm702_vm1, %v4679_v5  ;;  %5619 = vperm.xlu1 %7475, %v7577_v26   ;;  %v5089_v19 = vsel %vm9361_vm4, %v5057_v60, 0.0  ;;  %v5091_v32 = vsel %vm9362_vm5, %v5059_v8, 0.0  ;;  %v5061_v62 = vld [vmem:[#allocation2 + $0x61] sm:$0xff]  ;;  %v5063_v5 = vld [vmem:[#allocation2 + $0x71] sm:$0xff] }
 0x222   : > { %v7581_v36 = vpop.eup %7580  ;;  %7594 = vrcp.f32 %v1147_v23  ;;  %v5058_v23 = vld [vmem:[#allocation2 + $0x49] sm:$0xff]  ;;  %v5093_v26 = vsel %vm9363_vm7, %v5061_v62, 0.0 }
 0x223   : > { %v7583_v3 = vpop.eup %7582  ;;  %v1148_v13 = vadd.f32 1.0, %v7581_v36  ;;  %v5065_v36 = vld [vmem:[#allocation2 + $0x81] sm:$0xff] }
 0x224   : > { %v7585_v20 = vpop.eup %7584  ;;  %5624 = vperm.xlu0 %7474, %v7579_v53   ;;  %7103 = vmatmul.mubr.msk.f32.gmra.mrb[2].mxu1 %vm702_vm1, %v4680_v37  ;;  %v1151_v7 = vadd.f32 1.0, %v7583_v3  ;;  %v5095_v53 = vsel %vm9364_vm3, %v5063_v5, 0.0  ;;  %v5067_v3 = vld [vmem:[#allocation2 + $0x91] sm:$0xff]  ;;  %v5069_v37 = vld [vmem:[#allocation2 + $0xa1] sm:$0xff] }
 0x225   : > { %v7587_v9 = vpop.eup %7586  ;;  %7596 = vrcp.f32 %v1148_v13  ;;  %7105 = vmatprep.mubr.msk.f32.mxu1 %vm702_vm1, %v4681_v39  ;;  %5629 = vperm.xlu1 %7475, %v7585_v20   ;;  %v5099_v13 = vsel %vm8398_vm8, %v5067_v3, 0.0  ;;  %v5101_v20 = vsel %vm8420_vm9, %v5069_v37, 0.0  ;;  %v5071_v39 = vld [vmem:[#allocation2 + $0xb1] sm:$0xff]  ;;  %vm9366_vm8 = vnez %v9318_v25 }
 0x226   : > { %v7589_v1 = vpop.eup %7588  ;;  %7598 = vrcp.f32 %v1149_v46  ;;  %v5097_v46 = vsel %vm9365_vm14, %v5065_v36, 0.0 }
 0x227   : > { %v1150_v63 = vadd.f32 1.0, %v7589_v1  ;;  %v7591_v11 = vpop.eup %7590  ;;  %v5073_v1 = vld [vmem:[#allocation2 + $0xc1] sm:$0xff] }
 0x228   : > { %5634 = vperm.xlu0 %7474, %v7587_v9   ;;  %7106 = vmatmul.mubr.msk.f32.gmra.mrb[4].mxu1 %vm702_vm1, %v4682_v34  ;;  %v5103_v9 = vsel %vm8442_vm10, %v5071_v39, 0.0 }
 0x229   : > { %7600 = vrcp.f32 %v1150_v63  ;;  %7108 = vmatprep.mubr.msk.f32.mxu1 %vm702_vm1, %v4683_v14  ;;  %5639 = vperm.xlu1 %7475, %v7591_v11   ;;  %v5075_v63 = vld [vmem:[#allocation2 + $0xd1] sm:$0xff]  ;;  %v5077_v11 = vld [vmem:[#allocation2 + $0xe1] sm:$0xff] }
 0x22a   : > { %7602 = vrcp.f32 %v1151_v7  ;;  %v5105_v7 = vsel %vm8464_vm11, %v5073_v1, 0.0  ;;  %v5107_v34 = vsel %vm8486_vm12, %v5075_v63, 0.0  ;;  %v5109_v14 = vsel %vm8508_vm13, %v5077_v11, 0.0 }
 0x22b   : > { %v7593_v10 = vpop.eup %7592 }
 0x22c   : > { %v7595_v49 = vpop.eup %7594  ;;  %5644 = vperm.xlu0 %7474, %v7593_v10   ;;  %7109 = vmatmul.mubr.msk.f32.gmra.mrb[6].mxu1 %vm702_vm1, %v4684_v18  ;;  %v5079_v10 = vld [vmem:[#allocation2 + $0xf1] sm:$0xff] }
 0x22d   : > { %7111 = vmatprep.mubr.msk.f32.mxu1 %vm702_vm1, %v4685_v48  ;;  %5649 = vperm.xlu1 %7475, %v7595_v49   ;;  %v5111_v18 = vsel %vm9366_vm8, %v5079_v10, 0.0  ;;  %v5081_v49 = vld [vmem:[#allocation2 + $0x101] sm:$0xff] }
 0x22e   : > { %v5113_v48 = vsel %vm9351_vm6, %v5081_v49, 0.0 }
 0x22f   : > { %v7597_v16 = vpop.eup %7596 }
 0x230   : > { %v7599_v51 = vpop.eup %7598  ;;  %5654 = vperm.xlu0 %7474, %v7597_v16   ;;  %7112 = vmatmul.mubr.msk.f32.gmra.mrb[8].mxu1 %vm702_vm1, %v4686_v21  ;;  %v5083_v16 = vld [vmem:[#allocation2 + $0x111] sm:$0xff]  ;;  %v5084_v21 = vld [vmem:[#allocation2 + $0x119] sm:$0xff] }
 0x231   : > { %7114 = vmatprep.mubr.msk.f32.mxu1 %vm702_vm1, %v4687_v0  ;;  %5659 = vperm.xlu1 %7475, %v7599_v51   ;;  %v5085_v51 = vld [vmem:[#allocation2 + $0x121] sm:$0xff]  ;;  %v5115_v25 = vsel %vm8572_vm0, %v5083_v16, 0.0 }
 0x232   : > { %v5117_v0 = vsel %vm8583_vm15, %v5085_v51, 0.0 }
 0x233   : > { %v7601_v40 = vpop.eup %7600 }
 0x234   : > { %v7603_v41 = vpop.eup %7602  ;;  %5664 = vperm.xlu0 %7474, %v7601_v40   ;;  %7115 = vmatmul.mubr.msk.f32.gmra.mrb[10].mxu1 %vm702_vm1, %v4688_v61 }
 0x235   : > { %7117 = vmatprep.mubr.msk.f32.mxu1 %vm702_vm1, %v4689_v22  ;;  %5669 = vperm.xlu1 %7475, %v7603_v41  }
 0x238   : > { %7118 = vmatmul.mubr.msk.f32.gmra.mrb[12].mxu1 %vm702_vm1, %v4690_v57 }
 0x239   : > { %7120 = vmatprep.mubr.msk.f32.mxu1 %vm702_vm1, %v4691_v50 }
 0x23c   : > { %7121 = vmatmul.mubr.msk.f32.gmra.mrb[14].mxu1 %vm702_vm1, %v4692_v33 }
 0x23d   : > { %7123 = vmatprep.mubr.msk.f32.mxu1 %vm702_vm1, %v4693_v59 }
 0x240   : > { %7124 = vmatmul.mubr.msk.f32.gmra.mrb[16].mxu1 %vm702_vm1, %v4694_v45 }
 0x241   : > { %7126 = vmatprep.mubr.msk.f32.mxu1 %vm702_vm1, %v4695_v28 }
 0x244   : > { %7127 = vmatmul.mubr.msk.f32.gmra.mrb[18].mxu1 %vm702_vm1, %v4696_v12 }
 0x245   : > { %7129 = vmatprep.mubr.msk.f32.mxu1 %vm702_vm1, %v4697_v43 }
 0x248   : > { %7130 = vmatmul.mubr.msk.f32.gmra.mrb[20].mxu1 %vm702_vm1, %v4698_v42 }
 0x249   : > { %7134 = vmatprep.mubr.msk.f32.mxu1 %vm702_vm1, %v5054_v54 }
 0x24c   : > { %7135 = vmatmul.mubr.msk.f32.vlgmr.msra.gmra.mrb[22].mxu1 %vm702_vm1, %v5087_v17 }
 0x24d   : > { %7137 = vmatprep.mubr.msk.f32.mxu1 %vm702_vm1, %v5056_v4 }
 0x250   : > { %7138 = vmatmul.mubr.msk.f32.gmra.mrb[24].mxu1 %vm702_vm1, %v5089_v19 }
 0x251   : > { %7140 = vmatprep.mubr.msk.f32.mxu1 %vm702_vm1, %v5058_v23 }
 0x254   : > { %7141 = vmatmul.mubr.msk.f32.gmra.mrb[26].mxu1 %vm702_vm1, %v5091_v32 }
 0x255   : > { %7143 = vmatprep.mubr.msk.f32.mxu1 %vm702_vm1, %v5060_v38 }
 0x258   : > { %7144 = vmatmul.mubr.msk.f32.gmra.mrb[28].mxu1 %vm702_vm1, %v5093_v26 }
 0x259   : > { %7146 = vmatprep.mubr.msk.f32.mxu1 %vm702_vm1, %v5062_v56 }
 0x25c   : > { %7147 = vmatmul.mubr.msk.f32.gmra.mrb[30].mxu1 %vm702_vm1, %v5095_v53 }
 0x25d   : > { %7149 = vmatprep.mubr.msk.f32.mxu1 %vm702_vm1, %v5064_v44 }
 0x260   : > { %7150 = vmatmul.mubr.msk.f32.gmra.mrb[0].mxu1 %vm702_vm1, %v5097_v46 }
 0x261   : > { %7152 = vmatprep.mubr.msk.f32.mxu1 %vm702_vm1, %v5066_v27 }
 0x264   : > { %7153 = vmatmul.mubr.msk.f32.gmra.mrb[2].mxu1 %vm702_vm1, %v5099_v13 }
 0x265   : > { %7155 = vmatprep.mubr.msk.f32.mxu1 %vm702_vm1, %v5068_v58 }
 0x268   : > { %7156 = vmatmul.mubr.msk.f32.gmra.mrb[4].mxu1 %vm702_vm1, %v5101_v20 }
 0x269   : > { %7158 = vmatprep.mubr.msk.f32.mxu1 %vm702_vm1, %v5070_v2 }
 0x26c   : > { %7159 = vmatmul.mubr.msk.f32.gmra.mrb[6].mxu1 %vm702_vm1, %v5103_v9 }
 0x26d   : > { %7161 = vmatprep.mubr.msk.f32.mxu1 %vm702_vm1, %v5072_v15  ;;  %v8971_v15 = vld [vmem:[%s9192_s6] ss:$0 sm:$0xff] }
 0x270   : > { %7162 = vmatmul.mubr.msk.f32.gmra.mrb[8].mxu1 %vm702_vm1, %v5105_v7 }
 0x271   : > { %7164 = vmatprep.mubr.msk.f32.mxu1 %vm702_vm1, %v5074_v31 }
 0x273   : > { %v5520_v46 = vpop.permute.xlu0 %5519 }
 0x274   : > { %7165 = vmatmul.mubr.msk.f32.gmra.mrb[10].mxu1 %vm702_vm1, %v5107_v34 }
 0x275   : > { %7167 = vmatprep.mubr.msk.f32.mxu1 %vm702_vm1, %v5076_v47 }
 0x277   : > { %v5530_v36 = vpop.permute.xlu1 %5529 }
 0x278   : > { %7168 = vmatmul.mubr.msk.f32.gmra.mrb[12].mxu1 %vm702_vm1, %v5109_v14  ;;  %v5515_v3 = vpop.permute.xlu0 %5514 }
 0x279   : > { %7170 = vmatprep.mubr.msk.f32.mxu1 %vm702_vm1, %v5078_v6 }
 0x27b   : > { %v5525_v27 = vpop.permute.xlu1 %5524 }
 0x27c   : > { %7171 = vmatmul.mubr.msk.f32.gmra.mrb[14].mxu1 %vm702_vm1, %v5111_v18  ;;  %v5535_v58 = vpop.permute.xlu0 %5534 }
 0x27d   : > { %7173 = vmatprep.mubr.msk.f32.mxu1 %vm702_vm1, %v5080_v29 }
 0x27f   : > { %v5540_v13 = vpop.permute.xlu1 %5539 }
 0x280   : > { %7174 = vmatmul.mubr.msk.f32.gmra.mrb[16].mxu1 %vm702_vm1, %v5113_v48 }
 0x281   : > { %7176 = vmatprep.mubr.msk.f32.mxu1 %vm702_vm1, %v5082_v55 }
 0x282   : > { %v5545_v20 = vpop.permute.xlu0 %5544 }
 0x283   : > { %v5550_v37 = vpop.permute.xlu1 %5549 }
 0x284   : > { %7177 = vmatmul.mubr.msk.f32.gmra.mrb[18].mxu1 %vm702_vm1, %v5115_v25 }
 0x285   : > { %7179 = vmatprep.mubr.msk.f32.mxu1 %vm702_vm1, %v5084_v21 }
 0x286   : > { %v8966_v39 = vpop.permute.xlu0 %5554 }
 0x287   : > { %v8964_v2 = vpop.permute.xlu1 %5559 }
 0x288   : > { %7180 = vmatmul.mubr.msk.f32.gmra.mrb[20].mxu1 %vm702_vm1, %v5117_v0  ;;  %vm5704_vm1 = vcmask 31744  }
 0x28a   : > { %v8989_v14 = vpop.permute.xlu0 %5564 }
 0x28b   : > { %v8980_v34 = vpop.permute.xlu1 %5569 }
 0x28f   : > { %v9003_v0 = vpop.permute.xlu1 %5579 }
 0x2a9   : > { %v8916_v30 = vpop.f32.mrb[74].mxu0 }
 0x2aa   : > { %v8918_v40 = vpop.f32.mrb[75].mxu0 }
 0x2ad   : > { %v8920_v61 = vpop.f32.mrb[76].mxu0 }
 0x2ae   : > { %v8922_v41 = vpop.f32.mrb[77].mxu0 }
 0x2b1   : > { %v8924_v22 = vpop.f32.mrb[78].mxu0 }
 0x2b2   : > { %v8926_v24 = vpop.f32.mrb[79].mxu0 }
 0x2b5   : > { %v8928_v57 = vpop.f32.mrb[80].mxu0 }
 0x2b6   : > { %v8930_v50 = vpop.f32.mrb[81].mxu0 }
 0x2b9   : > { %v8932_v52 = vpop.f32.mrb[82].mxu0 }
 0x2ba   : > { %v8934_v33 = vpop.f32.mrb[83].mxu0 }
 0x2bd   : > { %v8936_v59 = vpop.f32.mrb[84].mxu0 }
 0x2be   : > { %v8938_v45 = vpop.f32.mrb[85].mxu0 }
 0x2c1   : > { %v8940_v28 = vpop.f32.mrb[86].mxu0 }
 0x2c2   : > { %v8942_v43 = vpop.f32.mrb[87].mxu0 }
 0x2c5   : > { %v8944_v12 = vpop.f32.mrb[88].mxu0 }
 0x2c6   : > { %v8946_v42 = vpop.f32.mrb[89].mxu0 }
 0x2c9   : > { %v8948_v54 = vpop.f32.mrb[90].mxu0 }
 0x2ca   : > { %v8950_v35 = vpop.f32.mrb[91].mxu0 }
 0x2cd   : > { %v8952_v17 = vpop.f32.mrb[92].mxu0 }
 0x2ce   : > { %v8954_v4 = vpop.f32.mrb[93].mxu0 }
 0x2d1   : > { %v8956_v60 = vpop.f32.mrb[94].mxu0 }
 0x2d2   : > { %v8958_v19 = vpop.f32.mrb[95].mxu0 }
 0x2d5   : > { %v6886_v23 = vpop.f32.mrb[64].mxu0 }
 0x2d6   : > { %v3251_v8 = vpop.f32.mrb[65].mxu0 }
 0x2d9   : > { %v6889_v32 = vpop.f32.mrb[66].mxu0 }
 0x2da   : > { %v3261_v38 = vpop.f32.mrb[67].mxu0 }
 0x2dd   : > { %v6892_v62 = vpop.f32.mrb[68].mxu0 }
 0x2de   : > { %v3271_v26 = vpop.f32.mrb[69].mxu0 }
 0x2e1   : > { %v6895_v56 = vpop.f32.mrb[70].mxu0 }
 0x2e2   : > { %v3281_v5 = vpop.f32.mrb[71].mxu0 }
 0x2e5   : > { %v8960_v53 = vpop.f32.mrb[72].mxu0 }
 0x2e6   : > { %v8962_v44 = vpop.f32.mrb[73].mxu0 }
 0x31f   : > { %v7136_v9 = vpop.f32.mrb[22].mxu1 }
 0x320   : > { %v7208_v1 = vadd.f32 %v7136_v9, %v6886_v23  ;;  %v5282_v7 = vpop.f32.mrb[23].mxu1 }
 0x321   : > { %v7209_v31 = vadd.f32 %v5282_v7, %v3251_v8  ;;  %v5590_v7 = vpop.permute.xlu1 %5589 }
 0x322   : > { %v5481_v63 = vadd.f32 %v7208_v1, %v8971_v15 }
 0x323   : > { %v5480_v47 = vadd.f32 %v7209_v31, %v8971_v15  ;;  %v7139_v11 = vpop.f32.mrb[24].mxu1 }
 0x324   : > { %v5673_v6 = vmul.f32 %v5520_v46, %v5481_v63  ;;  %5738 = vst.msk [vmem:[%s8977_s22 + $0x8] sm:$0xff] %vm5704_vm1, %v5481_v63  ;;  %v7210_v10 = vadd.f32 %v7139_v11, %v6889_v32  ;;  %v5292_v18 = vpop.f32.mrb[25].mxu1  ;;  %v9007_v32 = vpop.permute.xlu0 %5574 }
 0x325   : > { %v5672_v29 = vmul.f32 %v5515_v3, %v5480_v47  ;;  %5737 = vst.msk [vmem:[%s8977_s22] sm:$0xff] %vm5704_vm1, %v5480_v47  ;;  %v7211_v49 = vadd.f32 %v5292_v18, %v3261_v38 }
 0x326   : > { %5706 = vst.msk [vmem:[%s8986_s25 + $0x8] sm:$0xff] %vm5704_vm1, %v5673_v6  ;;  %v5483_v48 = vadd.f32 %v7210_v10, %v8971_v15 }
 0x327   : > { %5705 = vst.msk [vmem:[%s8986_s25] sm:$0xff] %vm5704_vm1, %v5672_v29  ;;  %v5482_v55 = vadd.f32 %v7211_v49, %v8971_v15  ;;  %v7142_v16 = vpop.f32.mrb[26].mxu1 }
 0x328   : > { %v5675_v21 = vmul.f32 %v5530_v36, %v5483_v48  ;;  %5740 = vst.msk [vmem:[%s8977_s22 + $0x18] sm:$0xff] %vm5704_vm1, %v5483_v48  ;;  %v7212_v51 = vadd.f32 %v7142_v16, %v6892_v62  ;;  %v5302_v25 = vpop.f32.mrb[27].mxu1 }
 0x329   : > { %v5674_v23 = vmul.f32 %v5525_v27, %v5482_v55  ;;  %5739 = vst.msk [vmem:[%s8977_s22 + $0x10] sm:$0xff] %vm5704_vm1, %v5482_v55  ;;  %v7213_v8 = vadd.f32 %v5302_v25, %v3271_v26 }
 0x32a   : > { %5708 = vst.msk [vmem:[%s8986_s25 + $0x18] sm:$0xff] %vm5704_vm1, %v5675_v21  ;;  %v5485_v38 = vadd.f32 %v7212_v51, %v8971_v15 }
 0x32b   : > { %5707 = vst.msk [vmem:[%s8986_s25 + $0x10] sm:$0xff] %vm5704_vm1, %v5674_v23  ;;  %v5484_v62 = vadd.f32 %v7213_v8, %v8971_v15  ;;  %v7145_v36 = vpop.f32.mrb[28].mxu1 }
 0x32c   : > { %v5677_v46 = vmul.f32 %v5540_v13, %v5485_v38  ;;  %5742 = vst.msk [vmem:[%s8977_s22 + $0x28] sm:$0xff] %vm5704_vm1, %v5485_v38  ;;  %v7214_v27 = vadd.f32 %v7145_v36, %v6895_v56  ;;  %v5312_v3 = vpop.f32.mrb[29].mxu1  ;;  %v5585_v56 = vpop.permute.xlu0 %5584 }
 0x32d   : > { %v5676_v26 = vmul.f32 %v5535_v58, %v5484_v62  ;;  %5741 = vst.msk [vmem:[%s8977_s22 + $0x20] sm:$0xff] %vm5704_vm1, %v5484_v62  ;;  %v7215_v9 = vadd.f32 %v5312_v3, %v3281_v5 }
 0x32e   : > { %5710 = vst.msk [vmem:[%s8986_s25 + $0x28] sm:$0xff] %vm5704_vm1, %v5677_v46  ;;  %v5487_v1 = vadd.f32 %v7214_v27, %v8971_v15 }
 0x32f   : > { %5709 = vst.msk [vmem:[%s8986_s25 + $0x20] sm:$0xff] %vm5704_vm1, %v5676_v26  ;;  %v5486_v13 = vadd.f32 %v7215_v9, %v8971_v15  ;;  %v7148_v31 = vpop.f32.mrb[30].mxu1 }
 0x330   : > { %v5679_v63 = vmul.f32 %v5550_v37, %v5487_v1  ;;  %5744 = vst.msk [vmem:[%s8977_s22 + $0x38] sm:$0xff] %vm5704_vm1, %v5487_v1  ;;  %v7216_v58 = vadd.f32 %v7148_v31, %v8960_v53  ;;  %v5322_v5 = vpop.f32.mrb[31].mxu1  ;;  %v5595_v48 = vpop.permute.xlu0 %5594 }
 0x331   : > { %v5678_v47 = vmul.f32 %v5545_v20, %v5486_v13  ;;  %5743 = vst.msk [vmem:[%s8977_s22 + $0x30] sm:$0xff] %vm5704_vm1, %v5486_v13  ;;  %v7217_v11 = vadd.f32 %v5322_v5, %v8962_v44  ;;  %v5600_v44 = vpop.permute.xlu1 %5599 }
 0x332   : > { %5712 = vst.msk [vmem:[%s8986_s25 + $0x38] sm:$0xff] %vm5704_vm1, %v5679_v63  ;;  %v5489_v6 = vadd.f32 %v7216_v58, %v8971_v15 }
 0x333   : > { %5711 = vst.msk [vmem:[%s8986_s25 + $0x30] sm:$0xff] %vm5704_vm1, %v5678_v47  ;;  %v5488_v37 = vadd.f32 %v7217_v11, %v8971_v15  ;;  %v7151_v10 = vpop.f32.mrb[0].mxu1 }
 0x334   : > { %v5681_v53 = vmul.f32 %v8964_v2, %v5489_v6  ;;  %5746 = vst.msk [vmem:[%s8977_s22 + $0x48] sm:$0xff] %vm5704_vm1, %v5489_v6  ;;  %v7218_v20 = vadd.f32 %v7151_v10, %v8916_v30  ;;  %v5332_v18 = vpop.f32.mrb[1].mxu1  ;;  %v5605_v8 = vpop.permute.xlu0 %5604 }
 0x335   : > { %v5680_v29 = vmul.f32 %v8966_v39, %v5488_v37  ;;  %5745 = vst.msk [vmem:[%s8977_s22 + $0x40] sm:$0xff] %vm5704_vm1, %v5488_v37  ;;  %v7219_v49 = vadd.f32 %v5332_v18, %v8918_v40  ;;  %v5610_v23 = vpop.permute.xlu1 %5609 }
 0x336   : > { %5714 = vst.msk [vmem:[%s8986_s25 + $0x48] sm:$0xff] %vm5704_vm1, %v5681_v53  ;;  %v5491_v2 = vadd.f32 %v7218_v20, %v8971_v15 }
 0x337   : > { %5713 = vst.msk [vmem:[%s8986_s25 + $0x40] sm:$0xff] %vm5704_vm1, %v5680_v29  ;;  %v5490_v30 = vadd.f32 %v7219_v49, %v8971_v15  ;;  %v7154_v55 = vpop.f32.mrb[2].mxu1 }
 0x338   : > { %v5683_v16 = vmul.f32 %v8980_v34, %v5491_v2  ;;  %5748 = vst.msk [vmem:[%s8977_s22 + $0x58] sm:$0xff] %vm5704_vm1, %v5491_v2  ;;  %v7220_v39 = vadd.f32 %v7154_v55, %v8920_v61  ;;  %v5342_v21 = vpop.f32.mrb[3].mxu1  ;;  %v5615_v1 = vpop.permute.xlu0 %5614 }
 0x339   : > { %v5682_v40 = vmul.f32 %v8989_v14, %v5490_v30  ;;  %5747 = vst.msk [vmem:[%s8977_s22 + $0x50] sm:$0xff] %vm5704_vm1, %v5490_v30  ;;  %v7221_v51 = vadd.f32 %v5342_v21, %v8922_v41  ;;  %v5620_v26 = vpop.permute.xlu1 %5619 }
 0x33a   : > { %5716 = vst.msk [vmem:[%s8986_s25 + $0x58] sm:$0xff] %vm5704_vm1, %v5683_v16  ;;  %v5493_v25 = vadd.f32 %v7220_v39, %v8971_v15 }
 0x33b   : > { %5715 = vst.msk [vmem:[%s8986_s25 + $0x50] sm:$0xff] %vm5704_vm1, %v5682_v40  ;;  %v5492_v34 = vadd.f32 %v7221_v51, %v8971_v15  ;;  %v7157_v61 = vpop.f32.mrb[4].mxu1 }
 0x33c   : > { %v5685_v14 = vmul.f32 %v9003_v0, %v5493_v25  ;;  %5750 = vst.msk [vmem:[%s8977_s22 + $0x68] sm:$0xff] %vm5704_vm1, %v5493_v25  ;;  %v7222_v38 = vadd.f32 %v7157_v61, %v8924_v22  ;;  %v5352_v41 = vpop.f32.mrb[5].mxu1  ;;  %v5625_v6 = vpop.permute.xlu0 %5624 }
 0x33d   : > { %v5684_v62 = vmul.f32 %v9007_v32, %v5492_v34  ;;  %5749 = vst.msk [vmem:[%s8977_s22 + $0x60] sm:$0xff] %vm5704_vm1, %v5492_v34  ;;  %v7223_v36 = vadd.f32 %v5352_v41, %v8926_v24  ;;  %v5630_v47 = vpop.permute.xlu1 %5629 }
 0x33e   : > { %5718 = vst.msk [vmem:[%s8986_s25 + $0x68] sm:$0xff] %vm5704_vm1, %v5685_v14  ;;  %v5495_v46 = vadd.f32 %v7222_v38, %v8971_v15 }
 0x33f   : > { %5717 = vst.msk [vmem:[%s8986_s25 + $0x60] sm:$0xff] %vm5704_vm1, %v5684_v62  ;;  %v5494_v0 = vadd.f32 %v7223_v36, %v8971_v15  ;;  %v7160_v27 = vpop.f32.mrb[6].mxu1 }
 0x340   : > { %v5687_v22 = vmul.f32 %v5590_v7, %v5495_v46  ;;  %5752 = vst.msk [vmem:[%s8977_s22 + $0x78] sm:$0xff] %vm5704_vm1, %v5495_v46  ;;  %v7224_v32 = vadd.f32 %v7160_v27, %v8928_v57  ;;  %v5362_v3 = vpop.f32.mrb[7].mxu1  ;;  %v5635_v55 = vpop.permute.xlu0 %5634 }
 0x341   : > { %v5686_v24 = vmul.f32 %v5585_v56, %v5494_v0  ;;  %5751 = vst.msk [vmem:[%s8977_s22 + $0x70] sm:$0xff] %vm5704_vm1, %v5494_v0  ;;  %v7225_v9 = vadd.f32 %v5362_v3, %v8930_v50  ;;  %v5640_v2 = vpop.permute.xlu1 %5639 }
 0x342   : > { %5720 = vst.msk [vmem:[%s8986_s25 + $0x78] sm:$0xff] %vm5704_vm1, %v5687_v22  ;;  %v5497_v13 = vadd.f32 %v7224_v32, %v8971_v15 }
 0x343   : > { %5719 = vst.msk [vmem:[%s8986_s25 + $0x70] sm:$0xff] %vm5704_vm1, %v5686_v24  ;;  %v5496_v7 = vadd.f32 %v7225_v9, %v8971_v15  ;;  %v7163_v57 = vpop.f32.mrb[8].mxu1 }
 0x344   : > { %v5689_v31 = vmul.f32 %v5600_v44, %v5497_v13  ;;  %5754 = vst.msk [vmem:[%s8977_s22 + $0x88] sm:$0xff] %vm5704_vm1, %v5497_v13  ;;  %v7226_v56 = vadd.f32 %v7163_v57, %v8932_v52  ;;  %v5372_v63 = vpop.f32.mrb[9].mxu1 }
 0x345   : > { %v5688_v50 = vmul.f32 %v5595_v48, %v5496_v7  ;;  %5753 = vst.msk [vmem:[%s8977_s22 + $0x80] sm:$0xff] %vm5704_vm1, %v5496_v7  ;;  %v7227_v58 = vadd.f32 %v5372_v63, %v8934_v33  ;;  %v5650_v34 = vpop.permute.xlu1 %5649 }
 0x346   : > { %5722 = vst.msk [vmem:[%s8986_s25 + $0x88] sm:$0xff] %vm5704_vm1, %v5689_v31  ;;  %v5499_v5 = vadd.f32 %v7226_v56, %v8971_v15 }
 0x347   : > { %5721 = vst.msk [vmem:[%s8986_s25 + $0x80] sm:$0xff] %vm5704_vm1, %v5688_v50  ;;  %v5498_v11 = vadd.f32 %v7227_v58, %v8971_v15  ;;  %v7166_v52 = vpop.f32.mrb[10].mxu1 }
 0x348   : > { %v5691_v37 = vmul.f32 %v5610_v23, %v5499_v5  ;;  %5756 = vst.msk [vmem:[%s8977_s22 + $0x98] sm:$0xff] %vm5704_vm1, %v5499_v5  ;;  %v7228_v10 = vadd.f32 %v7166_v52, %v8936_v59  ;;  %v5382_v33 = vpop.f32.mrb[11].mxu1 }
 0x349   : > { %v5690_v53 = vmul.f32 %v5605_v8, %v5498_v11  ;;  %5755 = vst.msk [vmem:[%s8977_s22 + $0x90] sm:$0xff] %vm5704_vm1, %v5498_v11  ;;  %v7229_v20 = vadd.f32 %v5382_v33, %v8938_v45  ;;  %v5645_v8 = vpop.permute.xlu0 %5644  ;;  %v5660_v32 = vpop.permute.xlu1 %5659 }
 0x34a   : > { %5724 = vst.msk [vmem:[%s8986_s25 + $0x98] sm:$0xff] %vm5704_vm1, %v5691_v37  ;;  %v5501_v18 = vadd.f32 %v7228_v10, %v8971_v15 }
 0x34b   : > { %5723 = vst.msk [vmem:[%s8986_s25 + $0x90] sm:$0xff] %vm5704_vm1, %v5690_v53  ;;  %v5500_v44 = vadd.f32 %v7229_v20, %v8971_v15  ;;  %v7169_v29 = vpop.f32.mrb[12].mxu1 }
 0x34c   : > { %v5693_v59 = vmul.f32 %v5620_v26, %v5501_v18  ;;  %5758 = vst.msk [vmem:[%s8977_s22 + $0xa8] sm:$0xff] %vm5704_vm1, %v5501_v18  ;;  %v7230_v49 = vadd.f32 %v7169_v29, %v8940_v28  ;;  %v5392_v48 = vpop.f32.mrb[13].mxu1 }
 0x34d   : > { %v5692_v45 = vmul.f32 %v5615_v1, %v5500_v44  ;;  %5757 = vst.msk [vmem:[%s8977_s22 + $0xa0] sm:$0xff] %vm5704_vm1, %v5500_v44  ;;  %v7231_v30 = vadd.f32 %v5392_v48, %v8942_v43  ;;  %v5655_v26 = vpop.permute.xlu0 %5654  ;;  %v5670_v56 = vpop.permute.xlu1 %5669 }
 0x34e   : > { %5726 = vst.msk [vmem:[%s8986_s25 + $0xa8] sm:$0xff] %vm5704_vm1, %v5693_v59  ;;  %v5503_v16 = vadd.f32 %v7230_v49, %v8971_v15 }
 0x34f   : > { %5725 = vst.msk [vmem:[%s8986_s25 + $0xa0] sm:$0xff] %vm5704_vm1, %v5692_v45  ;;  %v5502_v39 = vadd.f32 %v7231_v30, %v8971_v15  ;;  %v7172_v28 = vpop.f32.mrb[14].mxu1 }
 0x350   : > { %v5695_v21 = vmul.f32 %v5630_v47, %v5503_v16  ;;  %5760 = vst.msk [vmem:[%s8977_s22 + $0xb8] sm:$0xff] %vm5704_vm1, %v5503_v16  ;;  %v7232_v40 = vadd.f32 %v7172_v28, %v8944_v12  ;;  %v5402_v51 = vpop.f32.mrb[15].mxu1 }
 0x351   : > { %v5694_v43 = vmul.f32 %v5625_v6, %v5502_v39  ;;  %5759 = vst.msk [vmem:[%s8977_s22 + $0xb0] sm:$0xff] %vm5704_vm1, %v5502_v39  ;;  %v7233_v25 = vadd.f32 %v5402_v51, %v8946_v42  ;;  %v5665_v50 = vpop.permute.xlu0 %5664 }
 0x352   : > { %5728 = vst.msk [vmem:[%s8986_s25 + $0xb8] sm:$0xff] %vm5704_vm1, %v5695_v21  ;;  %v5505_v23 = vadd.f32 %v7232_v40, %v8971_v15 }
 0x353   : > { %5727 = vst.msk [vmem:[%s8986_s25 + $0xb0] sm:$0xff] %vm5704_vm1, %v5694_v43  ;;  %v5504_v61 = vadd.f32 %v7233_v25, %v8971_v15  ;;  %v7175_v12 = vpop.f32.mrb[16].mxu1 }
 0x354   : > { %v5697_v14 = vmul.f32 %v5640_v2, %v5505_v23  ;;  %5762 = vst.msk [vmem:[%s8977_s22 + $0xc8] sm:$0xff] %vm5704_vm1, %v5505_v23  ;;  %v7234_v38 = vadd.f32 %v7175_v12, %v8948_v54  ;;  %v5412_v42 = vpop.f32.mrb[17].mxu1 }
 0x355   : > { %v5696_v41 = vmul.f32 %v5635_v55, %v5504_v61  ;;  %5761 = vst.msk [vmem:[%s8977_s22 + $0xc0] sm:$0xff] %vm5704_vm1, %v5504_v61  ;;  %v7235_v62 = vadd.f32 %v5412_v42, %v8950_v35 }
 0x356   : > { %5730 = vst.msk [vmem:[%s8986_s25 + $0xc8] sm:$0xff] %vm5704_vm1, %v5697_v14  ;;  %v5507_v36 = vadd.f32 %v7234_v38, %v8971_v15 }
 0x357   : > { %5729 = vst.msk [vmem:[%s8986_s25 + $0xc0] sm:$0xff] %vm5704_vm1, %v5696_v41  ;;  %v5506_v46 = vadd.f32 %v7235_v62, %v8971_v15  ;;  %v7178_v0 = vpop.f32.mrb[18].mxu1 }
 0x358   : > { %v5699_v54 = vmul.f32 %v5650_v34, %v5507_v36  ;;  %5764 = vst.msk [vmem:[%s8977_s22 + $0xd8] sm:$0xff] %vm5704_vm1, %v5507_v36  ;;  %v7236_v27 = vadd.f32 %v7178_v0, %v8952_v17  ;;  %v5422_v22 = vpop.f32.mrb[19].mxu1 }
 0x359   : > { %v5698_v35 = vmul.f32 %v5645_v8, %v5506_v46  ;;  %5763 = vst.msk [vmem:[%s8977_s22 + $0xd0] sm:$0xff] %vm5704_vm1, %v5506_v46  ;;  %v7237_v3 = vadd.f32 %v5422_v22, %v8954_v4 }
 0x35a   : > { %5732 = vst.msk [vmem:[%s8986_s25 + $0xd8] sm:$0xff] %vm5704_vm1, %v5699_v54  ;;  %v5509_v24 = vadd.f32 %v7236_v27, %v8971_v15 }
 0x35b   : > { %5731 = vst.msk [vmem:[%s8986_s25 + $0xd0] sm:$0xff] %vm5704_vm1, %v5698_v35  ;;  %v5508_v9 = vadd.f32 %v7237_v3, %v8971_v15  ;;  %v7181_v17 = vpop.f32.mrb[20].mxu1 }
 0x35c   : > { %v5701_v1 = vmul.f32 %v5660_v32, %v5509_v24  ;;  %5766 = vst.msk [vmem:[%s8977_s22 + $0xe8] sm:$0xff] %vm5704_vm1, %v5509_v24  ;;  %v7238_v13 = vadd.f32 %v7181_v17, %v8956_v60  ;;  %v5432_v4 = vpop.f32.mrb[21].mxu1 }
 0x35d   : > { %v5700_v7 = vmul.f32 %v5655_v26, %v5508_v9  ;;  %5765 = vst.msk [vmem:[%s8977_s22 + $0xe0] sm:$0xff] %vm5704_vm1, %v5508_v9  ;;  %v7239_v57 = vadd.f32 %v5432_v4, %v8958_v19 }
 0x35e   : > { %5734 = vst.msk [vmem:[%s8986_s25 + $0xe8] sm:$0xff] %vm5704_vm1, %v5701_v1  ;;  %v5511_v31 = vadd.f32 %v7238_v13, %v8971_v15 }
 0x35f   : > { %5733 = vst.msk [vmem:[%s8986_s25 + $0xe0] sm:$0xff] %vm5704_vm1, %v5700_v7  ;;  %v5510_v63 = vadd.f32 %v7239_v57, %v8971_v15 }
 0x360   : > { %v5703_v58 = vmul.f32 %v5670_v56, %v5511_v31  ;;  %5768 = vst.msk [vmem:[%s8977_s22 + $0xf8] sm:$0xff] %vm5704_vm1, %v5511_v31 }
 0x361   : > { %v5702_v60 = vmul.f32 %v5665_v50, %v5510_v63  ;;  %5767 = vst.msk [vmem:[%s8977_s22 + $0xf0] sm:$0xff] %vm5704_vm1, %v5510_v63 }
 0x362   : > { %5736 = vst.msk [vmem:[%s8986_s25 + $0xf8] sm:$0xff] %vm5704_vm1, %v5703_v58 }
 0x363   : > { %5735 = vst.msk [vmem:[%s8986_s25 + $0xf0] sm:$0xff] %vm5704_vm1, %v5702_v60 }
 0x364 PF: > { %s21_s29 = sadd.s32 1, %s7611_s29  }
 0x365   : > { %p18_p4 = scmp.ge.s32.totalorder %s21_s29, 4  }
 0x367   :  { %20 = sbr.rel (!%p18_p4) target bundleno = 3 (0x3), region = 98 }

</bundles_post_ra>
